<compile_context>
chip_gen: v5e
topology: v5e:2x2
jax: 0.10.0
libtpu: 0.0.40
codegen_flags: <defaults>
</compile_context>

<pallas_src>
import functools

import jax
import jax.numpy as jnp
from jax.experimental import pallas as pl
from jax.experimental.pallas import tpu as pltpu


TARGET_BLOCK_BYTES = 2 << 20   # ~2 MiB widest row block per grid step


# ----------------------------------------------------------------------------
# Pallas kernels (bf16 MXU operands, f32 accumulation; gate/blend math in f32)
# ----------------------------------------------------------------------------
def _pw_relu_kernel(x_ref, w_ref, b_ref, o_ref):
    """1x1 conv as matmul + bias + relu."""
    y = jnp.dot(x_ref[...], w_ref[...], preferred_element_type=jnp.float32)
    o_ref[...] = jnp.maximum(y + b_ref[...], 0.0).astype(o_ref.dtype)


def _dfi_conv4_kernel(x4_ref, x42_ref, wg_ref, bg_ref, w4a_ref, w4b_ref, b4_ref,
                      o_ref):
    """Fused DFI gate + Conv1Relu over concat([identity, dfi]) via split weights.

    g   = sigmoid((x4 + x42) @ Wg + bg)            (DFI stand-in gate)
    dfi = g*x4 + (1-g)*x42
    y   = relu(x4 @ W4a + dfi @ W4b + b4)          (conv4, concat eliminated)
    """
    x4 = x4_ref[...]
    x42 = x42_ref[...]
    x4f = x4.astype(jnp.float32)
    x42f = x42.astype(jnp.float32)
    g = jax.nn.sigmoid(
        jnp.dot((x4f + x42f).astype(jnp.bfloat16), wg_ref[...],
                preferred_element_type=jnp.float32) + bg_ref[...])
    dfi = g * x4f + (1.0 - g) * x42f
    y = jnp.dot(x4, w4a_ref[...], preferred_element_type=jnp.float32)
    y = y + jnp.dot(dfi.astype(jnp.bfloat16), w4b_ref[...],
                    preferred_element_type=jnp.float32)
    o_ref[...] = jnp.maximum(y + b4_ref[...], 0.0).astype(o_ref.dtype)


def _level_decoder_kernel(a_ref, b_ref, wbin_ref, wsa_ref, wsb_ref, bias_ref,
                          o_ref):
    """One pyramid level of BOTH decoders -> single [bin | sem] output slab.

    binary (FPNNeck):   relu(|a - b| @ Wbin)      (abs-diff fused)
    semantic (AFPN):    relu(a @ Wsa + b @ Wsb)   (concat eliminated)
    Weights are zero-padded into disjoint output lane ranges so one relu/store
    covers both; with pixel-packing the slab is 128 lanes (unmasked stores).
    """
    a = a_ref[...]
    b = b_ref[...]
    d = jnp.abs(a.astype(jnp.float32) - b.astype(jnp.float32)).astype(jnp.bfloat16)
    y = jnp.dot(d, wbin_ref[...], preferred_element_type=jnp.float32)
    y = y + jnp.dot(a, wsa_ref[...], preferred_element_type=jnp.float32)
    y = y + jnp.dot(b, wsb_ref[...], preferred_element_type=jnp.float32)
    o_ref[...] = jnp.maximum(y + bias_ref[...], 0.0).astype(o_ref.dtype)


def _tail_kernel(acc_ref, wcs_ref, bcs_ref, wg_ref, bg_ref, wh_ref, bh_ref,
                 o_ref, *, p):
    """Fused decoder tail: final Conv1Relu of both decoders (block-diag weight),
    CSD residual gate on the semantic half, and both FCN-head classifiers.
    Output: one 128-lane bf16 slab [sem logits | ... | bin logits @ 64:66 | ...].
    """
    acc = acc_ref[...].astype(jnp.bfloat16)                       # [bin | sem] acc
    cs = jnp.dot(acc, wcs_ref[...], preferred_element_type=jnp.float32) + bcs_ref[...]
    cs = jnp.maximum(cs, 0.0)                                     # [change | sem]
    glin = jnp.dot(cs.astype(jnp.bfloat16), wg_ref[...],
                   preferred_element_type=jnp.float32) + bg_ref[...]
    gate = jax.nn.sigmoid(glin)
    lane = jax.lax.broadcasted_iota(jnp.int32, cs.shape, 1)
    mod = cs * (1.0 + jnp.where(lane >= p, gate, 0.0))            # [change | CSD(sem)]
    logits = jnp.dot(mod.astype(jnp.bfloat16), wh_ref[...],
                     preferred_element_type=jnp.float32) + bh_ref[...]
    o_ref[...] = logits.astype(o_ref.dtype)


# ----------------------------------------------------------------------------
# Row-tiled pallas_call wrapper
# ----------------------------------------------------------------------------
def _row_tile(rows, max_bytes_per_row):
    """Largest row tile (multiple of 16, dividing `rows`) whose widest row block
    stays under TARGET_BLOCK_BYTES.  Prefers >=2 grid steps so v7x's two
    TensorCores both get work (near-neutral on single-core v5e/v6e)."""
    if rows < 32 or rows % 16 != 0:
        return rows
    cap = max(16, (TARGET_BLOCK_BYTES // max(int(max_bytes_per_row), 1)) // 16 * 16)
    t = min(rows, cap)
    t -= t % 16
    while t > 16 and rows % t != 0:
        t -= 16
    if t < 16 or rows % t != 0:
        return rows
    if t == rows and (rows // 2) % 16 == 0:
        t = rows // 2
    return t


def _row_matmul_call(kernel, rows, row_inputs, param_inputs, out_width, out_dtype,
                     row_offsets=None):
    """Row-tiled pallas_call.  `row_inputs` are (rows [+ offset], C) arrays tiled
    over rows; `row_offsets` (in rows, multiples of the tile) address two logical
    streams inside one stacked array with no XLA slice copy.  `param_inputs`
    (weights / biases) are replicated to every grid step."""
    if row_offsets is None:
        row_offsets = [0] * len(row_inputs)
    widths = [int(a.shape[-1]) for a in row_inputs]
    in_bytes = [w * a.dtype.itemsize for w, a in zip(widths, row_inputs)]
    out_bytes = out_width * jnp.dtype(out_dtype).itemsize
    tile_r = _row_tile(rows, max(in_bytes + [out_bytes]))
    assert rows % tile_r == 0
    blk_offs = []
    for off in row_offsets:
        assert off % tile_r == 0
        blk_offs.append(off // tile_r)
    in_specs = [pl.BlockSpec((tile_r, w), (lambda i, o=o: (i + o, 0)))
                for w, o in zip(widths, blk_offs)]
    in_specs += [pl.BlockSpec(tuple(q.shape), lambda i: (0, 0))
                 for q in param_inputs]
    out_spec = pl.BlockSpec((tile_r, out_width), lambda i: (i, 0))
    # Explicit VMEM budget: double-buffered row blocks + params + headroom;
    # stays well under v7x's 64 MiB physical, raises v5e's 16 MiB default.
    vmem = 2 * tile_r * (sum(in_bytes) + out_bytes)
    vmem += 2 * sum(int(q.size) * q.dtype.itemsize for q in param_inputs)
    vmem = int(min(max(vmem + (8 << 20), 32 << 20), 56 << 20))
    # NOTE: default double-buffering; bump with pipeline_mode=pl.Buffered(3) if
    # profiling still shows exposed DMA on the small launches.
    return pl.pallas_call(
        kernel,
        out_shape=jax.ShapeDtypeStruct((rows, out_width), out_dtype),
        grid_spec=pltpu.PrefetchScalarGridSpec(
            num_scalar_prefetch=0,
            grid=(rows // tile_r,),
            in_specs=in_specs,
            out_specs=out_spec,
        ),
        compiler_params=pltpu.CompilerParams(
            dimension_semantics=("parallel",),
            vmem_limit_bytes=vmem),
    )(*row_inputs, *param_inputs)


# ----------------------------------------------------------------------------
# Pixel-packing helpers (lane-dense loads/stores for narrow-channel levels)
# ----------------------------------------------------------------------------
def _pick_pack(out_width, rows, rows_align=1):
    """Pixels packed per matmul row so the output hits 128 lanes; constrained so
    the packed per-stream row count stays divisible by rows_align (needed when
    streams are addressed via block offsets)."""
    pack = max(1, 128 // max(out_width, 1))
    while pack > 1 and rows % (pack * rows_align) != 0:
        pack //= 2
    return pack


def _pack_rows(x2d, pack):
    if pack == 1:
        return x2d
    r, c = x2d.shape
    return x2d.reshape(r // pack, pack * c)            # pure view (row-major)


def _pack_w(w, pack):
    if pack == 1:
        return w
    return jnp.kron(jnp.eye(pack, dtype=w.dtype), w)   # block-diagonal, const-folded


def _pack_b(b, pack):
    return b if pack == 1 else jnp.tile(b, (1, pack))


# ----------------------------------------------------------------------------
# Plain-JAX glue
# ----------------------------------------------------------------------------
def space_to_depth(x, p):
    n, h, w, c = x.shape
    x = x.reshape(n, h // p, p, w // p, p, c)
    x = x.transpose(0, 1, 3, 2, 4, 5)
    return x.reshape(n, h // p, w // p, p * p * c)


def upsample_nearest(x, factor):
    # TODO(synk): reference decoders/FCNHead use bilinear interpolation; nearest
    # upsample (fused by XLA with the f32 accumulate under jit) stands in.
    if factor == 1:
        return x
    return jnp.repeat(jnp.repeat(x, factor, axis=1), factor, axis=2)


# ----------------------------------------------------------------------------
# Parameters (deterministic synthetic init; no checkpoint load)
# ----------------------------------------------------------------------------
def init_params(key, inplanes, num_classes, in_ch=3):
    assert num_classes <= 64
    keys = iter(jax.random.split(key, 64))

    def dense(cin, cout, fan_in=None):
        scale = 1.0 / jnp.sqrt(jnp.float32(fan_in or cin))
        return (jax.random.normal(next(keys), (cin, cout), jnp.float32)
                * scale).astype(jnp.bfloat16)

    def conv(cin, cout):
        return {"w": dense(cin, cout), "b": jnp.zeros((1, cout), jnp.float32)}

    P = inplanes
    c8 = inplanes * 8
    p = {"inplanes": inplanes, "num_classes": num_classes}

    # SAM_Encoder / CNN_Encoder stand-ins: 4-stage pyramids, strides 4/8/16/32,
    # channels inplanes*(1,2,4,8) (check_channels is then the identity).
    # TODO(synk): build_sam_vit_t / moat_4 definitions are not in the source.
    def pyramid():
        return [conv(in_ch * 16, inplanes),
                conv(inplanes * 4, inplanes * 2),
                conv(inplanes * 2 * 4, inplanes * 4),
                conv(inplanes * 4 * 4, inplanes * 8)]
    p["sam"] = pyramid()
    p["cnn"] = pyramid()

    # DFI stand-in gate + Conv1Relu over concat([identity, dfi]) (split weights)
    p["dfi_gate"] = conv(c8, c8)
    p["conv4"] = {"wa": dense(c8, c8, 2 * c8), "wb": dense(c8, c8, 2 * c8),
                  "b": jnp.zeros((1, c8), jnp.float32)}

    # Per pyramid level: FPNNeck (binary, |a-b|) and AFPN (semantic, concat)
    # projections fused into one [bin | sem] 2P-wide output via zero-padded W.
    lvls = []
    for m in (1, 2, 4, 8):
        c = inplanes * m
        z = jnp.zeros((c, P), jnp.bfloat16)
        lvls.append({
            "wbin": jnp.concatenate([dense(c, P), z], axis=1),
            "wsa": jnp.concatenate([z, dense(c, P, 2 * c)], axis=1),
            "wsb": jnp.concatenate([z, dense(c, P, 2 * c)], axis=1),
            "b": jnp.zeros((1, 2 * P), jnp.float32),
        })
    p["lvl"] = lvls

    # Fused decoder tail: final Conv1Relu of both decoders (block-diagonal),
    # CSD gate (acts on the semantic half only) and both FCN-head classifiers.
    # All padded weight columns / biases are zero-initialised.
    wcs = jnp.zeros((2 * P, 2 * P), jnp.bfloat16)
    wcs = wcs.at[:P, :P].set(dense(P, P))        # binary-decoder out conv
    wcs = wcs.at[P:, P:].set(dense(P, P))        # semantic-decoder out conv
    p["tail_cs_w"] = wcs
    p["tail_cs_b"] = jnp.zeros((1, 2 * P), jnp.float32)
    wg = jnp.zeros((2 * P, 2 * P), jnp.bfloat16)
    wg = wg.at[P:, P:].set(dense(P, P))          # CSD stand-in gate
    p["tail_gate_w"] = wg
    p["tail_gate_b"] = jnp.zeros((1, 2 * P), jnp.float32)
    wh = jnp.zeros((2 * P, 128), jnp.bfloat16)
    wh = wh.at[P:, :num_classes].set(dense(P, num_classes))   # semantic classifier
    wh = wh.at[:P, 64:66].set(dense(P, 2))                    # binary classifier
    p["tail_head_w"] = wh
    p["tail_head_b"] = jnp.zeros((1, 128), jnp.float32)
    return p


# ----------------------------------------------------------------------------
# Sub-module stand-ins (structure mirrors the PyTorch forward)
# ----------------------------------------------------------------------------
def encoder(x_nhwc, convs):
    # Strided patchify + pixel-packed Pallas 1x1-conv pyramid with matching
    # strides/channel counts stands in for the missing backbone definitions.
    feats = []
    f = x_nhwc
    for si, cp in enumerate(convs):
        f = space_to_depth(f, 4 if si == 0 else 2)
        nb, h, w, c = f.shape
        cout = cp["w"].shape[1]
        rows = nb * h * w
        pack = _pick_pack(cout, rows)
        y = _row_matmul_call(
            _pw_relu_kernel, rows // pack,
            [_pack_rows(f.reshape(rows, c), pack)],
            [_pack_w(cp["w"], pack), _pack_b(cp["b"], pack)],
            pack * cout, jnp.bfloat16)
        f = y.reshape(nb, h, w, cout)
        feats.append(f)
    return feats


# ----------------------------------------------------------------------------
# Top-level forward (mirrors ChangeDetection.forward)
# ----------------------------------------------------------------------------
def change_detection_forward(params, xa_nchw, xb_nchw):
    assert xa_nchw.shape == xb_nchw.shape
    n, _, h_in, w_in = xa_nchw.shape
    P = params["inplanes"]
    num_classes = params["num_classes"]

    xa = jnp.transpose(xa_nchw, (0, 2, 3, 1)).astype(jnp.bfloat16)
    xb = jnp.transpose(xb_nchw, (0, 2, 3, 1)).astype(jnp.bfloat16)

    # Siamese trick: weights are shared across the (xa, xb) streams, so both are
    # stacked along batch and each encoder / the DFI+conv4 stage runs once.
    x = jnp.concatenate([xa, xb], axis=0)                 # (2n, H, W, C)
    sam_feats = encoder(x, params["sam"])
    cnn_feats = encoder(x, params["cnn"])                 # only stage 4 is consumed

    # DFI fusion of the deepest stage + Conv1Relu(concat([identity, dfi])):
    # gate, blend, concat-split matmuls and relu fused into one kernel.
    f4, f42 = sam_feats[3], cnn_feats[3]
    nb, h4, w4, c8 = f4.shape
    rows4 = nb * h4 * w4
    pg, p4 = params["dfi_gate"], params["conv4"]
    f4_fused = _row_matmul_call(
        _dfi_conv4_kernel, rows4,
        [f4.reshape(rows4, c8), f42.reshape(rows4, c8)],
        [pg["w"], pg["b"], p4["wa"], p4["wb"], p4["b"]],
        c8, jnp.bfloat16).reshape(nb, h4, w4, c8)

    feats = list(sam_feats[:3]) + [f4_fused]              # stacked [a; b] per level
    target_hw = h_in // 4                                   # decoders work at stride 4

    # Per pyramid level: BOTH decoder projections in one pixel-packed kernel,
    # a/b streams addressed via block-offset index_maps (no XLA slice copy).
    # Upsample + accumulate of the [bin|sem] slabs is left to XLA fusion but
    # carried in f32 (correctness).
    acc = None
    for lvl, f in enumerate(feats):
        _, h_l, w_l, c_l = f.shape
        rows_l = n * h_l * w_l
        lp = params["lvl"][lvl]
        flat = f.reshape(2 * rows_l, c_l)
        if rows_l % 8 == 0:
            pack = _pick_pack(2 * P, rows_l, rows_align=8)
            rows_p = rows_l // pack
            y = _row_matmul_call(
                _level_decoder_kernel, rows_p,
                [_pack_rows(flat, pack), _pack_rows(flat, pack)],
                [_pack_w(lp["wbin"], pack), _pack_w(lp["wsa"], pack),
                 _pack_w(lp["wsb"], pack), _pack_b(lp["b"], pack)],
                pack * 2 * P, jnp.bfloat16,
                row_offsets=[0, rows_p])
        else:
            # tiny deep-level fallback (keeps the (8,128) block rule satisfied)
            y = _row_matmul_call(
                _level_decoder_kernel, rows_l,
                [flat[:rows_l], flat[rows_l:]],
                [lp["wbin"], lp["wsa"], lp["wsb"], lp["b"]],
                2 * P, jnp.bfloat16)
        y = y.reshape(n, h_l, w_l, 2 * P)
        y = upsample_nearest(y, target_hw // h_l).astype(jnp.float32)
        acc = y if acc is None else acc + y

    # Fused decoder tail: final Conv1Relu of binary & semantic decoders, CSD
    # residual gate and both FCN heads in ONE kernel.  The duplicated
    # Semantic_Decoder / CSD / head stream is computed once (eval: s1 == s2).
    rows_t = n * target_hw * target_hw
    logits = _row_matmul_call(
        functools.partial(_tail_kernel, p=P), rows_t,
        [acc.reshape(rows_t, 2 * P)],
        [params["tail_cs_w"], params["tail_cs_b"],
         params["tail_gate_w"], params["tail_gate_b"],
         params["tail_head_w"], params["tail_head_b"]],
        128, jnp.bfloat16)

    sem_map = logits[:, :num_classes].reshape(n, target_hw, target_hw, num_classes)
    bin_map = logits[:, 64:66].reshape(n, target_hw, target_hw, 2)

    fct = h_in // target_hw

    def finish(y):
        # TODO(synk): reference FCNHead uses bilinear resize to (h_in, w_in).
        y = upsample_nearest(y, fct)
        return jnp.transpose(y, (0, 3, 1, 2)).astype(jnp.float32)   # NCHW, f32

    out_sem = finish(sem_map)     # Semantic_Decoder is called twice on identical
    out_bin = finish(bin_map)     # inputs in eval mode -> out_s1 == out_s2
    return out_sem, out_sem, out_bin


# ----------------------------------------------------------------------------
if __name__ == "__main__":
    B, C_IN, H, W = 2, 3, 64, 64
    INPLANES = 16
    NUM_CLASSES = 6

    key = jax.random.PRNGKey(0)
    k_p, k_a, k_b = jax.random.split(key, 3)
    params = init_params(k_p, INPLANES, NUM_CLASSES, C_IN)
    xa = jax.random.normal(k_a, (B, C_IN, H, W), jnp.float32)
    xb = jax.random.normal(k_b, (B, C_IN, H, W), jnp.float32)

    fwd = jax.jit(functools.partial(change_detection_forward, params))
    out_s1, out_s2, out = fwd(xa, xb)
    jax.block_until_ready((out_s1, out_s2, out))

    assert out_s1.shape == (B, NUM_CLASSES, H, W)
    assert out_s2.shape == (B, NUM_CLASSES, H, W)
    assert out.shape == (B, 2, H, W)
    print("KERNEL_OK")
</pallas_src>

<mosaic_0001>
module attributes {stable_mosaic.version = 11 : i64} {
  func.func @_pw_relu_kernel(%arg0: i32, %arg1: memref<64x384xbf16, #tpu.memory_space<vmem>>, %arg2: memref<384x128xbf16, #tpu.memory_space<vmem>>, %arg3: memref<1x128xf32, #tpu.memory_space<vmem>>, %arg4: memref<64x128xbf16, #tpu.memory_space<vmem>>) attributes {dimension_semantics = [#tpu.dimension_semantics<parallel>], iteration_bounds = array<i64: 2>, scalar_prefetch = 0 : i64, scratch_operands = 0 : i64, tpu.core_type = #tpu.core_type<tc>, window_params = [{transform_indices = @transform_0, window_bounds = array<i64: 64, 384>}, {pipeline_mode = #tpu.pipeline_mode<synchronous>, transform_indices = @transform_1, window_bounds = array<i64: 384, 128>}, {pipeline_mode = #tpu.pipeline_mode<synchronous>, transform_indices = @transform_2, window_bounds = array<i64: 1, 128>}, {transform_indices = @transform_3, window_bounds = array<i64: 64, 128>}]} {
    %c0 = arith.constant 0 : index
    %c0_0 = arith.constant 0 : index
    %0 = vector.load %arg1[%c0, %c0_0] : memref<64x384xbf16, #tpu.memory_space<vmem>>, vector<64x384xbf16>
    %c0_1 = arith.constant 0 : index
    %c0_2 = arith.constant 0 : index
    %1 = vector.load %arg2[%c0_1, %c0_2] : memref<384x128xbf16, #tpu.memory_space<vmem>>, vector<384x128xbf16>
    %cst = arith.constant dense<0.000000e+00> : vector<64x128xf32>
    %2 = tpu.matmul %0, %1, %cst {dimension_numbers = #tpu.dot_dimension_numbers<[1], [0], [0], [1], [0, 0, 1, 1], [], []>} : vector<64x384xbf16>, vector<384x128xbf16>, vector<64x128xf32> -> vector<64x128xf32>
    %c0_3 = arith.constant 0 : index
    %c0_4 = arith.constant 0 : index
    %3 = vector.load %arg3[%c0_3, %c0_4] : memref<1x128xf32, #tpu.memory_space<vmem>>, vector<1x128xf32>
    %4 = vector.broadcast %3 : vector<1x128xf32> to vector<64x128xf32>
    %5 = arith.addf %2, %4 : vector<64x128xf32>
    %cst_5 = arith.constant 0.000000e+00 : f32
    %6 = vector.broadcast %cst_5 : f32 to vector<64x128xf32>
    %7 = arith.maximumf %5, %6 : vector<64x128xf32>
    %8 = arith.truncf %7 : vector<64x128xf32> to vector<64x128xbf16>
    %c0_6 = arith.constant 0 : index
    %c0_7 = arith.constant 0 : index
    %9 = vector.load %arg4[%c0_6, %c0_7] : memref<64x128xbf16, #tpu.memory_space<vmem>>, vector<64x128xbf16>
    tpu.vector_store %arg4[%c0_6, %c0_7], %8 {strides = array<i32>} : memref<64x128xbf16, #tpu.memory_space<vmem>>, vector<64x128xbf16>,
    return
  }
  func.func @transform_0(%arg0: i32) -> (i32, i32) {
    %c0_i32 = arith.constant 0 : i32
    %0 = arith.addi %arg0, %c0_i32 : i32
    %c0_i32_0 = arith.constant 0 : i32
    %c0_i32_1 = arith.constant 0 : i32
    return %0, %c0_i32_0 : i32, i32
  }
  func.func @transform_1(%arg0: i32) -> (i32, i32) {
    %c0_i32 = arith.constant 0 : i32
    %c0_i32_0 = arith.constant 0 : i32
    %c0_i32_1 = arith.constant 0 : i32
    return %c0_i32, %c0_i32_0 : i32, i32
  }
  func.func @transform_2(%arg0: i32) -> (i32, i32) {
    %c0_i32 = arith.constant 0 : i32
    %c0_i32_0 = arith.constant 0 : i32
    %c0_i32_1 = arith.constant 0 : i32
    return %c0_i32, %c0_i32_0 : i32, i32
  }
  func.func @transform_3(%arg0: i32) -> (i32, i32) {
    %c0_i32 = arith.constant 0 : i32
    %c0_i32_0 = arith.constant 0 : i32
    return %arg0, %c0_i32 : i32, i32
  }
}

module attributes {stable_mosaic.version = 11 : i64} {
  func.func @_pw_relu_kernel(%arg0: i32, %arg1: memref<32x256xbf16, #tpu.memory_space<vmem>>, %arg2: memref<256x128xbf16, #tpu.memory_space<vmem>>, %arg3: memref<1x128xf32, #tpu.memory_space<vmem>>, %arg4: memref<32x128xbf16, #tpu.memory_space<vmem>>) attributes {dimension_semantics = [#tpu.dimension_semantics<parallel>], iteration_bounds = array<i64: 2>, scalar_prefetch = 0 : i64, scratch_operands = 0 : i64, tpu.core_type = #tpu.core_type<tc>, window_params = [{transform_indices = @transform_0, window_bounds = array<i64: 32, 256>}, {pipeline_mode = #tpu.pipeline_mode<synchronous>, transform_indices = @transform_1, window_bounds = array<i64: 256, 128>}, {pipeline_mode = #tpu.pipeline_mode<synchronous>, transform_indices = @transform_2, window_bounds = array<i64: 1, 128>}, {transform_indices = @transform_3, window_bounds = array<i64: 32, 128>}]} {
    %c0 = arith.constant 0 : index
    %c0_0 = arith.constant 0 : index
    %0 = vector.load %arg1[%c0, %c0_0] : memref<32x256xbf16, #tpu.memory_space<vmem>>, vector<32x256xbf16>
    %c0_1 = arith.constant 0 : index
    %c0_2 = arith.constant 0 : index
    %1 = vector.load %arg2[%c0_1, %c0_2] : memref<256x128xbf16, #tpu.memory_space<vmem>>, vector<256x128xbf16>
    %cst = arith.constant dense<0.000000e+00> : vector<32x128xf32>
    %2 = tpu.matmul %0, %1, %cst {dimension_numbers = #tpu.dot_dimension_numbers<[1], [0], [0], [1], [0, 0, 1, 1], [], []>} : vector<32x256xbf16>, vector<256x128xbf16>, vector<32x128xf32> -> vector<32x128xf32>
    %c0_3 = arith.constant 0 : index
    %c0_4 = arith.constant 0 : index
    %3 = vector.load %arg3[%c0_3, %c0_4] : memref<1x128xf32, #tpu.memory_space<vmem>>, vector<1x128xf32>
    %4 = vector.broadcast %3 : vector<1x128xf32> to vector<32x128xf32>
    %5 = arith.addf %2, %4 : vector<32x128xf32>
    %cst_5 = arith.constant 0.000000e+00 : f32
    %6 = vector.broadcast %cst_5 : f32 to vector<32x128xf32>
    %7 = arith.maximumf %5, %6 : vector<32x128xf32>
    %8 = arith.truncf %7 : vector<32x128xf32> to vector<32x128xbf16>
    %c0_6 = arith.constant 0 : index
    %c0_7 = arith.constant 0 : index
    %9 = vector.load %arg4[%c0_6, %c0_7] : memref<32x128xbf16, #tpu.memory_space<vmem>>, vector<32x128xbf16>
    tpu.vector_store %arg4[%c0_6, %c0_7], %8 {strides = array<i32>} : memref<32x128xbf16, #tpu.memory_space<vmem>>, vector<32x128xbf16>,
    return
  }
  func.func @transform_0(%arg0: i32) -> (i32, i32) {
    %c0_i32 = arith.constant 0 : i32
    %0 = arith.addi %arg0, %c0_i32 : i32
    %c0_i32_0 = arith.constant 0 : i32
    %c0_i32_1 = arith.constant 0 : i32
    return %0, %c0_i32_0 : i32, i32
  }
  func.func @transform_1(%arg0: i32) -> (i32, i32) {
    %c0_i32 = arith.constant 0 : i32
    %c0_i32_0 = arith.constant 0 : i32
    %c0_i32_1 = arith.constant 0 : i32
    return %c0_i32, %c0_i32_0 : i32, i32
  }
  func.func @transform_2(%arg0: i32) -> (i32, i32) {
    %c0_i32 = arith.constant 0 : i32
    %c0_i32_0 = arith.constant 0 : i32
    %c0_i32_1 = arith.constant 0 : i32
    return %c0_i32, %c0_i32_0 : i32, i32
  }
  func.func @transform_3(%arg0: i32) -> (i32, i32) {
    %c0_i32 = arith.constant 0 : i32
    %c0_i32_0 = arith.constant 0 : i32
    return %arg0, %c0_i32 : i32, i32
  }
}

module attributes {stable_mosaic.version = 11 : i64} {
  func.func @_pw_relu_kernel(%arg0: i32, %arg1: memref<16x256xbf16, #tpu.memory_space<vmem>>, %arg2: memref<256x128xbf16, #tpu.memory_space<vmem>>, %arg3: memref<1x128xf32, #tpu.memory_space<vmem>>, %arg4: memref<16x128xbf16, #tpu.memory_space<vmem>>) attributes {dimension_semantics = [#tpu.dimension_semantics<parallel>], iteration_bounds = array<i64: 2>, scalar_prefetch = 0 : i64, scratch_operands = 0 : i64, tpu.core_type = #tpu.core_type<tc>, window_params = [{transform_indices = @transform_0, window_bounds = array<i64: 16, 256>}, {pipeline_mode = #tpu.pipeline_mode<synchronous>, transform_indices = @transform_1, window_bounds = array<i64: 256, 128>}, {pipeline_mode = #tpu.pipeline_mode<synchronous>, transform_indices = @transform_2, window_bounds = array<i64: 1, 128>}, {transform_indices = @transform_3, window_bounds = array<i64: 16, 128>}]} {
    %c0 = arith.constant 0 : index
    %c0_0 = arith.constant 0 : index
    %0 = vector.load %arg1[%c0, %c0_0] : memref<16x256xbf16, #tpu.memory_space<vmem>>, vector<16x256xbf16>
    %c0_1 = arith.constant 0 : index
    %c0_2 = arith.constant 0 : index
    %1 = vector.load %arg2[%c0_1, %c0_2] : memref<256x128xbf16, #tpu.memory_space<vmem>>, vector<256x128xbf16>
    %cst = arith.constant dense<0.000000e+00> : vector<16x128xf32>
    %2 = tpu.matmul %0, %1, %cst {dimension_numbers = #tpu.dot_dimension_numbers<[1], [0], [0], [1], [0, 0, 1, 1], [], []>} : vector<16x256xbf16>, vector<256x128xbf16>, vector<16x128xf32> -> vector<16x128xf32>
    %c0_3 = arith.constant 0 : index
    %c0_4 = arith.constant 0 : index
    %3 = vector.load %arg3[%c0_3, %c0_4] : memref<1x128xf32, #tpu.memory_space<vmem>>, vector<1x128xf32>
    %4 = vector.broadcast %3 : vector<1x128xf32> to vector<16x128xf32>
    %5 = arith.addf %2, %4 : vector<16x128xf32>
    %cst_5 = arith.constant 0.000000e+00 : f32
    %6 = vector.broadcast %cst_5 : f32 to vector<16x128xf32>
    %7 = arith.maximumf %5, %6 : vector<16x128xf32>
    %8 = arith.truncf %7 : vector<16x128xf32> to vector<16x128xbf16>
    %c0_6 = arith.constant 0 : index
    %c0_7 = arith.constant 0 : index
    %9 = vector.load %arg4[%c0_6, %c0_7] : memref<16x128xbf16, #tpu.memory_space<vmem>>, vector<16x128xbf16>
    tpu.vector_store %arg4[%c0_6, %c0_7], %8 {strides = array<i32>} : memref<16x128xbf16, #tpu.memory_space<vmem>>, vector<16x128xbf16>,
    return
  }
  func.func @transform_0(%arg0: i32) -> (i32, i32) {
    %c0_i32 = arith.constant 0 : i32
    %0 = arith.addi %arg0, %c0_i32 : i32
    %c0_i32_0 = arith.constant 0 : i32
    %c0_i32_1 = arith.constant 0 : i32
    return %0, %c0_i32_0 : i32, i32
  }
  func.func @transform_1(%arg0: i32) -> (i32, i32) {
    %c0_i32 = arith.constant 0 : i32
    %c0_i32_0 = arith.constant 0 : i32
    %c0_i32_1 = arith.constant 0 : i32
    return %c0_i32, %c0_i32_0 : i32, i32
  }
  func.func @transform_2(%arg0: i32) -> (i32, i32) {
    %c0_i32 = arith.constant 0 : i32
    %c0_i32_0 = arith.constant 0 : i32
    %c0_i32_1 = arith.constant 0 : i32
    return %c0_i32, %c0_i32_0 : i32, i32
  }
  func.func @transform_3(%arg0: i32) -> (i32, i32) {
    %c0_i32 = arith.constant 0 : i32
    %c0_i32_0 = arith.constant 0 : i32
    return %arg0, %c0_i32 : i32, i32
  }
}

module attributes {stable_mosaic.version = 11 : i64} {
  func.func @_pw_relu_kernel(%arg0: i32, %arg1: memref<16x256xbf16, #tpu.memory_space<vmem>>, %arg2: memref<256x128xbf16, #tpu.memory_space<vmem>>, %arg3: memref<1x128xf32, #tpu.memory_space<vmem>>, %arg4: memref<16x128xbf16, #tpu.memory_space<vmem>>) attributes {dimension_semantics = [#tpu.dimension_semantics<parallel>], iteration_bounds = array<i64: 1>, scalar_prefetch = 0 : i64, scratch_operands = 0 : i64, tpu.core_type = #tpu.core_type<tc>, window_params = [{transform_indices = @transform_0, window_bounds = array<i64: 16, 256>}, {pipeline_mode = #tpu.pipeline_mode<synchronous>, transform_indices = @transform_1, window_bounds = array<i64: 256, 128>}, {pipeline_mode = #tpu.pipeline_mode<synchronous>, transform_indices = @transform_2, window_bounds = array<i64: 1, 128>}, {transform_indices = @transform_3, window_bounds = array<i64: 16, 128>}]} {
    %c0 = arith.constant 0 : index
    %c0_0 = arith.constant 0 : index
    %0 = vector.load %arg1[%c0, %c0_0] : memref<16x256xbf16, #tpu.memory_space<vmem>>, vector<16x256xbf16>
    %c0_1 = arith.constant 0 : index
    %c0_2 = arith.constant 0 : index
    %1 = vector.load %arg2[%c0_1, %c0_2] : memref<256x128xbf16, #tpu.memory_space<vmem>>, vector<256x128xbf16>
    %cst = arith.constant dense<0.000000e+00> : vector<16x128xf32>
    %2 = tpu.matmul %0, %1, %cst {dimension_numbers = #tpu.dot_dimension_numbers<[1], [0], [0], [1], [0, 0, 1, 1], [], []>} : vector<16x256xbf16>, vector<256x128xbf16>, vector<16x128xf32> -> vector<16x128xf32>
    %c0_3 = arith.constant 0 : index
    %c0_4 = arith.constant 0 : index
    %3 = vector.load %arg3[%c0_3, %c0_4] : memref<1x128xf32, #tpu.memory_space<vmem>>, vector<1x128xf32>
    %4 = vector.broadcast %3 : vector<1x128xf32> to vector<16x128xf32>
    %5 = arith.addf %2, %4 : vector<16x128xf32>
    %cst_5 = arith.constant 0.000000e+00 : f32
    %6 = vector.broadcast %cst_5 : f32 to vector<16x128xf32>
    %7 = arith.maximumf %5, %6 : vector<16x128xf32>
    %8 = arith.truncf %7 : vector<16x128xf32> to vector<16x128xbf16>
    %c0_6 = arith.constant 0 : index
    %c0_7 = arith.constant 0 : index
    %9 = vector.load %arg4[%c0_6, %c0_7] : memref<16x128xbf16, #tpu.memory_space<vmem>>, vector<16x128xbf16>
    tpu.vector_store %arg4[%c0_6, %c0_7], %8 {strides = array<i32>} : memref<16x128xbf16, #tpu.memory_space<vmem>>, vector<16x128xbf16>,
    return
  }
  func.func @transform_0(%arg0: i32) -> (i32, i32) {
    %c0_i32 = arith.constant 0 : i32
    %0 = arith.addi %arg0, %c0_i32 : i32
    %c0_i32_0 = arith.constant 0 : i32
    %c0_i32_1 = arith.constant 0 : i32
    return %0, %c0_i32_0 : i32, i32
  }
  func.func @transform_1(%arg0: i32) -> (i32, i32) {
    %c0_i32 = arith.constant 0 : i32
    %c0_i32_0 = arith.constant 0 : i32
    %c0_i32_1 = arith.constant 0 : i32
    return %c0_i32, %c0_i32_0 : i32, i32
  }
  func.func @transform_2(%arg0: i32) -> (i32, i32) {
    %c0_i32 = arith.constant 0 : i32
    %c0_i32_0 = arith.constant 0 : i32
    %c0_i32_1 = arith.constant 0 : i32
    return %c0_i32, %c0_i32_0 : i32, i32
  }
  func.func @transform_3(%arg0: i32) -> (i32, i32) {
    %c0_i32 = arith.constant 0 : i32
    %c0_i32_0 = arith.constant 0 : i32
    return %arg0, %c0_i32 : i32, i32
  }
}

module attributes {stable_mosaic.version = 11 : i64} {
  func.func @_dfi_conv4_kernel(%arg0: i32, %arg1: memref<16x128xbf16, #tpu.memory_space<vmem>>, %arg2: memref<16x128xbf16, #tpu.memory_space<vmem>>, %arg3: memref<128x128xbf16, #tpu.memory_space<vmem>>, %arg4: memref<1x128xf32, #tpu.memory_space<vmem>>, %arg5: memref<128x128xbf16, #tpu.memory_space<vmem>>, %arg6: memref<128x128xbf16, #tpu.memory_space<vmem>>, %arg7: memref<1x128xf32, #tpu.memory_space<vmem>>, %arg8: memref<16x128xbf16, #tpu.memory_space<vmem>>) attributes {dimension_semantics = [#tpu.dimension_semantics<parallel>], iteration_bounds = array<i64: 1>, scalar_prefetch = 0 : i64, scratch_operands = 0 : i64, tpu.core_type = #tpu.core_type<tc>, window_params = [{transform_indices = @transform_0, window_bounds = array<i64: 16, 128>}, {transform_indices = @transform_1, window_bounds = array<i64: 16, 128>}, {pipeline_mode = #tpu.pipeline_mode<synchronous>, transform_indices = @transform_2, window_bounds = array<i64: 128, 128>}, {pipeline_mode = #tpu.pipeline_mode<synchronous>, transform_indices = @transform_3, window_bounds = array<i64: 1, 128>}, {pipeline_mode = #tpu.pipeline_mode<synchronous>, transform_indices = @transform_4, window_bounds = array<i64: 128, 128>}, {pipeline_mode = #tpu.pipeline_mode<synchronous>, transform_indices = @transform_5, window_bounds = array<i64: 128, 128>}, {pipeline_mode = #tpu.pipeline_mode<synchronous>, transform_indices = @transform_6, window_bounds = array<i64: 1, 128>}, {transform_indices = @transform_7, window_bounds = array<i64: 16, 128>}]} {
    %c0 = arith.constant 0 : index
    %c0_0 = arith.constant 0 : index
    %0 = vector.load %arg1[%c0, %c0_0] : memref<16x128xbf16, #tpu.memory_space<vmem>>, vector<16x128xbf16>
    %c0_1 = arith.constant 0 : index
    %c0_2 = arith.constant 0 : index
    %1 = vector.load %arg2[%c0_1, %c0_2] : memref<16x128xbf16, #tpu.memory_space<vmem>>, vector<16x128xbf16>
    %2 = arith.extf %0 : vector<16x128xbf16> to vector<16x128xf32>
    %3 = arith.extf %1 : vector<16x128xbf16> to vector<16x128xf32>
    %4 = arith.addf %2, %3 : vector<16x128xf32>
    %5 = arith.truncf %4 : vector<16x128xf32> to vector<16x128xbf16>
    %c0_3 = arith.constant 0 : index
    %c0_4 = arith.constant 0 : index
    %6 = vector.load %arg3[%c0_3, %c0_4] : memref<128x128xbf16, #tpu.memory_space<vmem>>, vector<128x128xbf16>
    %cst = arith.constant dense<0.000000e+00> : vector<16x128xf32>
    %7 = tpu.matmul %5, %6, %cst {dimension_numbers = #tpu.dot_dimension_numbers<[1], [0], [0], [1], [0, 0, 1, 1], [], []>} : vector<16x128xbf16>, vector<128x128xbf16>, vector<16x128xf32> -> vector<16x128xf32>
    %c0_5 = arith.constant 0 : index
    %c0_6 = arith.constant 0 : index
    %8 = vector.load %arg4[%c0_5, %c0_6] : memref<1x128xf32, #tpu.memory_space<vmem>>, vector<1x128xf32>
    %9 = vector.broadcast %8 : vector<1x128xf32> to vector<16x128xf32>
    %10 = arith.addf %7, %9 : vector<16x128xf32>
    %11 = arith.negf %10 : vector<16x128xf32>
    %12 = math.exp %11 : vector<16x128xf32>
    %cst_7 = arith.constant 1.000000e+00 : f32
    %13 = vector.broadcast %cst_7 : f32 to vector<16x128xf32>
    %14 = arith.addf %13, %12 : vector<16x128xf32>
    %15 = arith.divf %13, %14 : vector<16x128xf32>
    %16 = arith.mulf %15, %2 : vector<16x128xf32>
    %cst_8 = arith.constant 1.000000e+00 : f32
    %17 = vector.broadcast %cst_8 : f32 to vector<16x128xf32>
    %18 = arith.subf %17, %15 : vector<16x128xf32>
    %19 = arith.mulf %18, %3 : vector<16x128xf32>
    %20 = arith.addf %16, %19 : vector<16x128xf32>
    %c0_9 = arith.constant 0 : index
    %c0_10 = arith.constant 0 : index
    %21 = vector.load %arg5[%c0_9, %c0_10] : memref<128x128xbf16, #tpu.memory_space<vmem>>, vector<128x128xbf16>
    %cst_11 = arith.constant dense<0.000000e+00> : vector<16x128xf32>
    %22 = tpu.matmul %0, %21, %cst_11 {dimension_numbers = #tpu.dot_dimension_numbers<[1], [0], [0], [1], [0, 0, 1, 1], [], []>} : vector<16x128xbf16>, vector<128x128xbf16>, vector<16x128xf32> -> vector<16x128xf32>
    %23 = arith.truncf %20 : vector<16x128xf32> to vector<16x128xbf16>
    %c0_12 = arith.constant 0 : index
    %c0_13 = arith.constant 0 : index
    %24 = vector.load %arg6[%c0_12, %c0_13] : memref<128x128xbf16, #tpu.memory_space<vmem>>, vector<128x128xbf16>
    %cst_14 = arith.constant dense<0.000000e+00> : vector<16x128xf32>
    %25 = tpu.matmul %23, %24, %cst_14 {dimension_numbers = #tpu.dot_dimension_numbers<[1], [0], [0], [1], [0, 0, 1, 1], [], []>} : vector<16x128xbf16>, vector<128x128xbf16>, vector<16x128xf32> -> vector<16x128xf32>
    %26 = arith.addf %22, %25 : vector<16x128xf32>
    %c0_15 = arith.constant 0 : index
    %c0_16 = arith.constant 0 : index
    %27 = vector.load %arg7[%c0_15, %c0_16] : memref<1x128xf32, #tpu.memory_space<vmem>>, vector<1x128xf32>
    %28 = vector.broadcast %27 : vector<1x128xf32> to vector<16x128xf32>
    %29 = arith.addf %26, %28 : vector<16x128xf32>
    %cst_17 = arith.constant 0.000000e+00 : f32
    %30 = vector.broadcast %cst_17 : f32 to vector<16x128xf32>
    %31 = arith.maximumf %29, %30 : vector<16x128xf32>
    %32 = arith.truncf %31 : vector<16x128xf32> to vector<16x128xbf16>
    %c0_18 = arith.constant 0 : index
    %c0_19 = arith.constant 0 : index
    %33 = vector.load %arg8[%c0_18, %c0_19] : memref<16x128xbf16, #tpu.memory_space<vmem>>, vector<16x128xbf16>
    tpu.vector_store %arg8[%c0_18, %c0_19], %32 {strides = array<i32>} : memref<16x128xbf16, #tpu.memory_space<vmem>>, vector<16x128xbf16>,
    return
  }
  func.func @transform_0(%arg0: i32) -> (i32, i32) {
    %c0_i32 = arith.constant 0 : i32
    %0 = arith.addi %arg0, %c0_i32 : i32
    %c0_i32_0 = arith.constant 0 : i32
    %c0_i32_1 = arith.constant 0 : i32
    return %0, %c0_i32_0 : i32, i32
  }
  func.func @transform_1(%arg0: i32) -> (i32, i32) {
    %c0_i32 = arith.constant 0 : i32
    %0 = arith.addi %arg0, %c0_i32 : i32
    %c0_i32_0 = arith.constant 0 : i32
    %c0_i32_1 = arith.constant 0 : i32
    return %0, %c0_i32_0 : i32, i32
  }
  func.func @transform_2(%arg0: i32) -> (i32, i32) {
    %c0_i32 = arith.constant 0 : i32
    %c0_i32_0 = arith.constant 0 : i32
    %c0_i32_1 = arith.constant 0 : i32
    return %c0_i32, %c0_i32_0 : i32, i32
  }
  func.func @transform_3(%arg0: i32) -> (i32, i32) {
    %c0_i32 = arith.constant 0 : i32
    %c0_i32_0 = arith.constant 0 : i32
    %c0_i32_1 = arith.constant 0 : i32
    return %c0_i32, %c0_i32_0 : i32, i32
  }
  func.func @transform_4(%arg0: i32) -> (i32, i32) {
    %c0_i32 = arith.constant 0 : i32
    %c0_i32_0 = arith.constant 0 : i32
    %c0_i32_1 = arith.constant 0 : i32
    return %c0_i32, %c0_i32_0 : i32, i32
  }
  func.func @transform_5(%arg0: i32) -> (i32, i32) {
    %c0_i32 = arith.constant 0 : i32
    %c0_i32_0 = arith.constant 0 : i32
    %c0_i32_1 = arith.constant 0 : i32
    return %c0_i32, %c0_i32_0 : i32, i32
  }
  func.func @transform_6(%arg0: i32) -> (i32, i32) {
    %c0_i32 = arith.constant 0 : i32
    %c0_i32_0 = arith.constant 0 : i32
    %c0_i32_1 = arith.constant 0 : i32
    return %c0_i32, %c0_i32_0 : i32, i32
  }
  func.func @transform_7(%arg0: i32) -> (i32, i32) {
    %c0_i32 = arith.constant 0 : i32
    %c0_i32_0 = arith.constant 0 : i32
    return %arg0, %c0_i32 : i32, i32
  }
}

module attributes {stable_mosaic.version = 11 : i64} {
  func.func @_level_decoder_kernel(%arg0: i32, %arg1: memref<8x128xbf16, #tpu.memory_space<vmem>>, %arg2: memref<8x128xbf16, #tpu.memory_space<vmem>>, %arg3: memref<128x32xbf16, #tpu.memory_space<vmem>>, %arg4: memref<128x32xbf16, #tpu.memory_space<vmem>>, %arg5: memref<128x32xbf16, #tpu.memory_space<vmem>>, %arg6: memref<1x32xf32, #tpu.memory_space<vmem>>, %arg7: memref<8x32xbf16, #tpu.memory_space<vmem>>) attributes {dimension_semantics = [#tpu.dimension_semantics<parallel>], iteration_bounds = array<i64: 1>, scalar_prefetch = 0 : i64, scratch_operands = 0 : i64, tpu.core_type = #tpu.core_type<tc>, window_params = [{transform_indices = @transform_0, window_bounds = array<i64: 8, 128>}, {transform_indices = @transform_1, window_bounds = array<i64: 8, 128>}, {pipeline_mode = #tpu.pipeline_mode<synchronous>, transform_indices = @transform_2, window_bounds = array<i64: 128, 32>}, {pipeline_mode = #tpu.pipeline_mode<synchronous>, transform_indices = @transform_3, window_bounds = array<i64: 128, 32>}, {pipeline_mode = #tpu.pipeline_mode<synchronous>, transform_indices = @transform_4, window_bounds = array<i64: 128, 32>}, {pipeline_mode = #tpu.pipeline_mode<synchronous>, transform_indices = @transform_5, window_bounds = array<i64: 1, 32>}, {transform_indices = @transform_6, window_bounds = array<i64: 8, 32>}]} {
    %c0 = arith.constant 0 : index
    %c0_0 = arith.constant 0 : index
    %0 = vector.load %arg1[%c0, %c0_0] : memref<8x128xbf16, #tpu.memory_space<vmem>>, vector<8x128xbf16>
    %c0_1 = arith.constant 0 : index
    %c0_2 = arith.constant 0 : index
    %1 = vector.load %arg2[%c0_1, %c0_2] : memref<8x128xbf16, #tpu.memory_space<vmem>>, vector<8x128xbf16>
    %2 = arith.extf %0 : vector<8x128xbf16> to vector<8x128xf32>
    %3 = arith.extf %1 : vector<8x128xbf16> to vector<8x128xf32>
    %4 = arith.subf %2, %3 : vector<8x128xf32>
    %5 = math.absf %4 : vector<8x128xf32>
    %6 = arith.truncf %5 : vector<8x128xf32> to vector<8x128xbf16>
    %c0_3 = arith.constant 0 : index
    %c0_4 = arith.constant 0 : index
    %7 = vector.load %arg3[%c0_3, %c0_4] : memref<128x32xbf16, #tpu.memory_space<vmem>>, vector<128x32xbf16>
    %cst = arith.constant dense<0.000000e+00> : vector<8x32xf32>
    %8 = tpu.matmul %6, %7, %cst {dimension_numbers = #tpu.dot_dimension_numbers<[1], [0], [0], [1], [0, 0, 1, 1], [], []>} : vector<8x128xbf16>, vector<128x32xbf16>, vector<8x32xf32> -> vector<8x32xf32>
    %c0_5 = arith.constant 0 : index
    %c0_6 = arith.constant 0 : index
    %9 = vector.load %arg4[%c0_5, %c0_6] : memref<128x32xbf16, #tpu.memory_space<vmem>>, vector<128x32xbf16>
    %cst_7 = arith.constant dense<0.000000e+00> : vector<8x32xf32>
    %10 = tpu.matmul %0, %9, %cst_7 {dimension_numbers = #tpu.dot_dimension_numbers<[1], [0], [0], [1], [0, 0, 1, 1], [], []>} : vector<8x128xbf16>, vector<128x32xbf16>, vector<8x32xf32> -> vector<8x32xf32>
    %11 = arith.addf %8, %10 : vector<8x32xf32>
    %c0_8 = arith.constant 0 : index
    %c0_9 = arith.constant 0 : index
    %12 = vector.load %arg5[%c0_8, %c0_9] : memref<128x32xbf16, #tpu.memory_space<vmem>>, vector<128x32xbf16>
    %cst_10 = arith.constant dense<0.000000e+00> : vector<8x32xf32>
    %13 = tpu.matmul %1, %12, %cst_10 {dimension_numbers = #tpu.dot_dimension_numbers<[1], [0], [0], [1], [0, 0, 1, 1], [], []>} : vector<8x128xbf16>, vector<128x32xbf16>, vector<8x32xf32> -> vector<8x32xf32>
    %14 = arith.addf %11, %13 : vector<8x32xf32>
    %c0_11 = arith.constant 0 : index
    %c0_12 = arith.constant 0 : index
    %15 = vector.load %arg6[%c0_11, %c0_12] : memref<1x32xf32, #tpu.memory_space<vmem>>, vector<1x32xf32>
    %16 = vector.broadcast %15 : vector<1x32xf32> to vector<8x32xf32>
    %17 = arith.addf %14, %16 : vector<8x32xf32>
    %cst_13 = arith.constant 0.000000e+00 : f32
    %18 = vector.broadcast %cst_13 : f32 to vector<8x32xf32>
    %19 = arith.maximumf %17, %18 : vector<8x32xf32>
    %20 = arith.truncf %19 : vector<8x32xf32> to vector<8x32xbf16>
    %c0_14 = arith.constant 0 : index
    %c0_15 = arith.constant 0 : index
    %21 = vector.load %arg7[%c0_14, %c0_15] : memref<8x32xbf16, #tpu.memory_space<vmem>>, vector<8x32xbf16>
    tpu.vector_store %arg7[%c0_14, %c0_15], %20 {strides = array<i32>} : memref<8x32xbf16, #tpu.memory_space<vmem>>, vector<8x32xbf16>,
    return
  }
  func.func @transform_0(%arg0: i32) -> (i32, i32) {
    %c0_i32 = arith.constant 0 : i32
    %0 = arith.addi %arg0, %c0_i32 : i32
    %c0_i32_0 = arith.constant 0 : i32
    %c0_i32_1 = arith.constant 0 : i32
    return %0, %c0_i32_0 : i32, i32
  }
  func.func @transform_1(%arg0: i32) -> (i32, i32) {
    %c1_i32 = arith.constant 1 : i32
    %0 = arith.addi %arg0, %c1_i32 : i32
    %c0_i32 = arith.constant 0 : i32
    %c0_i32_0 = arith.constant 0 : i32
    return %0, %c0_i32 : i32, i32
  }
  func.func @transform_2(%arg0: i32) -> (i32, i32) {
    %c0_i32 = arith.constant 0 : i32
    %c0_i32_0 = arith.constant 0 : i32
    %c0_i32_1 = arith.constant 0 : i32
    return %c0_i32, %c0_i32_0 : i32, i32
  }
  func.func @transform_3(%arg0: i32) -> (i32, i32) {
    %c0_i32 = arith.constant 0 : i32
    %c0_i32_0 = arith.constant 0 : i32
    %c0_i32_1 = arith.constant 0 : i32
    return %c0_i32, %c0_i32_0 : i32, i32
  }
  func.func @transform_4(%arg0: i32) -> (i32, i32) {
    %c0_i32 = arith.constant 0 : i32
    %c0_i32_0 = arith.constant 0 : i32
    %c0_i32_1 = arith.constant 0 : i32
    return %c0_i32, %c0_i32_0 : i32, i32
  }
  func.func @transform_5(%arg0: i32) -> (i32, i32) {
    %c0_i32 = arith.constant 0 : i32
    %c0_i32_0 = arith.constant 0 : i32
    %c0_i32_1 = arith.constant 0 : i32
    return %c0_i32, %c0_i32_0 : i32, i32
  }
  func.func @transform_6(%arg0: i32) -> (i32, i32) {
    %c0_i32 = arith.constant 0 : i32
    %c0_i32_0 = arith.constant 0 : i32
    return %arg0, %c0_i32 : i32, i32
  }
}

module attributes {stable_mosaic.version = 11 : i64} {
  func.func @_level_decoder_kernel(%arg0: i32, %arg1: memref<8x256xbf16, #tpu.memory_space<vmem>>, %arg2: memref<8x256xbf16, #tpu.memory_space<vmem>>, %arg3: memref<256x128xbf16, #tpu.memory_space<vmem>>, %arg4: memref<256x128xbf16, #tpu.memory_space<vmem>>, %arg5: memref<256x128xbf16, #tpu.memory_space<vmem>>, %arg6: memref<1x128xf32, #tpu.memory_space<vmem>>, %arg7: memref<8x128xbf16, #tpu.memory_space<vmem>>) attributes {dimension_semantics = [#tpu.dimension_semantics<parallel>], iteration_bounds = array<i64: 1>, scalar_prefetch = 0 : i64, scratch_operands = 0 : i64, tpu.core_type = #tpu.core_type<tc>, window_params = [{transform_indices = @transform_0, window_bounds = array<i64: 8, 256>}, {transform_indices = @transform_1, window_bounds = array<i64: 8, 256>}, {pipeline_mode = #tpu.pipeline_mode<synchronous>, transform_indices = @transform_2, window_bounds = array<i64: 256, 128>}, {pipeline_mode = #tpu.pipeline_mode<synchronous>, transform_indices = @transform_3, window_bounds = array<i64: 256, 128>}, {pipeline_mode = #tpu.pipeline_mode<synchronous>, transform_indices = @transform_4, window_bounds = array<i64: 256, 128>}, {pipeline_mode = #tpu.pipeline_mode<synchronous>, transform_indices = @transform_5, window_bounds = array<i64: 1, 128>}, {transform_indices = @transform_6, window_bounds = array<i64: 8, 128>}]} {
    %c0 = arith.constant 0 : index
    %c0_0 = arith.constant 0 : index
    %0 = vector.load %arg1[%c0, %c0_0] : memref<8x256xbf16, #tpu.memory_space<vmem>>, vector<8x256xbf16>
    %c0_1 = arith.constant 0 : index
    %c0_2 = arith.constant 0 : index
    %1 = vector.load %arg2[%c0_1, %c0_2] : memref<8x256xbf16, #tpu.memory_space<vmem>>, vector<8x256xbf16>
    %2 = arith.extf %0 : vector<8x256xbf16> to vector<8x256xf32>
    %3 = arith.extf %1 : vector<8x256xbf16> to vector<8x256xf32>
    %4 = arith.subf %2, %3 : vector<8x256xf32>
    %5 = math.absf %4 : vector<8x256xf32>
    %6 = arith.truncf %5 : vector<8x256xf32> to vector<8x256xbf16>
    %c0_3 = arith.constant 0 : index
    %c0_4 = arith.constant 0 : index
    %7 = vector.load %arg3[%c0_3, %c0_4] : memref<256x128xbf16, #tpu.memory_space<vmem>>, vector<256x128xbf16>
    %cst = arith.constant dense<0.000000e+00> : vector<8x128xf32>
    %8 = tpu.matmul %6, %7, %cst {dimension_numbers = #tpu.dot_dimension_numbers<[1], [0], [0], [1], [0, 0, 1, 1], [], []>} : vector<8x256xbf16>, vector<256x128xbf16>, vector<8x128xf32> -> vector<8x128xf32>
    %c0_5 = arith.constant 0 : index
    %c0_6 = arith.constant 0 : index
    %9 = vector.load %arg4[%c0_5, %c0_6] : memref<256x128xbf16, #tpu.memory_space<vmem>>, vector<256x128xbf16>
    %cst_7 = arith.constant dense<0.000000e+00> : vector<8x128xf32>
    %10 = tpu.matmul %0, %9, %cst_7 {dimension_numbers = #tpu.dot_dimension_numbers<[1], [0], [0], [1], [0, 0, 1, 1], [], []>} : vector<8x256xbf16>, vector<256x128xbf16>, vector<8x128xf32> -> vector<8x128xf32>
    %11 = arith.addf %8, %10 : vector<8x128xf32>
    %c0_8 = arith.constant 0 : index
    %c0_9 = arith.constant 0 : index
    %12 = vector.load %arg5[%c0_8, %c0_9] : memref<256x128xbf16, #tpu.memory_space<vmem>>, vector<256x128xbf16>
    %cst_10 = arith.constant dense<0.000000e+00> : vector<8x128xf32>
    %13 = tpu.matmul %1, %12, %cst_10 {dimension_numbers = #tpu.dot_dimension_numbers<[1], [0], [0], [1], [0, 0, 1, 1], [], []>} : vector<8x256xbf16>, vector<256x128xbf16>, vector<8x128xf32> -> vector<8x128xf32>
    %14 = arith.addf %11, %13 : vector<8x128xf32>
    %c0_11 = arith.constant 0 : index
    %c0_12 = arith.constant 0 : index
    %15 = vector.load %arg6[%c0_11, %c0_12] : memref<1x128xf32, #tpu.memory_space<vmem>>, vector<1x128xf32>
    %16 = vector.broadcast %15 : vector<1x128xf32> to vector<8x128xf32>
    %17 = arith.addf %14, %16 : vector<8x128xf32>
    %cst_13 = arith.constant 0.000000e+00 : f32
    %18 = vector.broadcast %cst_13 : f32 to vector<8x128xf32>
    %19 = arith.maximumf %17, %18 : vector<8x128xf32>
    %20 = arith.truncf %19 : vector<8x128xf32> to vector<8x128xbf16>
    %c0_14 = arith.constant 0 : index
    %c0_15 = arith.constant 0 : index
    %21 = vector.load %arg7[%c0_14, %c0_15] : memref<8x128xbf16, #tpu.memory_space<vmem>>, vector<8x128xbf16>
    tpu.vector_store %arg7[%c0_14, %c0_15], %20 {strides = array<i32>} : memref<8x128xbf16, #tpu.memory_space<vmem>>, vector<8x128xbf16>,
    return
  }
  func.func @transform_0(%arg0: i32) -> (i32, i32) {
    %c0_i32 = arith.constant 0 : i32
    %0 = arith.addi %arg0, %c0_i32 : i32
    %c0_i32_0 = arith.constant 0 : i32
    %c0_i32_1 = arith.constant 0 : i32
    return %0, %c0_i32_0 : i32, i32
  }
  func.func @transform_1(%arg0: i32) -> (i32, i32) {
    %c1_i32 = arith.constant 1 : i32
    %0 = arith.addi %arg0, %c1_i32 : i32
    %c0_i32 = arith.constant 0 : i32
    %c0_i32_0 = arith.constant 0 : i32
    return %0, %c0_i32 : i32, i32
  }
  func.func @transform_2(%arg0: i32) -> (i32, i32) {
    %c0_i32 = arith.constant 0 : i32
    %c0_i32_0 = arith.constant 0 : i32
    %c0_i32_1 = arith.constant 0 : i32
    return %c0_i32, %c0_i32_0 : i32, i32
  }
  func.func @transform_3(%arg0: i32) -> (i32, i32) {
    %c0_i32 = arith.constant 0 : i32
    %c0_i32_0 = arith.constant 0 : i32
    %c0_i32_1 = arith.constant 0 : i32
    return %c0_i32, %c0_i32_0 : i32, i32
  }
  func.func @transform_4(%arg0: i32) -> (i32, i32) {
    %c0_i32 = arith.constant 0 : i32
    %c0_i32_0 = arith.constant 0 : i32
    %c0_i32_1 = arith.constant 0 : i32
    return %c0_i32, %c0_i32_0 : i32, i32
  }
  func.func @transform_5(%arg0: i32) -> (i32, i32) {
    %c0_i32 = arith.constant 0 : i32
    %c0_i32_0 = arith.constant 0 : i32
    %c0_i32_1 = arith.constant 0 : i32
    return %c0_i32, %c0_i32_0 : i32, i32
  }
  func.func @transform_6(%arg0: i32) -> (i32, i32) {
    %c0_i32 = arith.constant 0 : i32
    %c0_i32_0 = arith.constant 0 : i32
    return %arg0, %c0_i32 : i32, i32
  }
}

module attributes {stable_mosaic.version = 11 : i64} {
  func.func @_level_decoder_kernel(%arg0: i32, %arg1: memref<64x64xbf16, #tpu.memory_space<vmem>>, %arg2: memref<64x64xbf16, #tpu.memory_space<vmem>>, %arg3: memref<64x128xbf16, #tpu.memory_space<vmem>>, %arg4: memref<64x128xbf16, #tpu.memory_space<vmem>>, %arg5: memref<64x128xbf16, #tpu.memory_space<vmem>>, %arg6: memref<1x128xf32, #tpu.memory_space<vmem>>, %arg7: memref<64x128xbf16, #tpu.memory_space<vmem>>) attributes {dimension_semantics = [#tpu.dimension_semantics<parallel>], iteration_bounds = array<i64: 2>, scalar_prefetch = 0 : i64, scratch_operands = 0 : i64, tpu.core_type = #tpu.core_type<tc>, window_params = [{transform_indices = @transform_0, window_bounds = array<i64: 64, 64>}, {transform_indices = @transform_1, window_bounds = array<i64: 64, 64>}, {pipeline_mode = #tpu.pipeline_mode<synchronous>, transform_indices = @transform_2, window_bounds = array<i64: 64, 128>}, {pipeline_mode = #tpu.pipeline_mode<synchronous>, transform_indices = @transform_3, window_bounds = array<i64: 64, 128>}, {pipeline_mode = #tpu.pipeline_mode<synchronous>, transform_indices = @transform_4, window_bounds = array<i64: 64, 128>}, {pipeline_mode = #tpu.pipeline_mode<synchronous>, transform_indices = @transform_5, window_bounds = array<i64: 1, 128>}, {transform_indices = @transform_6, window_bounds = array<i64: 64, 128>}]} {
    %c0 = arith.constant 0 : index
    %c0_0 = arith.constant 0 : index
    %0 = vector.load %arg1[%c0, %c0_0] : memref<64x64xbf16, #tpu.memory_space<vmem>>, vector<64x64xbf16>
    %c0_1 = arith.constant 0 : index
    %c0_2 = arith.constant 0 : index
    %1 = vector.load %arg2[%c0_1, %c0_2] : memref<64x64xbf16, #tpu.memory_space<vmem>>, vector<64x64xbf16>
    %2 = arith.extf %0 : vector<64x64xbf16> to vector<64x64xf32>
    %3 = arith.extf %1 : vector<64x64xbf16> to vector<64x64xf32>
    %4 = arith.subf %2, %3 : vector<64x64xf32>
    %5 = math.absf %4 : vector<64x64xf32>
    %6 = arith.truncf %5 : vector<64x64xf32> to vector<64x64xbf16>
    %c0_3 = arith.constant 0 : index
    %c0_4 = arith.constant 0 : index
    %7 = vector.load %arg3[%c0_3, %c0_4] : memref<64x128xbf16, #tpu.memory_space<vmem>>, vector<64x128xbf16>
    %cst = arith.constant dense<0.000000e+00> : vector<64x128xf32>
    %8 = tpu.matmul %6, %7, %cst {dimension_numbers = #tpu.dot_dimension_numbers<[1], [0], [0], [1], [0, 0, 1, 1], [], []>} : vector<64x64xbf16>, vector<64x128xbf16>, vector<64x128xf32> -> vector<64x128xf32>
    %c0_5 = arith.constant 0 : index
    %c0_6 = arith.constant 0 : index
    %9 = vector.load %arg4[%c0_5, %c0_6] : memref<64x128xbf16, #tpu.memory_space<vmem>>, vector<64x128xbf16>
    %cst_7 = arith.constant dense<0.000000e+00> : vector<64x128xf32>
    %10 = tpu.matmul %0, %9, %cst_7 {dimension_numbers = #tpu.dot_dimension_numbers<[1], [0], [0], [1], [0, 0, 1, 1], [], []>} : vector<64x64xbf16>, vector<64x128xbf16>, vector<64x128xf32> -> vector<64x128xf32>
    %11 = arith.addf %8, %10 : vector<64x128xf32>
    %c0_8 = arith.constant 0 : index
    %c0_9 = arith.constant 0 : index
    %12 = vector.load %arg5[%c0_8, %c0_9] : memref<64x128xbf16, #tpu.memory_space<vmem>>, vector<64x128xbf16>
    %cst_10 = arith.constant dense<0.000000e+00> : vector<64x128xf32>
    %13 = tpu.matmul %1, %12, %cst_10 {dimension_numbers = #tpu.dot_dimension_numbers<[1], [0], [0], [1], [0, 0, 1, 1], [], []>} : vector<64x64xbf16>, vector<64x128xbf16>, vector<64x128xf32> -> vector<64x128xf32>
    %14 = arith.addf %11, %13 : vector<64x128xf32>
    %c0_11 = arith.constant 0 : index
    %c0_12 = arith.constant 0 : index
    %15 = vector.load %arg6[%c0_11, %c0_12] : memref<1x128xf32, #tpu.memory_space<vmem>>, vector<1x128xf32>
    %16 = vector.broadcast %15 : vector<1x128xf32> to vector<64x128xf32>
    %17 = arith.addf %14, %16 : vector<64x128xf32>
    %cst_13 = arith.constant 0.000000e+00 : f32
    %18 = vector.broadcast %cst_13 : f32 to vector<64x128xf32>
    %19 = arith.maximumf %17, %18 : vector<64x128xf32>
    %20 = arith.truncf %19 : vector<64x128xf32> to vector<64x128xbf16>
    %c0_14 = arith.constant 0 : index
    %c0_15 = arith.constant 0 : index
    %21 = vector.load %arg7[%c0_14, %c0_15] : memref<64x128xbf16, #tpu.memory_space<vmem>>, vector<64x128xbf16>
    tpu.vector_store %arg7[%c0_14, %c0_15], %20 {strides = array<i32>} : memref<64x128xbf16, #tpu.memory_space<vmem>>, vector<64x128xbf16>,
    return
  }
  func.func @transform_0(%arg0: i32) -> (i32, i32) {
    %c0_i32 = arith.constant 0 : i32
    %0 = arith.addi %arg0, %c0_i32 : i32
    %c0_i32_0 = arith.constant 0 : i32
    %c0_i32_1 = arith.constant 0 : i32
    return %0, %c0_i32_0 : i32, i32
  }
  func.func @transform_1(%arg0: i32) -> (i32, i32) {
    %c2_i32 = arith.constant 2 : i32
    %0 = arith.addi %arg0, %c2_i32 : i32
    %c0_i32 = arith.constant 0 : i32
    %c0_i32_0 = arith.constant 0 : i32
    return %0, %c0_i32 : i32, i32
  }
  func.func @transform_2(%arg0: i32) -> (i32, i32) {
    %c0_i32 = arith.constant 0 : i32
    %c0_i32_0 = arith.constant 0 : i32
    %c0_i32_1 = arith.constant 0 : i32
    return %c0_i32, %c0_i32_0 : i32, i32
  }
  func.func @transform_3(%arg0: i32) -> (i32, i32) {
    %c0_i32 = arith.constant 0 : i32
    %c0_i32_0 = arith.constant 0 : i32
    %c0_i32_1 = arith.constant 0 : i32
    return %c0_i32, %c0_i32_0 : i32, i32
  }
  func.func @transform_4(%arg0: i32) -> (i32, i32) {
    %c0_i32 = arith.constant 0 : i32
    %c0_i32_0 = arith.constant 0 : i32
    %c0_i32_1 = arith.constant 0 : i32
    return %c0_i32, %c0_i32_0 : i32, i32
  }
  func.func @transform_5(%arg0: i32) -> (i32, i32) {
    %c0_i32 = arith.constant 0 : i32
    %c0_i32_0 = arith.constant 0 : i32
    %c0_i32_1 = arith.constant 0 : i32
    return %c0_i32, %c0_i32_0 : i32, i32
  }
  func.func @transform_6(%arg0: i32) -> (i32, i32) {
    %c0_i32 = arith.constant 0 : i32
    %c0_i32_0 = arith.constant 0 : i32
    return %arg0, %c0_i32 : i32, i32
  }
}

module attributes {stable_mosaic.version = 11 : i64} {
  func.func @_level_decoder_kernel(%arg0: i32, %arg1: memref<16x128xbf16, #tpu.memory_space<vmem>>, %arg2: memref<16x128xbf16, #tpu.memory_space<vmem>>, %arg3: memref<128x128xbf16, #tpu.memory_space<vmem>>, %arg4: memref<128x128xbf16, #tpu.memory_space<vmem>>, %arg5: memref<128x128xbf16, #tpu.memory_space<vmem>>, %arg6: memref<1x128xf32, #tpu.memory_space<vmem>>, %arg7: memref<16x128xbf16, #tpu.memory_space<vmem>>) attributes {dimension_semantics = [#tpu.dimension_semantics<parallel>], iteration_bounds = array<i64: 2>, scalar_prefetch = 0 : i64, scratch_operands = 0 : i64, tpu.core_type = #tpu.core_type<tc>, window_params = [{transform_indices = @transform_0, window_bounds = array<i64: 16, 128>}, {transform_indices = @transform_1, window_bounds = array<i64: 16, 128>}, {pipeline_mode = #tpu.pipeline_mode<synchronous>, transform_indices = @transform_2, window_bounds = array<i64: 128, 128>}, {pipeline_mode = #tpu.pipeline_mode<synchronous>, transform_indices = @transform_3, window_bounds = array<i64: 128, 128>}, {pipeline_mode = #tpu.pipeline_mode<synchronous>, transform_indices = @transform_4, window_bounds = array<i64: 128, 128>}, {pipeline_mode = #tpu.pipeline_mode<synchronous>, transform_indices = @transform_5, window_bounds = array<i64: 1, 128>}, {transform_indices = @transform_6, window_bounds = array<i64: 16, 128>}]} {
    %c0 = arith.constant 0 : index
    %c0_0 = arith.constant 0 : index
    %0 = vector.load %arg1[%c0, %c0_0] : memref<16x128xbf16, #tpu.memory_space<vmem>>, vector<16x128xbf16>
    %c0_1 = arith.constant 0 : index
    %c0_2 = arith.constant 0 : index
    %1 = vector.load %arg2[%c0_1, %c0_2] : memref<16x128xbf16, #tpu.memory_space<vmem>>, vector<16x128xbf16>
    %2 = arith.extf %0 : vector<16x128xbf16> to vector<16x128xf32>
    %3 = arith.extf %1 : vector<16x128xbf16> to vector<16x128xf32>
    %4 = arith.subf %2, %3 : vector<16x128xf32>
    %5 = math.absf %4 : vector<16x128xf32>
    %6 = arith.truncf %5 : vector<16x128xf32> to vector<16x128xbf16>
    %c0_3 = arith.constant 0 : index
    %c0_4 = arith.constant 0 : index
    %7 = vector.load %arg3[%c0_3, %c0_4] : memref<128x128xbf16, #tpu.memory_space<vmem>>, vector<128x128xbf16>
    %cst = arith.constant dense<0.000000e+00> : vector<16x128xf32>
    %8 = tpu.matmul %6, %7, %cst {dimension_numbers = #tpu.dot_dimension_numbers<[1], [0], [0], [1], [0, 0, 1, 1], [], []>} : vector<16x128xbf16>, vector<128x128xbf16>, vector<16x128xf32> -> vector<16x128xf32>
    %c0_5 = arith.constant 0 : index
    %c0_6 = arith.constant 0 : index
    %9 = vector.load %arg4[%c0_5, %c0_6] : memref<128x128xbf16, #tpu.memory_space<vmem>>, vector<128x128xbf16>
    %cst_7 = arith.constant dense<0.000000e+00> : vector<16x128xf32>
    %10 = tpu.matmul %0, %9, %cst_7 {dimension_numbers = #tpu.dot_dimension_numbers<[1], [0], [0], [1], [0, 0, 1, 1], [], []>} : vector<16x128xbf16>, vector<128x128xbf16>, vector<16x128xf32> -> vector<16x128xf32>
    %11 = arith.addf %8, %10 : vector<16x128xf32>
    %c0_8 = arith.constant 0 : index
    %c0_9 = arith.constant 0 : index
    %12 = vector.load %arg5[%c0_8, %c0_9] : memref<128x128xbf16, #tpu.memory_space<vmem>>, vector<128x128xbf16>
    %cst_10 = arith.constant dense<0.000000e+00> : vector<16x128xf32>
    %13 = tpu.matmul %1, %12, %cst_10 {dimension_numbers = #tpu.dot_dimension_numbers<[1], [0], [0], [1], [0, 0, 1, 1], [], []>} : vector<16x128xbf16>, vector<128x128xbf16>, vector<16x128xf32> -> vector<16x128xf32>
    %14 = arith.addf %11, %13 : vector<16x128xf32>
    %c0_11 = arith.constant 0 : index
    %c0_12 = arith.constant 0 : index
    %15 = vector.load %arg6[%c0_11, %c0_12] : memref<1x128xf32, #tpu.memory_space<vmem>>, vector<1x128xf32>
    %16 = vector.broadcast %15 : vector<1x128xf32> to vector<16x128xf32>
    %17 = arith.addf %14, %16 : vector<16x128xf32>
    %cst_13 = arith.constant 0.000000e+00 : f32
    %18 = vector.broadcast %cst_13 : f32 to vector<16x128xf32>
    %19 = arith.maximumf %17, %18 : vector<16x128xf32>
    %20 = arith.truncf %19 : vector<16x128xf32> to vector<16x128xbf16>
    %c0_14 = arith.constant 0 : index
    %c0_15 = arith.constant 0 : index
    %21 = vector.load %arg7[%c0_14, %c0_15] : memref<16x128xbf16, #tpu.memory_space<vmem>>, vector<16x128xbf16>
    tpu.vector_store %arg7[%c0_14, %c0_15], %20 {strides = array<i32>} : memref<16x128xbf16, #tpu.memory_space<vmem>>, vector<16x128xbf16>,
    return
  }
  func.func @transform_0(%arg0: i32) -> (i32, i32) {
    %c0_i32 = arith.constant 0 : i32
    %0 = arith.addi %arg0, %c0_i32 : i32
    %c0_i32_0 = arith.constant 0 : i32
    %c0_i32_1 = arith.constant 0 : i32
    return %0, %c0_i32_0 : i32, i32
  }
  func.func @transform_1(%arg0: i32) -> (i32, i32) {
    %c2_i32 = arith.constant 2 : i32
    %0 = arith.addi %arg0, %c2_i32 : i32
    %c0_i32 = arith.constant 0 : i32
    %c0_i32_0 = arith.constant 0 : i32
    return %0, %c0_i32 : i32, i32
  }
  func.func @transform_2(%arg0: i32) -> (i32, i32) {
    %c0_i32 = arith.constant 0 : i32
    %c0_i32_0 = arith.constant 0 : i32
    %c0_i32_1 = arith.constant 0 : i32
    return %c0_i32, %c0_i32_0 : i32, i32
  }
  func.func @transform_3(%arg0: i32) -> (i32, i32) {
    %c0_i32 = arith.constant 0 : i32
    %c0_i32_0 = arith.constant 0 : i32
    %c0_i32_1 = arith.constant 0 : i32
    return %c0_i32, %c0_i32_0 : i32, i32
  }
  func.func @transform_4(%arg0: i32) -> (i32, i32) {
    %c0_i32 = arith.constant 0 : i32
    %c0_i32_0 = arith.constant 0 : i32
    %c0_i32_1 = arith.constant 0 : i32
    return %c0_i32, %c0_i32_0 : i32, i32
  }
  func.func @transform_5(%arg0: i32) -> (i32, i32) {
    %c0_i32 = arith.constant 0 : i32
    %c0_i32_0 = arith.constant 0 : i32
    %c0_i32_1 = arith.constant 0 : i32
    return %c0_i32, %c0_i32_0 : i32, i32
  }
  func.func @transform_6(%arg0: i32) -> (i32, i32) {
    %c0_i32 = arith.constant 0 : i32
    %c0_i32_0 = arith.constant 0 : i32
    return %arg0, %c0_i32 : i32, i32
  }
}

module attributes {stable_mosaic.version = 11 : i64} {
  func.func @_tail_kernel(%arg0: i32, %arg1: memref<256x32xf32, #tpu.memory_space<vmem>>, %arg2: memref<32x32xbf16, #tpu.memory_space<vmem>>, %arg3: memref<1x32xf32, #tpu.memory_space<vmem>>, %arg4: memref<32x32xbf16, #tpu.memory_space<vmem>>, %arg5: memref<1x32xf32, #tpu.memory_space<vmem>>, %arg6: memref<32x128xbf16, #tpu.memory_space<vmem>>, %arg7: memref<1x128xf32, #tpu.memory_space<vmem>>, %arg8: memref<256x128xbf16, #tpu.memory_space<vmem>>) attributes {dimension_semantics = [#tpu.dimension_semantics<parallel>], iteration_bounds = array<i64: 2>, scalar_prefetch = 0 : i64, scratch_operands = 0 : i64, tpu.core_type = #tpu.core_type<tc>, window_params = [{transform_indices = @transform_0, window_bounds = array<i64: 256, 32>}, {pipeline_mode = #tpu.pipeline_mode<synchronous>, transform_indices = @transform_1, window_bounds = array<i64: 32, 32>}, {pipeline_mode = #tpu.pipeline_mode<synchronous>, transform_indices = @transform_2, window_bounds = array<i64: 1, 32>}, {pipeline_mode = #tpu.pipeline_mode<synchronous>, transform_indices = @transform_3, window_bounds = array<i64: 32, 32>}, {pipeline_mode = #tpu.pipeline_mode<synchronous>, transform_indices = @transform_4, window_bounds = array<i64: 1, 32>}, {pipeline_mode = #tpu.pipeline_mode<synchronous>, transform_indices = @transform_5, window_bounds = array<i64: 32, 128>}, {pipeline_mode = #tpu.pipeline_mode<synchronous>, transform_indices = @transform_6, window_bounds = array<i64: 1, 128>}, {transform_indices = @transform_7, window_bounds = array<i64: 256, 128>}]} {
    %c0 = arith.constant 0 : index
    %c0_0 = arith.constant 0 : index
    %0 = vector.load %arg1[%c0, %c0_0] : memref<256x32xf32, #tpu.memory_space<vmem>>, vector<256x32xf32>
    %1 = arith.truncf %0 : vector<256x32xf32> to vector<256x32xbf16>
    %c0_1 = arith.constant 0 : index
    %c0_2 = arith.constant 0 : index
    %2 = vector.load %arg2[%c0_1, %c0_2] : memref<32x32xbf16, #tpu.memory_space<vmem>>, vector<32x32xbf16>
    %cst = arith.constant dense<0.000000e+00> : vector<256x32xf32>
    %3 = tpu.matmul %1, %2, %cst {dimension_numbers = #tpu.dot_dimension_numbers<[1], [0], [0], [1], [0, 0, 1, 1], [], []>} : vector<256x32xbf16>, vector<32x32xbf16>, vector<256x32xf32> -> vector<256x32xf32>
    %c0_3 = arith.constant 0 : index
    %c0_4 = arith.constant 0 : index
    %4 = vector.load %arg3[%c0_3, %c0_4] : memref<1x32xf32, #tpu.memory_space<vmem>>, vector<1x32xf32>
    %5 = vector.broadcast %4 : vector<1x32xf32> to vector<256x32xf32>
    %6 = arith.addf %3, %5 : vector<256x32xf32>
    %cst_5 = arith.constant 0.000000e+00 : f32
    %7 = vector.broadcast %cst_5 : f32 to vector<256x32xf32>
    %8 = arith.maximumf %6, %7 : vector<256x32xf32>
    %9 = arith.truncf %8 : vector<256x32xf32> to vector<256x32xbf16>
    %c0_6 = arith.constant 0 : index
    %c0_7 = arith.constant 0 : index
    %10 = vector.load %arg4[%c0_6, %c0_7] : memref<32x32xbf16, #tpu.memory_space<vmem>>, vector<32x32xbf16>
    %cst_8 = arith.constant dense<0.000000e+00> : vector<256x32xf32>
    %11 = tpu.matmul %9, %10, %cst_8 {dimension_numbers = #tpu.dot_dimension_numbers<[1], [0], [0], [1], [0, 0, 1, 1], [], []>} : vector<256x32xbf16>, vector<32x32xbf16>, vector<256x32xf32> -> vector<256x32xf32>
    %c0_9 = arith.constant 0 : index
    %c0_10 = arith.constant 0 : index
    %12 = vector.load %arg5[%c0_9, %c0_10] : memref<1x32xf32, #tpu.memory_space<vmem>>, vector<1x32xf32>
    %13 = vector.broadcast %12 : vector<1x32xf32> to vector<256x32xf32>
    %14 = arith.addf %11, %13 : vector<256x32xf32>
    %15 = arith.negf %14 : vector<256x32xf32>
    %16 = math.exp %15 : vector<256x32xf32>
    %cst_11 = arith.constant 1.000000e+00 : f32
    %17 = vector.broadcast %cst_11 : f32 to vector<256x32xf32>
    %18 = arith.addf %17, %16 : vector<256x32xf32>
    %19 = arith.divf %17, %18 : vector<256x32xf32>
    %20 = tpu.iota {dimensions = array<i32: 1>} : vector<256x32xi32>
    %c16_i32 = arith.constant 16 : i32
    %21 = vector.broadcast %c16_i32 : i32 to vector<256x32xi32>
    %22 = arith.cmpi sge, %20, %21 : vector<256x32xi32>
    %cst_12 = arith.constant 0.000000e+00 : f32
    %23 = vector.broadcast %cst_12 : f32 to vector<256x32xf32>
    %24 = arith.select %22, %19, %23 : vector<256x32xi1>, vector<256x32xf32>
    %cst_13 = arith.constant 1.000000e+00 : f32
    %25 = vector.broadcast %cst_13 : f32 to vector<256x32xf32>
    %26 = arith.addf %25, %24 : vector<256x32xf32>
    %27 = arith.mulf %8, %26 : vector<256x32xf32>
    %28 = arith.truncf %27 : vector<256x32xf32> to vector<256x32xbf16>
    %c0_14 = arith.constant 0 : index
    %c0_15 = arith.constant 0 : index
    %29 = vector.load %arg6[%c0_14, %c0_15] : memref<32x128xbf16, #tpu.memory_space<vmem>>, vector<32x128xbf16>
    %cst_16 = arith.constant dense<0.000000e+00> : vector<256x128xf32>
    %30 = tpu.matmul %28, %29, %cst_16 {dimension_numbers = #tpu.dot_dimension_numbers<[1], [0], [0], [1], [0, 0, 1, 1], [], []>} : vector<256x32xbf16>, vector<32x128xbf16>, vector<256x128xf32> -> vector<256x128xf32>
    %c0_17 = arith.constant 0 : index
    %c0_18 = arith.constant 0 : index
    %31 = vector.load %arg7[%c0_17, %c0_18] : memref<1x128xf32, #tpu.memory_space<vmem>>, vector<1x128xf32>
    %32 = vector.broadcast %31 : vector<1x128xf32> to vector<256x128xf32>
    %33 = arith.addf %30, %32 : vector<256x128xf32>
    %34 = arith.truncf %33 : vector<256x128xf32> to vector<256x128xbf16>
    %c0_19 = arith.constant 0 : index
    %c0_20 = arith.constant 0 : index
    %35 = vector.load %arg8[%c0_19, %c0_20] : memref<256x128xbf16, #tpu.memory_space<vmem>>, vector<256x128xbf16>
    tpu.vector_store %arg8[%c0_19, %c0_20], %34 {strides = array<i32>} : memref<256x128xbf16, #tpu.memory_space<vmem>>, vector<256x128xbf16>,
    return
  }
  func.func @transform_0(%arg0: i32) -> (i32, i32) {
    %c0_i32 = arith.constant 0 : i32
    %0 = arith.addi %arg0, %c0_i32 : i32
    %c0_i32_0 = arith.constant 0 : i32
    %c0_i32_1 = arith.constant 0 : i32
    return %0, %c0_i32_0 : i32, i32
  }
  func.func @transform_1(%arg0: i32) -> (i32, i32) {
    %c0_i32 = arith.constant 0 : i32
    %c0_i32_0 = arith.constant 0 : i32
    %c0_i32_1 = arith.constant 0 : i32
    return %c0_i32, %c0_i32_0 : i32, i32
  }
  func.func @transform_2(%arg0: i32) -> (i32, i32) {
    %c0_i32 = arith.constant 0 : i32
    %c0_i32_0 = arith.constant 0 : i32
    %c0_i32_1 = arith.constant 0 : i32
    return %c0_i32, %c0_i32_0 : i32, i32
  }
  func.func @transform_3(%arg0: i32) -> (i32, i32) {
    %c0_i32 = arith.constant 0 : i32
    %c0_i32_0 = arith.constant 0 : i32
    %c0_i32_1 = arith.constant 0 : i32
    return %c0_i32, %c0_i32_0 : i32, i32
  }
  func.func @transform_4(%arg0: i32) -> (i32, i32) {
    %c0_i32 = arith.constant 0 : i32
    %c0_i32_0 = arith.constant 0 : i32
    %c0_i32_1 = arith.constant 0 : i32
    return %c0_i32, %c0_i32_0 : i32, i32
  }
  func.func @transform_5(%arg0: i32) -> (i32, i32) {
    %c0_i32 = arith.constant 0 : i32
    %c0_i32_0 = arith.constant 0 : i32
    %c0_i32_1 = arith.constant 0 : i32
    return %c0_i32, %c0_i32_0 : i32, i32
  }
  func.func @transform_6(%arg0: i32) -> (i32, i32) {
    %c0_i32 = arith.constant 0 : i32
    %c0_i32_0 = arith.constant 0 : i32
    %c0_i32_1 = arith.constant 0 : i32
    return %c0_i32, %c0_i32_0 : i32, i32
  }
  func.func @transform_7(%arg0: i32) -> (i32, i32) {
    %c0_i32 = arith.constant 0 : i32
    %c0_i32_0 = arith.constant 0 : i32
    return %arg0, %c0_i32 : i32, i32
  }
}

</mosaic_0001>

<bundles_post_ra>
// kernel: change_detection_forward.14
= control target key start
LH: loop header
LB: loop body
LE: loop exit
PB: predicated region body
PF: predicated region fallthrough
CT: control target
= control target key end

     0   :  { %s880_s12 = smov 0   ;;  %s1008_s0 = inlined_call_operand.vmem [shape: bf16[128,384], index: 0, kind: input, shape index: {}]   ;;  %s1009_s1 = inlined_call_operand.vmem [shape: bf16[384,128], index: 1, kind: input, shape index: {}]   ;;  %s1010_s2 = inlined_call_operand.vmem [shape: f32[1,128], index: 2, kind: input, shape index: {}]   ;;  %s1011_s3 = inlined_call_operand.vmem [shape: bf16[128,128], index: 3, kind: output, shape index: {}]  }
   0x1 LB: > { %s620_s13 = sadd.s32 4294967295, %s858_s12   ;;  %p624_p0 = scmp.ge.s32.totalorder %s858_s12, 1  ;;  %s858_s12 = sphi %s880_s12, %s13_s12  }
   0x2   : > { %p139_p1 = scmp.lt.s32.totalorder %s858_s12, 3 }
   0x4   : > { %p140_p2 = pnand %p624_p0, %p139_p1 }
   0x5   : > { %s625_s5 = sshll.u32 (!%p140_p2), %s620_s13, 3 }
   0x6   : > { %143 = sbr.rel (%p140_p2) target bundleno = 240 (0xf0), region = 32  ;;  %p165_p3 = scmp.lt.s32.totalorder (!%p140_p2), %s625_s5, 15 }
   0xb   : > { %v794_v0 = vld [vmem:[%s1009_s1 + $0x38] sm:$0xff]  ;;  %v793_v3 = vld [vmem:[%s1009_s1 + $0x30] sm:$0xff]  ;;  %v792_v6 = vld [vmem:[%s1009_s1 + $0x28] sm:$0xff]  ;;  %s1013_s5 = smov (!%p165_p3, %s625_s5), 15 }
   0xc   : > { %v802_v1 = vld [vmem:[%s1009_s1 + $0x78] sm:$0xff]  ;;  %453 = vmatpush.bf16.msra.mxu0 %v794_v0  ;;  %v801_v4 = vld [vmem:[%s1009_s1 + $0x70] sm:$0xff]  ;;  %834 = vmatpush.bf16.msra.mxu3 %v794_v0  ;;  %v800_v7 = vld [vmem:[%s1009_s1 + $0x68] sm:$0xff]  ;;  %s842_s23 = smul.u32 12, %s1013_s5  ;;  %s628_s18 = sshll.u32 %s1013_s5, 2 }
   0xd   : > { %v810_v2 = vld [vmem:[%s1009_s1 + $0xb8] sm:$0xff]  ;;  %482 = vmatpush.bf16.msra.mxu1 %v802_v1  ;;  %v809_v5 = vld [vmem:[%s1009_s1 + $0xb0] sm:$0xff]  ;;  %v808_v8 = vld [vmem:[%s1009_s1 + $0xa8] sm:$0xff]  ;;  %s999_s21 = scalar_lea.vmem %s1011_s3, %s628_s18 }
   0xe   : > { %511 = vmatpush.bf16.msra.mxu2 %v810_v2  ;;  %v791_v9 = vld [vmem:[%s1009_s1 + $0x20] sm:$0xff]  ;;  %v790_v12 = vld [vmem:[%s1009_s1 + $0x18] sm:$0xff]  ;;  %v789_v15 = vld [vmem:[%s1009_s1 + $0x10] sm:$0xff]  ;;  %s954_s6 = scalar_lea.vmem %s1008_s0, %s842_s23 }
   0xf   : > { %v799_v10 = vld [vmem:[%s1009_s1 + $0x60] sm:$0xff]  ;;  %v798_v13 = vld [vmem:[%s1009_s1 + $0x58] sm:$0xff]  ;;  %v797_v16 = vld [vmem:[%s1009_s1 + $0x50] sm:$0xff] }
  0x10   : > { %454 = vmatpush.bf16.msra.mxu0 %v793_v3  ;;  %835 = vmatpush.bf16.msra.mxu3 %v793_v3  ;;  %v807_v11 = vld [vmem:[%s1009_s1 + $0xa0] sm:$0xff]  ;;  %v806_v14 = vld [vmem:[%s1009_s1 + $0x98] sm:$0xff]  ;;  %v805_v17 = vld [vmem:[%s1009_s1 + $0x90] sm:$0xff] }
  0x11   : > { %483 = vmatpush.bf16.msra.mxu1 %v801_v4  ;;  %v788_v18 = vld [vmem:[%s1009_s1 + $0x8] sm:$0xff]  ;;  %v787_v21 = vld [vmem:[%s1009_s1] sm:$0xff]  ;;  %v633_v27 = vld [vmem:[%s954_s6 + $0xc] sm:$0xf0] }
  0x12   : > { %512 = vmatpush.bf16.msra.mxu2 %v809_v5  ;;  %v796_v19 = vld [vmem:[%s1009_s1 + $0x48] sm:$0xff]  ;;  %v795_v22 = vld [vmem:[%s1009_s1 + $0x40] sm:$0xff]  ;;  %v777_v29 = vld [vmem:[%s954_s6 + $0x10] sm:$0xf0] }
  0x13   : > { %v804_v20 = vld [vmem:[%s1009_s1 + $0x88] sm:$0xff]  ;;  %v803_v23 = vld [vmem:[%s1009_s1 + $0x80] sm:$0xff]  ;;  %v643_v30 = vld [vmem:[%s954_s6 + $0x18] sm:$0xf] }
  0x14   : > { %455 = vmatpush.bf16.msra.mxu0 %v792_v6  ;;  %836 = vmatpush.bf16.msra.mxu3 %v792_v6  ;;  %v631_v24 = vld [vmem:[%s954_s6] sm:$0xf]  ;;  %v776_v25 = vld [vmem:[%s954_s6 + $0x8] sm:$0xf0]  ;;  %v775_v26 = vld [vmem:[%s954_s6 + $0x4] sm:$0xf] }
  0x15   : > { %484 = vmatpush.bf16.msra.mxu1 %v800_v7  ;;  %v639_v28 = vld [vmem:[%s954_s6 + $0x8] sm:$0xf]  ;;  %v779_v31 = vld [vmem:[%s954_s6 + $0x20] sm:$0xf0]  ;;  %v632_v32 = vor.u32 %v776_v25, %v631_v24  ;;  %v636_v33 = vor.u32 %v775_v26, %v633_v27  ;;  %v778_v36 = vld [vmem:[%s954_s6 + $0x1c] sm:$0xf] }
  0x16   : > { %513 = vmatpush.bf16.msra.mxu2 %v808_v8  ;;  %v640_v34 = vor.u32 %v777_v29, %v639_v28  ;;  %v644_v35 = vor.u32 %v779_v31, %v643_v30  ;;  %v645_v37 = vld [vmem:[%s954_s6 + $0x24] sm:$0xf0]  ;;  %v651_v38 = vld [vmem:[%s954_s6 + $0x20] sm:$0xf]  ;;  %v780_v39 = vld [vmem:[%s954_s6 + $0x28] sm:$0xf0] }
  0x17   : > { %v655_v40 = vld [vmem:[%s954_s6 + $0x30] sm:$0xf]  ;;  %v782_v41 = vld [vmem:[%s954_s6 + $0x38] sm:$0xf0]  ;;  %v648_v42 = vor.u32 %v778_v36, %v645_v37  ;;  %v652_v43 = vor.u32 %v780_v39, %v651_v38  ;;  %v781_v45 = vld [vmem:[%s954_s6 + $0x34] sm:$0xf] }
  0x18   : > { %456 = vmatpush.bf16.msra.mxu0 %v791_v9  ;;  %837 = vmatpush.bf16.msra.mxu3 %v791_v9  ;;  %v656_v44 = vor.u32 %v782_v41, %v655_v40  ;;  %v657_v46 = vld [vmem:[%s954_s6 + $0x3c] sm:$0xf0]  ;;  %v663_v47 = vld [vmem:[%s954_s6 + $0x38] sm:$0xf]  ;;  %v783_v48 = vld [vmem:[%s954_s6 + $0x40] sm:$0xf0] }
  0x19   : > { %485 = vmatpush.bf16.msra.mxu1 %v799_v10  ;;  %v667_v49 = vld [vmem:[%s954_s6 + $0x48] sm:$0xf]  ;;  %v785_v50 = vld [vmem:[%s954_s6 + $0x50] sm:$0xf0]  ;;  %v660_v51 = vor.u32 %v781_v45, %v657_v46  ;;  %v664_v52 = vor.u32 %v783_v48, %v663_v47  ;;  %v784_v54 = vld [vmem:[%s954_s6 + $0x4c] sm:$0xf] }
  0x1a   : > { %514 = vmatpush.bf16.msra.mxu2 %v807_v11  ;;  %v668_v53 = vor.u32 %v785_v50, %v667_v49  ;;  %v669_v55 = vld [vmem:[%s954_s6 + $0x54] sm:$0xf0]  ;;  %v675_v56 = vld [vmem:[%s954_s6 + $0x50] sm:$0xf]  ;;  %v786_v57 = vld [vmem:[%s954_s6 + $0x58] sm:$0xf0] }
  0x1b   : > { %v672_v58 = vor.u32 %v784_v54, %v669_v55  ;;  %v676_v59 = vor.u32 %v786_v57, %v675_v56  ;;  %v851_v62 = vld [vmem:[%s1010_s2] ss:$0 sm:$0xff] }
  0x1c   : > { %457 = vmatpush.bf16.msra.mxu0 %v790_v12  ;;  %838 = vmatpush.bf16.msra.mxu3 %v790_v12 }
  0x1d   : > { %486 = vmatpush.bf16.msra.mxu1 %v798_v13 }
  0x1e   : > { %515 = vmatpush.bf16.msra.mxu2 %v806_v14 }
  0x20   : > { %458 = vmatpush.bf16.msra.mxu0 %v789_v15  ;;  %839 = vmatpush.bf16.msra.mxu3 %v789_v15 }
  0x21   : > { %487 = vmatpush.bf16.msra.mxu1 %v797_v16 }
  0x22   : > { %516 = vmatpush.bf16.msra.mxu2 %v805_v17 }
  0x24   : > { %459 = vmatpush.bf16.msra.mxu0 %v788_v18  ;;  %840 = vmatpush.bf16.msra.mxu3 %v788_v18 }
  0x25   : > { %488 = vmatpush.bf16.msra.mxu1 %v796_v19 }
  0x26   : > { %517 = vmatpush.bf16.msra.mxu2 %v804_v20 }
  0x28   : > { %460 = vmatpush.bf16.msra.mxu0 %v787_v21  ;;  %841 = vmatpush.bf16.msra.mxu3 %v787_v21 }
  0x29   : > { %489 = vmatpush.bf16.msra.mxu1 %v795_v22 }
  0x2a   : > { %518 = vmatpush.bf16.msra.mxu2 %v803_v23 }
  0x2b   : > { %461 = vmatmul.bf16.vlgmr.msra.gmra.mxu0 %v632_v32  ;;  %466 = vmatmul.bf16.vlgmr.msra.gmra.mxu3 %v644_v35 }
  0x2c   : > { %490 = vmatmul.bf16.vlgmr.msra.gmra.mxu1 %v636_v33 }
  0x2d   : > { %519 = vmatmul.bf16.vlgmr.msra.gmra.mxu2 %v640_v34 }
  0x3b   : > { %471 = vmatmul.bf16.gmra.mxu3 %v656_v44 }
  0x3c   : > { %495 = vmatmul.bf16.gmra.mxu1 %v648_v42 }
  0x3d   : > { %524 = vmatmul.bf16.gmra.mxu2 %v652_v43 }
  0x4b   : > { %476 = vmatmul.bf16.gmra.mxu3 %v668_v53 }
  0x4c   : > { %500 = vmatmul.bf16.gmra.mxu1 %v660_v51 }
  0x4d   : > { %529 = vmatmul.bf16.gmra.mxu2 %v664_v52 }
  0x5c   : > { %505 = vmatmul.bf16.gmra.mxu1 %v672_v58 }
  0x5d   : > { %534 = vmatmul.bf16.gmra.mxu2 %v676_v59 }
  0xa8   : > { %v462_v60 = vpop.f32.mrf.mxu0 }
  0xa9   : > { %v491_v61 = vpop.f32.mrf.mxu1  ;;  %v463_v63 = vadd.f32 %v851_v62, %v462_v60 }
  0xab   : > { %v492_v4 = vadd.f32 %v491_v61, %v463_v63 }
  0xae   : > { %v467_v1 = vpop.f32.mrf.mxu3 }
  0xaf   : > { %v468_v15 = vadd.f32 %v851_v62, %v467_v1 }
  0xb0   : > { %v520_v0 = vpop.f32.mrf.mxu2  ;;  %v464_v2 = vpop.f32.mrf.mxu0 }
  0xb1   : > { %v493_v3 = vpop.f32.mrf.mxu1  ;;  %v465_v5 = vadd.f32 %v851_v62, %v464_v2  ;;  %v521_v6 = vadd.f32 %v520_v0, %v492_v4 }
  0xb3   : > { %v494_v7 = vadd.f32 %v493_v3, %v465_v5  ;;  %v540_v12 = vmax.f32 %v521_v6, 0.0 }
  0xb6   : > { %v469_v11 = vpop.f32.mrf.mxu3 }
  0xb7   : > { %v470_v20 = vadd.f32 %v851_v62, %v469_v11 }
  0xb8   : > { %v522_v8 = vpop.f32.mrf.mxu2 }
  0xb9   : > { %v523_v9 = vadd.f32 %v522_v8, %v494_v7  ;;  %v496_v10 = vpop.f32.mrf.mxu1 }
  0xba   : > { %v497_v18 = vadd.f32 %v496_v10, %v468_v15 }
  0xbb   : > { %v541_v13 = vmax.f32 %v523_v9, 0.0 }
  0xbd   : > { %v814_v14 = vpack.c.bf16 %v541_v13, %v540_v12 }
  0xbe   : > { %v472_v19 = vpop.f32.mrf.mxu3 }
  0xbf   : > { %815 = vst [vmem:[%s999_s21] sm:$0xff] %v814_v14   ;;  %v473_v30 = vadd.f32 %v851_v62, %v472_v19 }
  0xc0   : > { %v525_v16 = vpop.f32.mrf.mxu2 }
  0xc1   : > { %v498_v17 = vpop.f32.mrf.mxu1  ;;  %v526_v21 = vadd.f32 %v525_v16, %v497_v18 }
  0xc2   : > { %v499_v22 = vadd.f32 %v498_v17, %v470_v20 }
  0xc3   : > { %v542_v26 = vmax.f32 %v526_v21, 0.0 }
  0xc6   : > { %v474_v29 = vpop.f32.mrf.mxu3 }
  0xc7   : > { %v475_v34 = vadd.f32 %v851_v62, %v474_v29 }
  0xc8   : > { %v527_v23 = vpop.f32.mrf.mxu2 }
  0xc9   : > { %v528_v24 = vadd.f32 %v527_v23, %v499_v22  ;;  %v501_v25 = vpop.f32.mrf.mxu1 }
  0xca   : > { %v502_v33 = vadd.f32 %v501_v25, %v473_v30 }
  0xcb   : > { %v543_v27 = vmax.f32 %v528_v24, 0.0 }
  0xcd   : > { %v819_v28 = vpack.c.bf16 %v543_v27, %v542_v26 }
  0xce   : > { %v477_v37 = vpop.f32.mrf.mxu3 }
  0xcf   : > { %831 = vst [vmem:[%s999_s21 + $0x8] sm:$0xff] %v819_v28   ;;  %v478_v44 = vadd.f32 %v851_v62, %v477_v37 }
  0xd0   : > { %v530_v31 = vpop.f32.mrf.mxu2 }
  0xd1   : > { %v503_v32 = vpop.f32.mrf.mxu1  ;;  %v531_v35 = vadd.f32 %v530_v31, %v502_v33 }
  0xd2   : > { %v504_v36 = vadd.f32 %v503_v32, %v475_v34 }
  0xd3   : > { %v544_v41 = vmax.f32 %v531_v35, 0.0 }
  0xd6   : > { %v479_v46 = vpop.f32.mrf.mxu3 }
  0xd7   : > { %v480_v49 = vadd.f32 %v851_v62, %v479_v46 }
  0xd8   : > { %v532_v38 = vpop.f32.mrf.mxu2 }
  0xd9   : > { %v533_v39 = vadd.f32 %v532_v38, %v504_v36  ;;  %v506_v40 = vpop.f32.mrf.mxu1 }
  0xda   : > { %v507_v47 = vadd.f32 %v506_v40, %v478_v44 }
  0xdb   : > { %v545_v42 = vmax.f32 %v533_v39, 0.0 }
  0xdd   : > { %v824_v43 = vpack.c.bf16 %v545_v42, %v544_v41 }
  0xdf   : > { %832 = vst [vmem:[%s999_s21 + $0x10] sm:$0xff] %v824_v43  }
  0xe0   : > { %v535_v45 = vpop.f32.mrf.mxu2 }
  0xe1   : > { %v508_v48 = vpop.f32.mrf.mxu1  ;;  %v536_v50 = vadd.f32 %v535_v45, %v507_v47 }
  0xe2   : > { %v509_v51 = vadd.f32 %v508_v48, %v480_v49 }
  0xe3   : > { %v546_v54 = vmax.f32 %v536_v50, 0.0 }
  0xe8   : > { %v537_v52 = vpop.f32.mrf.mxu2 }
  0xe9   : > { %v538_v53 = vadd.f32 %v537_v52, %v509_v51 }
  0xeb   : > { %v547_v55 = vmax.f32 %v538_v53, 0.0 }
  0xed   : > { %v829_v56 = vpack.c.bf16 %v547_v55, %v546_v54 }
  0xef   : > { %833 = vst [vmem:[%s999_s21 + $0x18] sm:$0xff] %v829_v56  }
  0xf0 PF: > { %s13_s12 = sadd.s32 1, %s858_s12  }
  0xf1   : > { %p10_p4 = scmp.ge.s32.totalorder %s13_s12, 4  }
  0xf3   :  { %12 = sbr.rel (!%p10_p4) target bundleno = 1 (0x1), region = 62 }

// kernel: change_detection_forward.15
= control target key start
LH: loop header
LB: loop body
LE: loop exit
PB: predicated region body
PF: predicated region fallthrough
CT: control target
= control target key end

     0   :  { %s616_s12 = smov 0   ;;  %s688_s0 = inlined_call_operand.vmem [shape: bf16[64,256], index: 0, kind: input, shape index: {}]   ;;  %s689_s1 = inlined_call_operand.vmem [shape: bf16[256,128], index: 1, kind: input, shape index: {}]   ;;  %s690_s2 = inlined_call_operand.vmem [shape: f32[1,128], index: 2, kind: input, shape index: {}]   ;;  %s691_s3 = inlined_call_operand.vmem [shape: bf16[64,128], index: 3, kind: output, shape index: {}]  }
   0x1 LB: > { %s439_s13 = sadd.s32 4294967295, %s594_s12   ;;  %p443_p0 = scmp.ge.s32.totalorder %s594_s12, 1  ;;  %s594_s12 = sphi %s616_s12, %s13_s12  }
   0x2   : > { %p139_p1 = scmp.lt.s32.totalorder %s594_s12, 3 }
   0x4   : > { %p140_p2 = pnand %p443_p0, %p139_p1 }
   0x5   : > { %s444_s26 = sshll.u32 (!%p140_p2), %s439_s13, 2 }
   0x6   : > { %143 = sbr.rel (%p140_p2) target bundleno = 192 (0xc0), region = 32  ;;  %p165_p3 = scmp.lt.s32.totalorder (!%p140_p2), %s444_s26, 7 }
   0xb   : > { %v543_v0 = vld [vmem:[%s689_s1 + $0x38] sm:$0xff]  ;;  %v542_v2 = vld [vmem:[%s689_s1 + $0x30] sm:$0xff]  ;;  %v541_v4 = vld [vmem:[%s689_s1 + $0x28] sm:$0xff]  ;;  %s693_s26 = smov (!%p165_p3, %s444_s26), 7 }
   0xc   : > { %v551_v1 = vld [vmem:[%s689_s1 + $0x78] sm:$0xff]  ;;  %333 = vmatpush.bf16.msra.mxu0 %v543_v0  ;;  %563 = vmatpush.bf16.msra.mxu2 %v543_v0  ;;  %v550_v3 = vld [vmem:[%s689_s1 + $0x70] sm:$0xff]  ;;  %v549_v5 = vld [vmem:[%s689_s1 + $0x68] sm:$0xff]  ;;  %s531_s13 = sshll.u32 %s693_s26, 3  ;;  %s448_s28 = sshll.u32 %s693_s26, 2 }
   0xd   : > { %352 = vmatpush.bf16.msra.mxu1 %v551_v1  ;;  %571 = vmatpush.bf16.msra.mxu3 %v551_v1  ;;  %v540_v6 = vld [vmem:[%s689_s1 + $0x20] sm:$0xff]  ;;  %v539_v8 = vld [vmem:[%s689_s1 + $0x18] sm:$0xff]  ;;  %v538_v10 = vld [vmem:[%s689_s1 + $0x10] sm:$0xff]  ;;  %s169_s18 = scalar_lea.vmem %s688_s0, %s531_s13  ;;  %s175_s4 = scalar_lea.vmem %s691_s3, %s448_s28 }
   0xe   : > { %v548_v7 = vld [vmem:[%s689_s1 + $0x60] sm:$0xff]  ;;  %v547_v9 = vld [vmem:[%s689_s1 + $0x58] sm:$0xff]  ;;  %v546_v11 = vld [vmem:[%s689_s1 + $0x50] sm:$0xff] }
   0xf   : > { %v537_v12 = vld [vmem:[%s689_s1 + $0x8] sm:$0xff]  ;;  %v536_v14 = vld [vmem:[%s689_s1] sm:$0xff]  ;;  %v459_v18 = vld [vmem:[%s169_s18 + $0x10] sm:$0xf] }
  0x10   : > { %334 = vmatpush.bf16.msra.mxu0 %v542_v2  ;;  %564 = vmatpush.bf16.msra.mxu2 %v542_v2  ;;  %v545_v13 = vld [vmem:[%s689_s1 + $0x48] sm:$0xff]  ;;  %v544_v15 = vld [vmem:[%s689_s1 + $0x40] sm:$0xff]  ;;  %v535_v19 = vld [vmem:[%s169_s18 + $0x14] sm:$0xf0] }
  0x11   : > { %353 = vmatpush.bf16.msra.mxu1 %v550_v3  ;;  %572 = vmatpush.bf16.msra.mxu3 %v550_v3  ;;  %v451_v16 = vld [vmem:[%s169_s18] sm:$0xf]  ;;  %v533_v17 = vld [vmem:[%s169_s18 + $0x4] sm:$0xf0]  ;;  %v532_v20 = vld [vmem:[%s169_s18 + $0x4] sm:$0xf]  ;;  %v460_v25 = vor.u32 %v535_v19, %v459_v18 }
  0x12   : > { %v453_v21 = vld [vmem:[%s169_s18 + $0x8] sm:$0xf0]  ;;  %v534_v22 = vld [vmem:[%s169_s18 + $0x14] sm:$0xf]  ;;  %v461_v23 = vld [vmem:[%s169_s18 + $0x18] sm:$0xf0]  ;;  %v452_v24 = vor.u32 %v533_v17, %v451_v16 }
  0x13   : > { %v456_v26 = vor.u32 %v532_v20, %v453_v21  ;;  %v464_v27 = vor.u32 %v534_v22, %v461_v23  ;;  %v587_v29 = vld [vmem:[%s690_s2] ss:$0 sm:$0xff] }
  0x14   : > { %335 = vmatpush.bf16.msra.mxu0 %v541_v4  ;;  %565 = vmatpush.bf16.msra.mxu2 %v541_v4 }
  0x15   : > { %354 = vmatpush.bf16.msra.mxu1 %v549_v5  ;;  %573 = vmatpush.bf16.msra.mxu3 %v549_v5 }
  0x18   : > { %336 = vmatpush.bf16.msra.mxu0 %v540_v6  ;;  %566 = vmatpush.bf16.msra.mxu2 %v540_v6 }
  0x19   : > { %355 = vmatpush.bf16.msra.mxu1 %v548_v7  ;;  %574 = vmatpush.bf16.msra.mxu3 %v548_v7 }
  0x1c   : > { %337 = vmatpush.bf16.msra.mxu0 %v539_v8  ;;  %567 = vmatpush.bf16.msra.mxu2 %v539_v8 }
  0x1d   : > { %356 = vmatpush.bf16.msra.mxu1 %v547_v9  ;;  %575 = vmatpush.bf16.msra.mxu3 %v547_v9 }
  0x20   : > { %338 = vmatpush.bf16.msra.mxu0 %v538_v10  ;;  %568 = vmatpush.bf16.msra.mxu2 %v538_v10 }
  0x21   : > { %357 = vmatpush.bf16.msra.mxu1 %v546_v11  ;;  %576 = vmatpush.bf16.msra.mxu3 %v546_v11 }
  0x24   : > { %339 = vmatpush.bf16.msra.mxu0 %v537_v12  ;;  %569 = vmatpush.bf16.msra.mxu2 %v537_v12 }
  0x25   : > { %358 = vmatpush.bf16.msra.mxu1 %v545_v13  ;;  %577 = vmatpush.bf16.msra.mxu3 %v545_v13 }
  0x28   : > { %340 = vmatpush.bf16.msra.mxu0 %v536_v14  ;;  %570 = vmatpush.bf16.msra.mxu2 %v536_v14 }
  0x29   : > { %359 = vmatpush.bf16.msra.mxu1 %v544_v15  ;;  %578 = vmatpush.bf16.msra.mxu3 %v544_v15 }
  0x2b   : > { %341 = vmatmul.bf16.vlgmr.msra.gmra.mxu0 %v452_v24  ;;  %346 = vmatmul.bf16.vlgmr.msra.gmra.mxu2 %v460_v25 }
  0x2c   : > { %360 = vmatmul.bf16.vlgmr.msra.gmra.mxu1 %v456_v26  ;;  %365 = vmatmul.bf16.vlgmr.msra.gmra.mxu3 %v464_v27 }
  0xa8   : > { %v342_v28 = vpop.f32.mrf.mxu0 }
  0xa9   : > { %v361_v30 = vpop.f32.mrf.mxu1  ;;  %v343_v31 = vadd.f32 %v587_v29, %v342_v28 }
  0xab   : > { %v362_v35 = vadd.f32 %v361_v30, %v343_v31 }
  0xad   : > { %v371_v40 = vmax.f32 %v362_v35, 0.0 }
  0xae   : > { %v347_v32 = vpop.f32.mrf.mxu2 }
  0xaf   : > { %v366_v33 = vpop.f32.mrf.mxu3  ;;  %v348_v38 = vadd.f32 %v587_v29, %v347_v32 }
  0xb0   : > { %v344_v34 = vpop.f32.mrf.mxu0 }
  0xb1   : > { %v345_v36 = vadd.f32 %v587_v29, %v344_v34  ;;  %v363_v37 = vpop.f32.mrf.mxu1  ;;  %v367_v43 = vadd.f32 %v366_v33, %v348_v38 }
  0xb3   : > { %v364_v39 = vadd.f32 %v363_v37, %v345_v36  ;;  %v373_v48 = vmax.f32 %v367_v43, 0.0 }
  0xb5   : > { %v372_v41 = vmax.f32 %v364_v39, 0.0 }
  0xb6   : > { %v349_v42 = vpop.f32.mrf.mxu2 }
  0xb7   : > { %v555_v44 = vpack.c.bf16 %v372_v41, %v371_v40  ;;  %v350_v45 = vadd.f32 %v587_v29, %v349_v42  ;;  %v368_v46 = vpop.f32.mrf.mxu3 }
  0xb9   : > { %556 = vst [vmem:[%s175_s4] sm:$0xff] %v555_v44   ;;  %v369_v47 = vadd.f32 %v368_v46, %v350_v45 }
  0xbb   : > { %v374_v49 = vmax.f32 %v369_v47, 0.0 }
  0xbd   : > { %v560_v50 = vpack.c.bf16 %v374_v49, %v373_v48 }
  0xbf   : > { %562 = vst [vmem:[%s175_s4 + $0x8] sm:$0xff] %v560_v50  }
  0xc0 PF: > { %s13_s12 = sadd.s32 1, %s594_s12  }
  0xc1   : > { %p10_p4 = scmp.ge.s32.totalorder %s13_s12, 4  }
  0xc3   :  { %12 = sbr.rel (!%p10_p4) target bundleno = 1 (0x1), region = 62 }

// kernel: change_detection_forward.16
= control target key start
LH: loop header
LB: loop body
LE: loop exit
PB: predicated region body
PF: predicated region fallthrough
CT: control target
= control target key end

     0   :  { %s556_s12 = smov 0   ;;  %s628_s0 = inlined_call_operand.vmem [shape: bf16[32,256], index: 0, kind: input, shape index: {}]   ;;  %s629_s1 = inlined_call_operand.vmem [shape: bf16[256,128], index: 1, kind: input, shape index: {}]   ;;  %s630_s2 = inlined_call_operand.vmem [shape: f32[1,128], index: 2, kind: input, shape index: {}]   ;;  %s631_s3 = inlined_call_operand.vmem [shape: bf16[32,128], index: 3, kind: output, shape index: {}]  }
   0x1 LB: > { %s411_s13 = sadd.s32 4294967295, %s534_s12   ;;  %p415_p0 = scmp.ge.s32.totalorder %s534_s12, 1  ;;  %s534_s12 = sphi %s556_s12, %s13_s12  }
   0x2   : > { %p139_p1 = scmp.lt.s32.totalorder %s534_s12, 3 }
   0x4   : > { %p140_p2 = pnand %p415_p0, %p139_p1 }
   0x5   : > { %s416_s26 = sshll.u32 (!%p140_p2), %s411_s13, 1 }
   0x6   : > { %143 = sbr.rel (%p140_p2) target bundleno = 186 (0xba), region = 32  ;;  %p165_p3 = scmp.lt.s32.totalorder (!%p140_p2), %s416_s26, 3 }
   0xb   : > { %v505_v0 = vld [vmem:[%s629_s1 + $0x38] sm:$0xff]  ;;  %v504_v2 = vld [vmem:[%s629_s1 + $0x30] sm:$0xff]  ;;  %v503_v4 = vld [vmem:[%s629_s1 + $0x28] sm:$0xff]  ;;  %s633_s26 = smov (!%p165_p3, %s416_s26), 3 }
   0xc   : > { %v513_v1 = vld [vmem:[%s629_s1 + $0x78] sm:$0xff]  ;;  %321 = vmatpush.bf16.msra.mxu0 %v505_v0  ;;  %v512_v3 = vld [vmem:[%s629_s1 + $0x70] sm:$0xff]  ;;  %v511_v5 = vld [vmem:[%s629_s1 + $0x68] sm:$0xff]  ;;  %s495_s13 = sshll.u32 %s633_s26, 3  ;;  %s420_s28 = sshll.u32 %s633_s26, 2 }
   0xd   : > { %335 = vmatpush.bf16.msra.mxu1 %v513_v1  ;;  %v502_v6 = vld [vmem:[%s629_s1 + $0x20] sm:$0xff]  ;;  %v501_v8 = vld [vmem:[%s629_s1 + $0x18] sm:$0xff]  ;;  %v500_v10 = vld [vmem:[%s629_s1 + $0x10] sm:$0xff]  ;;  %s169_s20 = scalar_lea.vmem %s628_s0, %s495_s13  ;;  %s175_s4 = scalar_lea.vmem %s631_s3, %s420_s28 }
   0xe   : > { %v510_v7 = vld [vmem:[%s629_s1 + $0x60] sm:$0xff]  ;;  %v509_v9 = vld [vmem:[%s629_s1 + $0x58] sm:$0xff]  ;;  %v508_v11 = vld [vmem:[%s629_s1 + $0x50] sm:$0xff] }
   0xf   : > { %v499_v12 = vld [vmem:[%s629_s1 + $0x8] sm:$0xff]  ;;  %v498_v14 = vld [vmem:[%s629_s1] sm:$0xff] }
  0x10   : > { %322 = vmatpush.bf16.msra.mxu0 %v504_v2  ;;  %v507_v13 = vld [vmem:[%s629_s1 + $0x48] sm:$0xff]  ;;  %v506_v15 = vld [vmem:[%s629_s1 + $0x40] sm:$0xff] }
  0x11   : > { %336 = vmatpush.bf16.msra.mxu1 %v512_v3  ;;  %v423_v16 = vld [vmem:[%s169_s20] sm:$0xf]  ;;  %v497_v17 = vld [vmem:[%s169_s20 + $0x4] sm:$0xf0]  ;;  %v496_v18 = vld [vmem:[%s169_s20 + $0x4] sm:$0xf] }
  0x12   : > { %v425_v19 = vld [vmem:[%s169_s20 + $0x8] sm:$0xf0]  ;;  %v424_v20 = vor.u32 %v497_v17, %v423_v16  ;;  %v527_v24 = vld [vmem:[%s630_s2] ss:$0 sm:$0xff] }
  0x13   : > { %v428_v21 = vor.u32 %v496_v18, %v425_v19 }
  0x14   : > { %323 = vmatpush.bf16.msra.mxu0 %v503_v4 }
  0x15   : > { %337 = vmatpush.bf16.msra.mxu1 %v511_v5 }
  0x18   : > { %324 = vmatpush.bf16.msra.mxu0 %v502_v6 }
  0x19   : > { %338 = vmatpush.bf16.msra.mxu1 %v510_v7 }
  0x1c   : > { %325 = vmatpush.bf16.msra.mxu0 %v501_v8 }
  0x1d   : > { %339 = vmatpush.bf16.msra.mxu1 %v509_v9 }
  0x20   : > { %326 = vmatpush.bf16.msra.mxu0 %v500_v10 }
  0x21   : > { %340 = vmatpush.bf16.msra.mxu1 %v508_v11 }
  0x24   : > { %327 = vmatpush.bf16.msra.mxu0 %v499_v12 }
  0x25   : > { %341 = vmatpush.bf16.msra.mxu1 %v507_v13 }
  0x28   : > { %328 = vmatpush.bf16.msra.mxu0 %v498_v14 }
  0x29   : > { %342 = vmatpush.bf16.msra.mxu1 %v506_v15 }
  0x2b   : > { %329 = vmatmul.bf16.vlgmr.msra.gmra.mxu0 %v424_v20 }
  0x2c   : > { %343 = vmatmul.bf16.vlgmr.msra.gmra.mxu1 %v428_v21 }
  0xa8   : > { %v330_v22 = vpop.f32.mrf.mxu0 }
  0xa9   : > { %v344_v23 = vpop.f32.mrf.mxu1  ;;  %v331_v25 = vadd.f32 %v527_v24, %v330_v22 }
  0xab   : > { %v345_v27 = vadd.f32 %v344_v23, %v331_v25 }
  0xad   : > { %v349_v31 = vmax.f32 %v345_v27, 0.0 }
  0xb0   : > { %v332_v26 = vpop.f32.mrf.mxu0 }
  0xb1   : > { %v333_v28 = vadd.f32 %v527_v24, %v332_v26  ;;  %v346_v29 = vpop.f32.mrf.mxu1 }
  0xb3   : > { %v347_v30 = vadd.f32 %v346_v29, %v333_v28 }
  0xb5   : > { %v350_v32 = vmax.f32 %v347_v30, 0.0 }
  0xb7   : > { %v517_v33 = vpack.c.bf16 %v350_v32, %v349_v31 }
  0xb9   : > { %518 = vst [vmem:[%s175_s4] sm:$0xff] %v517_v33  }
  0xba PF: > { %s13_s12 = sadd.s32 1, %s534_s12  }
  0xbb   : > { %p10_p4 = scmp.ge.s32.totalorder %s13_s12, 4  }
  0xbd   :  { %12 = sbr.rel (!%p10_p4) target bundleno = 1 (0x1), region = 62 }

// kernel: change_detection_forward.17
= control target key start
LH: loop header
LB: loop body
LE: loop exit
PB: predicated region body
PF: predicated region fallthrough
CT: control target
= control target key end

     0   :  { %s378_s1 = inlined_call_operand.vmem [shape: bf16[256,128], index: 1, kind: input, shape index: {}]   ;;  %s379_s2 = inlined_call_operand.vmem [shape: f32[1,128], index: 2, kind: input, shape index: {}]   ;;  %s380_s0 = inlined_call_operand.vmem [shape: bf16[16,256], index: 0, kind: input, shape index: {}]   ;;  %s381_s3 = inlined_call_operand.vmem [shape: bf16[16,128], index: 3, kind: output, shape index: {}]  }
   0x1   :  { %v277_v0 = vld [vmem:[%s378_s1 + $0x38] sm:$0xff]  ;;  %v276_v2 = vld [vmem:[%s378_s1 + $0x30] sm:$0xff]  ;;  %v275_v4 = vld [vmem:[%s378_s1 + $0x28] sm:$0xff] }
   0x2   :  { %v285_v1 = vld [vmem:[%s378_s1 + $0x78] sm:$0xff]  ;;  %158 = vmatpush.bf16.msra.mxu0 %v277_v0  ;;  %v284_v3 = vld [vmem:[%s378_s1 + $0x70] sm:$0xff]  ;;  %v283_v5 = vld [vmem:[%s378_s1 + $0x68] sm:$0xff] }
   0x3   :  { %172 = vmatpush.bf16.msra.mxu1 %v285_v1  ;;  %v274_v6 = vld [vmem:[%s378_s1 + $0x20] sm:$0xff]  ;;  %v273_v8 = vld [vmem:[%s378_s1 + $0x18] sm:$0xff]  ;;  %v272_v10 = vld [vmem:[%s378_s1 + $0x10] sm:$0xff] }
   0x4   :  { %v282_v7 = vld [vmem:[%s378_s1 + $0x60] sm:$0xff]  ;;  %v281_v9 = vld [vmem:[%s378_s1 + $0x58] sm:$0xff]  ;;  %v280_v11 = vld [vmem:[%s378_s1 + $0x50] sm:$0xff] }
   0x5   :  { %v271_v12 = vld [vmem:[%s378_s1 + $0x8] sm:$0xff]  ;;  %v270_v14 = vld [vmem:[%s378_s1] sm:$0xff] }
   0x6   :  { %159 = vmatpush.bf16.msra.mxu0 %v276_v2  ;;  %v279_v13 = vld [vmem:[%s378_s1 + $0x48] sm:$0xff]  ;;  %v278_v15 = vld [vmem:[%s378_s1 + $0x40] sm:$0xff] }
   0x7   :  { %173 = vmatpush.bf16.msra.mxu1 %v284_v3  ;;  %v198_v16 = vld [vmem:[%s380_s0] sm:$0xf]  ;;  %v269_v17 = vld [vmem:[%s380_s0 + $0x4] sm:$0xf0]  ;;  %v268_v18 = vld [vmem:[%s380_s0 + $0x4] sm:$0xf] }
   0x8   :  { %v200_v19 = vld [vmem:[%s380_s0 + $0x8] sm:$0xf0]  ;;  %v199_v20 = vor.u32 %v269_v17, %v198_v16  ;;  %v291_v24 = vld [vmem:[%s379_s2] ss:$0 sm:$0xff] }
   0x9   :  { %v203_v21 = vor.u32 %v268_v18, %v200_v19 }
   0xa   :  { %160 = vmatpush.bf16.msra.mxu0 %v275_v4 }
   0xb   :  { %174 = vmatpush.bf16.msra.mxu1 %v283_v5 }
   0xe   :  { %161 = vmatpush.bf16.msra.mxu0 %v274_v6 }
   0xf   :  { %175 = vmatpush.bf16.msra.mxu1 %v282_v7 }
  0x12   :  { %162 = vmatpush.bf16.msra.mxu0 %v273_v8 }
  0x13   :  { %176 = vmatpush.bf16.msra.mxu1 %v281_v9 }
  0x16   :  { %163 = vmatpush.bf16.msra.mxu0 %v272_v10 }
  0x17   :  { %177 = vmatpush.bf16.msra.mxu1 %v280_v11 }
  0x1a   :  { %164 = vmatpush.bf16.msra.mxu0 %v271_v12 }
  0x1b   :  { %178 = vmatpush.bf16.msra.mxu1 %v279_v13 }
  0x1e   :  { %165 = vmatpush.bf16.msra.mxu0 %v270_v14 }
  0x1f   :  { %179 = vmatpush.bf16.msra.mxu1 %v278_v15 }
  0x21   :  { %166 = vmatmul.bf16.vlgmr.msra.gmra.mxu0 %v199_v20 }
  0x22   :  { %180 = vmatmul.bf16.vlgmr.msra.gmra.mxu1 %v203_v21 }
  0x9e   :  { %v167_v22 = vpop.f32.mrf.mxu0 }
  0x9f   :  { %v181_v23 = vpop.f32.mrf.mxu1  ;;  %v168_v25 = vadd.f32 %v291_v24, %v167_v22 }
  0xa1   :  { %v182_v27 = vadd.f32 %v181_v23, %v168_v25 }
  0xa3   :  { %v186_v31 = vmax.f32 %v182_v27, 0.0 }
  0xa6   :  { %v169_v26 = vpop.f32.mrf.mxu0 }
  0xa7   :  { %v170_v28 = vadd.f32 %v291_v24, %v169_v26  ;;  %v183_v29 = vpop.f32.mrf.mxu1 }
  0xa9   :  { %v184_v30 = vadd.f32 %v183_v29, %v170_v28 }
  0xab   :  { %v187_v32 = vmax.f32 %v184_v30, 0.0 }
  0xad   :  { %v289_v33 = vpack.c.bf16 %v187_v32, %v186_v31 }
  0xaf   :  { %290 = vst [vmem:[%s381_s3] sm:$0xff] %v289_v33  }

// kernel: change_detection_forward.26
= control target key start
LH: loop header
LB: loop body
LE: loop exit
PB: predicated region body
PF: predicated region fallthrough
CT: control target
= control target key end

     0   :  { %vm286_vm0 = vcmask 257024   ;;  %s539_s3 = inlined_call_operand.vmem [shape: bf16[128,32], index: 3, kind: input, shape index: {}]   ;;  %s540_s2 = inlined_call_operand.vmem [shape: bf16[128,32], index: 2, kind: input, shape index: {}]   ;;  %s541_s4 = inlined_call_operand.vmem [shape: bf16[128,32], index: 4, kind: input, shape index: {}]   ;;  %s542_s0 = inlined_call_operand.vmem [shape: bf16[16,128], index: 0, kind: input, shape index: {}, may-alias: {0,1}]   ;;  %s543_s1 = inlined_call_operand.vmem [shape: bf16[16,128], index: 1, kind: input, shape index: {}, may-alias: {0,1}]   ;;  %s544_s5 = inlined_call_operand.vmem [shape: f32[1,32], index: 5, kind: input, shape index: {}]   ;;  %s545_s6 = inlined_call_operand.vmem [shape: bf16[8,32], index: 6, kind: output, shape index: {}]  }
   0x1   :  { %v410_v0 = vld [vmem:[%s539_s3 + $0x38] sm:$0xff]  ;;  %v409_v3 = vld [vmem:[%s539_s3 + $0x30] sm:$0xff]  ;;  %v408_v6 = vld [vmem:[%s539_s3 + $0x28] sm:$0xff] }
   0x2   :  { %v402_v1 = vld [vmem:[%s540_s2 + $0x38] sm:$0xff]  ;;  %127 = vmatpush.bf16.msra.mxu0 %v410_v0  ;;  %v401_v4 = vld [vmem:[%s540_s2 + $0x30] sm:$0xff]  ;;  %v400_v7 = vld [vmem:[%s540_s2 + $0x28] sm:$0xff] }
   0x3   :  { %v418_v2 = vld [vmem:[%s541_s4 + $0x38] sm:$0xff]  ;;  %188 = vmatpush.bf16.msra.mxu1 %v402_v1  ;;  %v417_v5 = vld [vmem:[%s541_s4 + $0x30] sm:$0xff]  ;;  %v416_v8 = vld [vmem:[%s541_s4 + $0x28] sm:$0xff] }
   0x4   :  { %265 = vmatpush.bf16.msra.mxu2 %v418_v2  ;;  %v407_v9 = vld [vmem:[%s539_s3 + $0x20] sm:$0xff]  ;;  %v406_v12 = vld [vmem:[%s539_s3 + $0x18] sm:$0xff]  ;;  %v405_v19 = vld [vmem:[%s539_s3 + $0x10] sm:$0xff] }
   0x5   :  { %v399_v10 = vld [vmem:[%s540_s2 + $0x20] sm:$0xff]  ;;  %v398_v13 = vld [vmem:[%s540_s2 + $0x18] sm:$0xff]  ;;  %v397_v20 = vld [vmem:[%s540_s2 + $0x10] sm:$0xff] }
   0x6   :  { %128 = vmatpush.bf16.msra.mxu0 %v409_v3  ;;  %v415_v11 = vld [vmem:[%s541_s4 + $0x20] sm:$0xff]  ;;  %v414_v16 = vld [vmem:[%s541_s4 + $0x18] sm:$0xff]  ;;  %v413_v21 = vld [vmem:[%s541_s4 + $0x10] sm:$0xff] }
   0x7   :  { %189 = vmatpush.bf16.msra.mxu1 %v401_v4  ;;  %v40_v14 = vld [vmem:[%s542_s0] sm:$0xf]  ;;  %v298_v15 = vld [vmem:[%s543_s1 + $0x4] sm:$0xf]  ;;  %v404_v23 = vld [vmem:[%s539_s3 + $0x8] sm:$0xff] }
   0x8   :  { %266 = vmatpush.bf16.msra.mxu2 %v417_v5  ;;  %v42_v17 = vunpack.c.l.bf16 %v40_v14  ;;  %v43_v18 = vunpack.c.l.bf16 %v298_v15  ;;  %v396_v24 = vld [vmem:[%s540_s2 + $0x8] sm:$0xff]  ;;  %v403_v27 = vld [vmem:[%s539_s3] sm:$0xff] }
   0x9   :  { %v412_v25 = vld [vmem:[%s541_s4 + $0x8] sm:$0xff]  ;;  %v395_v28 = vld [vmem:[%s540_s2] sm:$0xff] }
   0xa   :  { %129 = vmatpush.bf16.msra.mxu0 %v408_v6  ;;  %v44_v22 = vsub.f32 %v42_v17, %v43_v18  ;;  %v411_v29 = vld [vmem:[%s541_s4] sm:$0xff] }
   0xb   :  { %190 = vmatpush.bf16.msra.mxu1 %v400_v7  ;;  %v419_v34 = vld [vmem:[%s544_s5] ss:$0 sm:$0xff] }
   0xc   :  { %267 = vmatpush.bf16.msra.mxu2 %v416_v8  ;;  %v45_v26 = vand.u32 2147483647, %v44_v22 }
   0xe   :  { %130 = vmatpush.bf16.msra.mxu0 %v407_v9  ;;  %v46_v30 = vpack.c.bf16 %v45_v26, %v45_v26 }
   0xf   :  { %191 = vmatpush.bf16.msra.mxu1 %v399_v10 }
  0x10   :  { %268 = vmatpush.bf16.msra.mxu2 %v415_v11 }
  0x12   :  { %131 = vmatpush.bf16.msra.mxu0 %v406_v12 }
  0x13   :  { %192 = vmatpush.bf16.msra.mxu1 %v398_v13 }
  0x14   :  { %269 = vmatpush.bf16.msra.mxu2 %v414_v16 }
  0x16   :  { %132 = vmatpush.bf16.msra.mxu0 %v405_v19 }
  0x17   :  { %193 = vmatpush.bf16.msra.mxu1 %v397_v20 }
  0x18   :  { %270 = vmatpush.bf16.msra.mxu2 %v413_v21 }
  0x1a   :  { %133 = vmatpush.bf16.msra.mxu0 %v404_v23 }
  0x1b   :  { %194 = vmatpush.bf16.msra.mxu1 %v396_v24 }
  0x1c   :  { %271 = vmatpush.bf16.msra.mxu2 %v412_v25 }
  0x1e   :  { %134 = vmatpush.bf16.msra.mxu0 %v403_v27 }
  0x1f   :  { %195 = vmatpush.bf16.msra.mxu1 %v395_v28 }
  0x20   :  { %272 = vmatpush.bf16.msra.mxu2 %v411_v29 }
  0x21   :  { %135 = vmatmul.bf16.vlgmr.msra.gmra.mxu0 %v40_v14 }
  0x22   :  { %196 = vmatmul.bf16.vlgmr.msra.gmra.mxu1 %v46_v30 }
  0x23   :  { %273 = vmatmul.bf16.vlgmr.msra.gmra.mxu2 %v298_v15 }
  0x9e   :  { %v136_v31 = vpop.f32.mrf.mxu0 }
  0x9f   :  { %v197_v32 = vpop.f32.mrf.mxu1 }
  0xa0   :  { %v198_v33 = vadd.f32 %v197_v32, %v136_v31 }
  0xa6   :  { %v274_v35 = vpop.f32.mrf.mxu2  ;;  %v138_v37 = vpop.f32.mrf.mxu0 }
  0xa7   :  { %v278_v36 = vadd.f32 %v274_v35, %v198_v33  ;;  %v199_v38 = vpop.f32.mrf.mxu1 }
  0xa9   :  { %v283_v39 = vadd.f32 %v419_v34, %v278_v36 }
  0xab   :  { %v284_v40 = vmax.f32 %v283_v39, 0.0 }
  0xad   :  { %v285_v41 = vpack.c.bf16 %v284_v40, %v284_v40 }
  0xae   :  { %v276_v42 = vpop.f32.mrf.mxu2 }
  0xaf   :  { %287 = vst.msk [vmem:[%s545_s6] sm:$0xf] %vm286_vm0, %v285_v41 }

// kernel: change_detection_forward.22
= control target key start
LH: loop header
LB: loop body
LE: loop exit
PB: predicated region body
PF: predicated region fallthrough
CT: control target
= control target key end

     0   :  { %s644_s2 = inlined_call_operand.vmem [shape: bf16[128,128], index: 2, kind: input, shape index: {}]   ;;  %s645_s3 = inlined_call_operand.vmem [shape: f32[1,128], index: 3, kind: input, shape index: {}, may-alias: {3,6}]   ;;  %s646_s0 = inlined_call_operand.vmem [shape: bf16[16,128], index: 0, kind: input, shape index: {}]   ;;  %s647_s1 = inlined_call_operand.vmem [shape: bf16[16,128], index: 1, kind: input, shape index: {}]   ;;  %s648_s4 = inlined_call_operand.vmem [shape: bf16[128,128], index: 4, kind: input, shape index: {}]   ;;  %s649_s5 = inlined_call_operand.vmem [shape: bf16[128,128], index: 5, kind: input, shape index: {}]   ;;  %s650_s6 = inlined_call_operand.vmem [shape: f32[1,128], index: 6, kind: input, shape index: {}, may-alias: {3,6}]   ;;  %s651_s7 = inlined_call_operand.vmem [shape: bf16[16,128], index: 7, kind: output, shape index: {}]  }
   0x1   :  { %v454_v0 = vld [vmem:[%s644_s2 + $0x38] sm:$0xff]  ;;  %v453_v1 = vld [vmem:[%s644_s2 + $0x30] sm:$0xff]  ;;  %v452_v2 = vld [vmem:[%s644_s2 + $0x28] sm:$0xff] }
   0x2   :  { %105 = vmatpush.bf16.msra.mxu0 %v454_v0  ;;  %v451_v3 = vld [vmem:[%s644_s2 + $0x20] sm:$0xff]  ;;  %v450_v4 = vld [vmem:[%s644_s2 + $0x18] sm:$0xff]  ;;  %v449_v5 = vld [vmem:[%s644_s2 + $0x10] sm:$0xff] }
   0x3   :  { %v551_v6 = vld [vmem:[%s646_s0] sm:$0xff]   ;;  %v448_v12 = vld [vmem:[%s644_s2 + $0x8] sm:$0xff]  ;;  %v462_v17 = vld [vmem:[%s648_s4 + $0x38] sm:$0xff] }
   0x4   :  { %v556_v7 = vld [vmem:[%s647_s1] sm:$0xff]   ;;  %v30_v10 = vunpack.c.l.bf16 %v551_v6  ;;  %v31_v11 = vunpack.c.h.bf16 %v551_v6  ;;  %314 = vmatpush.bf16.msra.mxu2 %v462_v17  ;;  %v461_v18 = vld [vmem:[%s648_s4 + $0x30] sm:$0xff]  ;;  %v460_v19 = vld [vmem:[%s648_s4 + $0x28] sm:$0xff] }
   0x5   :  { %v473_v8 = vunpack.c.l.bf16 %v556_v7  ;;  %v474_v9 = vunpack.c.h.bf16 %v556_v7  ;;  %v447_v15 = vld [vmem:[%s644_s2] sm:$0xff]  ;;  %v470_v21 = vld [vmem:[%s649_s5 + $0x38] sm:$0xff]  ;;  %v469_v23 = vld [vmem:[%s649_s5 + $0x30] sm:$0xff] }
   0x6   :  { %106 = vmatpush.bf16.msra.mxu0 %v453_v1  ;;  %v459_v20 = vld [vmem:[%s648_s4 + $0x20] sm:$0xff]  ;;  %246 = vmatpush.bf16.msra.mxu1 %v470_v21  ;;  %v458_v22 = vld [vmem:[%s648_s4 + $0x18] sm:$0xff]  ;;  %v457_v24 = vld [vmem:[%s648_s4 + $0x10] sm:$0xff] }
   0x7   :  { %v34_v13 = vadd.f32 %v473_v8, %v30_v10  ;;  %v35_v14 = vadd.f32 %v474_v9, %v31_v11  ;;  %v468_v25 = vld [vmem:[%s649_s5 + $0x28] sm:$0xff]  ;;  %v467_v27 = vld [vmem:[%s649_s5 + $0x20] sm:$0xff]  ;;  %v466_v30 = vld [vmem:[%s649_s5 + $0x18] sm:$0xff] }
   0x8   :  { %315 = vmatpush.bf16.msra.mxu2 %v461_v18  ;;  %v456_v26 = vld [vmem:[%s648_s4 + $0x8] sm:$0xff]  ;;  %v455_v28 = vld [vmem:[%s648_s4] sm:$0xff]  ;;  %v465_v33 = vld [vmem:[%s649_s5 + $0x10] sm:$0xff] }
   0x9   :  { %v36_v16 = vpack.c.bf16 %v35_v14, %v34_v13  ;;  %v480_v29 = vld [vmem:[%s645_s3] ss:$0 sm:$0xff]  ;;  %v464_v36 = vld [vmem:[%s649_s5 + $0x8] sm:$0xff] }
   0xa   :  { %107 = vmatpush.bf16.msra.mxu0 %v452_v2  ;;  %247 = vmatpush.bf16.msra.mxu1 %v469_v23  ;;  %v446_v31 = vld [vmem:[%s646_s0] sm:$0xff] }
   0xb   :  { %v463_v38 = vld [vmem:[%s649_s5] sm:$0xff] }
   0xc   :  { %316 = vmatpush.bf16.msra.mxu2 %v460_v19 }
   0xe   :  { %108 = vmatpush.bf16.msra.mxu0 %v451_v3  ;;  %248 = vmatpush.bf16.msra.mxu1 %v468_v25 }
  0x10   :  { %317 = vmatpush.bf16.msra.mxu2 %v459_v20 }
  0x12   :  { %109 = vmatpush.bf16.msra.mxu0 %v450_v4  ;;  %249 = vmatpush.bf16.msra.mxu1 %v467_v27 }
  0x14   :  { %318 = vmatpush.bf16.msra.mxu2 %v458_v22 }
  0x16   :  { %110 = vmatpush.bf16.msra.mxu0 %v449_v5  ;;  %250 = vmatpush.bf16.msra.mxu1 %v466_v30 }
  0x18   :  { %319 = vmatpush.bf16.msra.mxu2 %v457_v24 }
  0x1a   :  { %111 = vmatpush.bf16.msra.mxu0 %v448_v12  ;;  %251 = vmatpush.bf16.msra.mxu1 %v465_v33 }
  0x1c   :  { %320 = vmatpush.bf16.msra.mxu2 %v456_v26 }
  0x1e   :  { %112 = vmatpush.bf16.msra.mxu0 %v447_v15  ;;  %252 = vmatpush.bf16.msra.mxu1 %v464_v36 }
  0x20   :  { %321 = vmatpush.bf16.msra.mxu2 %v455_v28 }
  0x21   :  { %113 = vmatmul.bf16.vlgmr.msra.gmra.mxu0 %v36_v16 }
  0x22   :  { %253 = vmatpush.bf16.msra.mxu1 %v463_v38 }
  0x23   :  { %322 = vmatmul.bf16.vlgmr.msra.gmra.mxu2 %v446_v31 }
  0x9e   :  { %v114_v32 = vpop.f32.mrf.mxu0 }
  0x9f   :  { %v115_v34 = vadd.f32 %v480_v29, %v114_v32 }
  0xa1   :  { %v376_v35 = vmul.f32 -1.442695, %v115_v34 }
  0xa3   :  { %482 = vpow2.f32 %v376_v35 }
  0xa6   :  { %v116_v37 = vpop.f32.mrf.mxu0  ;;  %v323_v16 = vpop.f32.mrf.mxu2 }
  0xa7   :  { %v117_v39 = vadd.f32 %v480_v29, %v116_v37 }
  0xa9   :  { %v483_v40 = vpop.eup %482  ;;  %v377_v41 = vmul.f32 -1.442695, %v117_v39 }
  0xaa   :  { %v125_v42 = vadd.f32 1.0, %v483_v40 }
  0xab   :  { %484 = vpow2.f32 %v377_v41 }
  0xac   :  { %486 = vrcp.f32 %v125_v42  ;;  %v138_v49 = vand.u32 2147483648, %v125_v42  ;;  %vm132_vm1 = vweird.f32 %v125_v42  ;;  %v136_v51 = vand.u32 2147483647, %v125_v42 }
  0xae   :  { %v139_v55 = vor.u32 1.1754944e-38, %v138_v49  ;;  %vm137_vm3 = vcmp.eq.f32.partialorder %v136_v51, 8.507059e+37  ;;  %v325_v19 = vpop.f32.mrf.mxu2 }
  0xb1   :  { %v485_v43 = vpop.eup %484 }
  0xb2   :  { %v487_v44 = vpop.eup %486  ;;  %v126_v45 = vadd.f32 1.0, %v485_v43 }
  0xb3   :  { %v128_v46 = vmul.f32 %v487_v44, %v125_v42  ;;  %vm133_vm0 = vweird.f32 %v487_v44 }
  0xb4   :  { %488 = vrcp.f32 %v126_v45  ;;  %vm134_vm2 = vmor %vm132_vm1, %vm133_vm0  ;;  %v153_v58 = vand.u32 2147483648, %v126_v45  ;;  %v151_v60 = vand.u32 2147483647, %v126_v45  ;;  %vm147_vm5 = vweird.f32 %v126_v45 }
  0xb5   :  { %v129_v47 = vsub.f32 1.0, %v128_v46 }
  0xb6   :  { %v154_v63 = vor.u32 1.1754944e-38, %v153_v58  ;;  %vm152_vm7 = vcmp.eq.f32.partialorder %v151_v60, 8.507059e+37 }
  0xb7   :  { %v130_v48 = vmul.f32 %v487_v44, %v129_v47 }
  0xb9   :  { %v131_v50 = vadd.f32 %v487_v44, %v130_v48 }
  0xba   :  { %v489_v52 = vpop.eup %488 }
  0xbb   :  { %v143_v53 = vmul.f32 %v489_v52, %v126_v45  ;;  %v135_v54 = vsel %vm134_vm2, %v487_v44, %v131_v50  ;;  %vm148_vm4 = vweird.f32 %v489_v52 }
  0xbc   :  { %v140_v57 = vsel %vm137_vm3, %v139_v55, %v135_v54  ;;  %vm149_vm6 = vmor %vm147_vm5, %vm148_vm4 }
  0xbd   :  { %v144_v56 = vsub.f32 1.0, %v143_v53  ;;  %v159_v62 = vsub.f32 1.0, %v140_v57  ;;  %v157_v4 = vmul.f32 %v140_v57, %v30_v10 }
  0xbf   :  { %v145_v59 = vmul.f32 %v489_v52, %v144_v56  ;;  %v161_v3 = vmul.f32 %v473_v8, %v159_v62  ;;  %v481_v8 = vld [vmem:[%s650_s6] ss:$0 sm:$0xff] }
  0xc1   :  { %v146_v61 = vadd.f32 %v489_v52, %v145_v59  ;;  %v163_v13 = vadd.f32 %v161_v3, %v157_v4 }
  0xc3   :  { %v150_v0 = vsel %vm149_vm6, %v489_v52, %v146_v61 }
  0xc4   :  { %v155_v1 = vsel %vm152_vm7, %v154_v63, %v150_v0 }
  0xc5   :  { %v160_v2 = vsub.f32 1.0, %v155_v1  ;;  %v158_v5 = vmul.f32 %v155_v1, %v31_v11 }
  0xc7   :  { %v162_v12 = vmul.f32 %v474_v9, %v160_v2 }
  0xc9   :  { %v164_v14 = vadd.f32 %v162_v12, %v158_v5 }
  0xcb   :  { %v181_v15 = vpack.c.bf16 %v164_v14, %v163_v13 }
  0xcd   :  { %254 = vmatmul.bf16.vlgmr.msra.gmra.mxu1 %v181_v15 }
 0x14a   :  { %v255_v17 = vpop.f32.mrf.mxu1 }
 0x14b   :  { %v324_v18 = vadd.f32 %v323_v16, %v255_v17 }
 0x14d   :  { %v332_v10 = vadd.f32 %v481_v8, %v324_v18 }
 0x14f   :  { %v334_v11 = vmax.f32 %v332_v10, 0.0 }
 0x152   :  { %v257_v20 = vpop.f32.mrf.mxu1 }
 0x153   :  { %v326_v21 = vadd.f32 %v325_v19, %v257_v20 }
 0x155   :  { %v333_v6 = vadd.f32 %v481_v8, %v326_v21 }
 0x157   :  { %v335_v22 = vmax.f32 %v333_v6, 0.0 }
 0x159   :  { %v478_v7 = vpack.c.bf16 %v335_v22, %v334_v11 }
 0x15b   :  { %479 = vst [vmem:[%s651_s7] sm:$0xff] %v478_v7  }

// kernel: change_detection_forward.25
= control target key start
LH: loop header
LB: loop body
LE: loop exit
PB: predicated region body
PF: predicated region fallthrough
CT: control target
= control target key end

     0   :  { %s989_s3 = inlined_call_operand.vmem [shape: bf16[256,128], index: 3, kind: input, shape index: {}]   ;;  %s990_s2 = inlined_call_operand.vmem [shape: bf16[256,128], index: 2, kind: input, shape index: {}]   ;;  %s991_s0 = inlined_call_operand.vmem [shape: bf16[16,256], index: 0, kind: input, shape index: {}, may-alias: {0,1}]   ;;  %s992_s1 = inlined_call_operand.vmem [shape: bf16[16,256], index: 1, kind: input, shape index: {}, may-alias: {0,1}]   ;;  %s993_s4 = inlined_call_operand.vmem [shape: bf16[256,128], index: 4, kind: input, shape index: {}]   ;;  %s994_s5 = inlined_call_operand.vmem [shape: f32[1,128], index: 5, kind: input, shape index: {}]   ;;  %s995_s6 = inlined_call_operand.vmem [shape: bf16[8,128], index: 6, kind: output, shape index: {}]  }
   0x1   :  { %v766_v0 = vld [vmem:[%s989_s3 + $0x38] sm:$0xff]  ;;  %v765_v2 = vld [vmem:[%s989_s3 + $0x30] sm:$0xff]  ;;  %v764_v8 = vld [vmem:[%s989_s3 + $0x28] sm:$0xff] }
   0x2   :  { %v774_v1 = vld [vmem:[%s989_s3 + $0x78] sm:$0xff]  ;;  %222 = vmatpush.bf16.msra.mxu0 %v766_v0  ;;  %v773_v3 = vld [vmem:[%s989_s3 + $0x70] sm:$0xff]  ;;  %v772_v9 = vld [vmem:[%s989_s3 + $0x68] sm:$0xff] }
   0x3   :  { %235 = vmatpush.bf16.msra.mxu1 %v774_v1  ;;  %v750_v4 = vld [vmem:[%s990_s2 + $0x38] sm:$0xff]  ;;  %v749_v6 = vld [vmem:[%s990_s2 + $0x30] sm:$0xff]  ;;  %v748_v10 = vld [vmem:[%s990_s2 + $0x28] sm:$0xff] }
   0x4   :  { %v758_v5 = vld [vmem:[%s990_s2 + $0x78] sm:$0xff]  ;;  %344 = vmatpush.bf16.msra.mxu2 %v750_v4  ;;  %v757_v7 = vld [vmem:[%s990_s2 + $0x70] sm:$0xff]  ;;  %v756_v11 = vld [vmem:[%s990_s2 + $0x68] sm:$0xff] }
   0x5   :  { %357 = vmatpush.bf16.msra.mxu3 %v758_v5  ;;  %v763_v12 = vld [vmem:[%s989_s3 + $0x20] sm:$0xff]  ;;  %v762_v16 = vld [vmem:[%s989_s3 + $0x18] sm:$0xff]  ;;  %v893_v21 = vld [vmem:[%s992_s1 + $0x8] sm:$0xff] }
   0x6   :  { %223 = vmatpush.bf16.msra.mxu0 %v765_v2  ;;  %v771_v13 = vld [vmem:[%s989_s3 + $0x60] sm:$0xff]  ;;  %v770_v17 = vld [vmem:[%s989_s3 + $0x58] sm:$0xff]  ;;  %v761_v22 = vld [vmem:[%s989_s3 + $0x10] sm:$0xff]  ;;  %v47_v27 = vunpack.c.l.bf16 %v893_v21  ;;  %v48_v29 = vunpack.c.h.bf16 %v893_v21  ;;  %v403_v62 = vunpack.c.l.b16 %v893_v21  ;;  %v404_v63 = vunpack.c.h.b16 %v893_v21 }
   0x7   :  { %236 = vmatpush.bf16.msra.mxu1 %v773_v3  ;;  %v747_v14 = vld [vmem:[%s990_s2 + $0x20] sm:$0xff]  ;;  %v746_v18 = vld [vmem:[%s990_s2 + $0x18] sm:$0xff]  ;;  %v769_v23 = vld [vmem:[%s989_s3 + $0x50] sm:$0xff] }
   0x8   :  { %345 = vmatpush.bf16.msra.mxu2 %v749_v6  ;;  %v755_v15 = vld [vmem:[%s990_s2 + $0x60] sm:$0xff]  ;;  %v754_v19 = vld [vmem:[%s990_s2 + $0x58] sm:$0xff]  ;;  %v745_v24 = vld [vmem:[%s990_s2 + $0x10] sm:$0xff]  ;;  %v405_v2 = vpack.c.b16 %v403_v62, %v403_v62  ;;  %v406_v3 = vpack.c.b16 %v404_v63, %v404_v63 }
   0x9   :  { %358 = vmatpush.bf16.msra.mxu3 %v757_v7  ;;  %v43_v20 = vld [vmem:[%s991_s0] sm:$0xff]  ;;  %v753_v25 = vld [vmem:[%s990_s2 + $0x50] sm:$0xff]  ;;  %v760_v30 = vld [vmem:[%s989_s3 + $0x8] sm:$0xff] }
   0xa   :  { %224 = vmatpush.bf16.msra.mxu0 %v764_v8  ;;  %v45_v26 = vunpack.c.l.bf16 %v43_v20  ;;  %v46_v28 = vunpack.c.h.bf16 %v43_v20  ;;  %v768_v31 = vld [vmem:[%s989_s3 + $0x48] sm:$0xff]  ;;  %v120_v36 = vunpack.c.l.b16 %v43_v20  ;;  %v121_v37 = vunpack.c.h.b16 %v43_v20  ;;  %v759_v38 = vld [vmem:[%s989_s3] sm:$0xff]  ;;  %v782_v40 = vld [vmem:[%s993_s4 + $0x38] sm:$0xff] }
   0xb   :  { %237 = vmatpush.bf16.msra.mxu1 %v772_v9  ;;  %v744_v32 = vld [vmem:[%s990_s2 + $0x8] sm:$0xff]  ;;  %v767_v39 = vld [vmem:[%s989_s3 + $0x40] sm:$0xff]  ;;  %v790_v41 = vld [vmem:[%s993_s4 + $0x78] sm:$0xff] }
   0xc   :  { %346 = vmatpush.bf16.msra.mxu2 %v748_v10  ;;  %v752_v33 = vld [vmem:[%s990_s2 + $0x48] sm:$0xff]  ;;  %v49_v34 = vsub.f32 %v45_v26, %v47_v27  ;;  %v50_v35 = vsub.f32 %v46_v28, %v48_v29  ;;  %v743_v42 = vld [vmem:[%s990_s2] sm:$0xff]  ;;  %v122_v46 = vpack.c.b16 %v120_v36, %v120_v36  ;;  %v123_v47 = vpack.c.b16 %v121_v37, %v121_v37  ;;  %v781_v48 = vld [vmem:[%s993_s4 + $0x30] sm:$0xff] }
   0xd   :  { %359 = vmatpush.bf16.msra.mxu3 %v756_v11  ;;  %v751_v43 = vld [vmem:[%s990_s2 + $0x40] sm:$0xff]  ;;  %v789_v49 = vld [vmem:[%s993_s4 + $0x70] sm:$0xff]  ;;  %v780_v52 = vld [vmem:[%s993_s4 + $0x28] sm:$0xff] }
   0xe   :  { %225 = vmatpush.bf16.msra.mxu0 %v763_v12  ;;  %v51_v44 = vand.u32 2147483647, %v49_v34  ;;  %v52_v45 = vand.u32 2147483647, %v50_v35  ;;  %v788_v53 = vld [vmem:[%s993_s4 + $0x68] sm:$0xff]  ;;  %v779_v54 = vld [vmem:[%s993_s4 + $0x20] sm:$0xff] }
   0xf   :  { %238 = vmatpush.bf16.msra.mxu1 %v771_v13  ;;  %v787_v55 = vld [vmem:[%s993_s4 + $0x60] sm:$0xff]  ;;  %v778_v56 = vld [vmem:[%s993_s4 + $0x18] sm:$0xff]  ;;  %v777_v58 = vld [vmem:[%s993_s4 + $0x10] sm:$0xff] }
  0x10   :  { %347 = vmatpush.bf16.msra.mxu2 %v747_v14  ;;  %v53_v50 = vpack.c.bf16 %v51_v44, %v51_v44  ;;  %v54_v51 = vpack.c.bf16 %v52_v45, %v52_v45  ;;  %v786_v57 = vld [vmem:[%s993_s4 + $0x58] sm:$0xff]  ;;  %v785_v59 = vld [vmem:[%s993_s4 + $0x50] sm:$0xff]  ;;  %v776_v60 = vld [vmem:[%s993_s4 + $0x8] sm:$0xff] }
  0x11   :  { %360 = vmatpush.bf16.msra.mxu3 %v755_v15  ;;  %v784_v61 = vld [vmem:[%s993_s4 + $0x48] sm:$0xff]  ;;  %v775_v0 = vld [vmem:[%s993_s4] sm:$0xff] }
  0x12   :  { %226 = vmatpush.bf16.msra.mxu0 %v762_v16  ;;  %v783_v1 = vld [vmem:[%s993_s4 + $0x40] sm:$0xff] }
  0x13   :  { %239 = vmatpush.bf16.msra.mxu1 %v770_v17 }
  0x14   :  { %348 = vmatpush.bf16.msra.mxu2 %v746_v18  ;;  %v791_v18 = vld [vmem:[%s994_s5] ss:$0 sm:$0xff] }
  0x15   :  { %361 = vmatpush.bf16.msra.mxu3 %v754_v19 }
  0x16   :  { %227 = vmatpush.bf16.msra.mxu0 %v761_v22 }
  0x17   :  { %240 = vmatpush.bf16.msra.mxu1 %v769_v23 }
  0x18   :  { %349 = vmatpush.bf16.msra.mxu2 %v745_v24 }
  0x19   :  { %362 = vmatpush.bf16.msra.mxu3 %v753_v25 }
  0x1a   :  { %228 = vmatpush.bf16.msra.mxu0 %v760_v30 }
  0x1b   :  { %241 = vmatpush.bf16.msra.mxu1 %v768_v31 }
  0x1c   :  { %350 = vmatpush.bf16.msra.mxu2 %v744_v32 }
  0x1d   :  { %363 = vmatpush.bf16.msra.mxu3 %v752_v33 }
  0x1e   :  { %229 = vmatpush.bf16.msra.mxu0 %v759_v38 }
  0x1f   :  { %242 = vmatpush.bf16.msra.mxu1 %v767_v39 }
  0x20   :  { %351 = vmatpush.bf16.msra.mxu2 %v743_v42 }
  0x21   :  { %364 = vmatpush.bf16.msra.mxu3 %v751_v43  ;;  %230 = vmatmul.bf16.vlgmr.msra.gmra.mxu0 %v122_v46 }
  0x22   :  { %505 = vmatpush.bf16.msrb.mxu0 %v782_v40  ;;  %243 = vmatmul.bf16.vlgmr.msra.gmra.mxu1 %v123_v47 }
  0x23   :  { %518 = vmatpush.bf16.msrb.mxu1 %v790_v41  ;;  %352 = vmatmul.bf16.vlgmr.msra.gmra.mxu2 %v53_v50 }
  0x24   :  { %365 = vmatmul.bf16.vlgmr.msra.gmra.mxu3 %v54_v51 }
  0x26   :  { %506 = vmatpush.bf16.msrb.mxu0 %v781_v48 }
  0x27   :  { %519 = vmatpush.bf16.msrb.mxu1 %v789_v49 }
  0x2a   :  { %507 = vmatpush.bf16.msrb.mxu0 %v780_v52 }
  0x2b   :  { %520 = vmatpush.bf16.msrb.mxu1 %v788_v53 }
  0x2e   :  { %508 = vmatpush.bf16.msrb.mxu0 %v779_v54 }
  0x2f   :  { %521 = vmatpush.bf16.msrb.mxu1 %v787_v55 }
  0x32   :  { %509 = vmatpush.bf16.msrb.mxu0 %v778_v56 }
  0x33   :  { %522 = vmatpush.bf16.msrb.mxu1 %v786_v57 }
  0x36   :  { %510 = vmatpush.bf16.msrb.mxu0 %v777_v58 }
  0x37   :  { %523 = vmatpush.bf16.msrb.mxu1 %v785_v59 }
  0x3a   :  { %511 = vmatpush.bf16.msrb.mxu0 %v776_v60 }
  0x3b   :  { %524 = vmatpush.bf16.msrb.mxu1 %v784_v61 }
  0x3e   :  { %512 = vmatpush.bf16.msrb.mxu0 %v775_v0 }
  0x3f   :  { %525 = vmatpush.bf16.msrb.mxu1 %v783_v1 }
  0x41   :  { %513 = vmatmul.bf16.vlgmr.msrb.gmra.mxu0 %v405_v2 }
  0x42   :  { %526 = vmatmul.bf16.vlgmr.msrb.gmra.mxu1 %v406_v3 }
  0x9e   :  { %v231_v4 = vpop.f32.mrf.mxu0 }
  0x9f   :  { %v244_v5 = vpop.f32.mrf.mxu1 }
  0xa0   :  { %v245_v12 = vadd.f32 %v244_v5, %v231_v4 }
  0xa6   :  { %v233_v6 = vpop.f32.mrf.mxu0  ;;  %v353_v8 = vpop.f32.mrf.mxu2 }
  0xa7   :  { %v246_v7 = vpop.f32.mrf.mxu1  ;;  %v366_v9 = vpop.f32.mrf.mxu3  ;;  %v354_v13 = vadd.f32 %v353_v8, %v245_v12 }
  0xa9   :  { %v367_v16 = vadd.f32 %v366_v9, %v354_v13 }
  0xae   :  { %v355_v10 = vpop.f32.mrf.mxu2 }
  0xaf   :  { %v368_v11 = vpop.f32.mrf.mxu3 }
  0xbe   :  { %v514_v14 = vpop.f32.mrf.mxu0 }
  0xbf   :  { %v527_v15 = vpop.f32.mrf.mxu1 }
  0xc0   :  { %v528_v17 = vadd.f32 %v527_v15, %v514_v14 }
  0xc2   :  { %v531_v19 = vadd.f32 %v528_v17, %v367_v16 }
  0xc4   :  { %v536_v20 = vadd.f32 %v791_v18, %v531_v19 }
  0xc6   :  { %v537_v21 = vmax.f32 %v536_v20, 0.0  ;;  %v516_v22 = vpop.f32.mrf.mxu0 }
  0xc7   :  { %v529_v23 = vpop.f32.mrf.mxu1 }
  0xc8   :  { %v538_v24 = vpack.c.bf16 %v537_v21, %v537_v21 }
  0xca   :  { %539 = vst [vmem:[%s995_s6] sm:$0xf] %v538_v24 }

// kernel: change_detection_forward.23
= control target key start
LH: loop header
LB: loop body
LE: loop exit
PB: predicated region body
PF: predicated region fallthrough
CT: control target
= control target key end

     0   :  { %s923_s21 = smov 0   ;;  %s1039_s0 = inlined_call_operand.vmem [shape: bf16[256,64], index: 0, kind: input, shape index: {}, may-alias: {0,1}]   ;;  %s1040_s1 = inlined_call_operand.vmem [shape: bf16[256,64], index: 1, kind: input, shape index: {}, may-alias: {0,1}]   ;;  %s1041_s2 = inlined_call_operand.vmem [shape: bf16[64,128], index: 2, kind: input, shape index: {}]   ;;  %s1042_s3 = inlined_call_operand.vmem [shape: bf16[64,128], index: 3, kind: input, shape index: {}]   ;;  %s1043_s4 = inlined_call_operand.vmem [shape: bf16[64,128], index: 4, kind: input, shape index: {}]   ;;  %s1044_s5 = inlined_call_operand.vmem [shape: f32[1,128], index: 5, kind: input, shape index: {}]   ;;  %s1045_s6 = inlined_call_operand.vmem [shape: bf16[128,128], index: 6, kind: output, shape index: {}]  }
   0x1 LB: > { %s709_s22 = sadd.s32 4294967295, %s886_s21   ;;  %p713_p0 = scmp.ge.s32.totalorder %s886_s21, 1  ;;  %s886_s21 = sphi %s923_s21, %s16_s21  }
   0x2   : > { %p228_p1 = scmp.lt.s32.totalorder %s886_s21, 3 }
   0x4   : > { %p229_p2 = pnand %p713_p0, %p228_p1 }
   0x5   : > { %s942_s29 = sshll.u32 (!%p229_p2), %s709_s22, 3 }
   0x6   : > { %232 = sbr.rel (%p229_p2) target bundleno = 210 (0xd2), region = 44  ;;  %p265_p3 = scmp.lt.s32.totalorder (!%p229_p2), %s942_s29, 31 }
   0x7   : > { %s815_s30 = sadd.s32 (!%p229_p2), 16, %s942_s29  ;;  %p279_p5 = scmp.lt.s32.totalorder (!%p229_p2), %s942_s29, 15 }
   0x8   : > { %p272_p4 = scmp.lt.s32.totalorder (!%p229_p2), %s815_s30, 31 }
   0xb   : > { %v831_v0 = vld [vmem:[%s1042_s3 + $0x18] sm:$0xff]  ;;  %v830_v3 = vld [vmem:[%s1042_s3 + $0x10] sm:$0xff]  ;;  %s266_s13 = scalar_select %p265_p3, %s942_s29, 31  ;;  %v829_v6 = vld [vmem:[%s1042_s3 + $0x8] sm:$0xff]  ;;  %vm397_vm0 = vcmask 523264  }
   0xc   : > { %v827_v1 = vld [vmem:[%s1041_s2 + $0x18] sm:$0xff]  ;;  %414 = vmatpush.bf16.msra.mxu0 %v831_v0  ;;  %859 = vmatpush.bf16.msra.mxu3 %v831_v0  ;;  %v826_v4 = vld [vmem:[%s1041_s2 + $0x10] sm:$0xff]  ;;  %s1047_s30 = smov (!%p272_p4, %s815_s30), 31  ;;  %v825_v7 = vld [vmem:[%s1041_s2 + $0x8] sm:$0xff]  ;;  %s1049_s29 = smov (!%p279_p5, %s942_s29), 15 }
   0xd   : > { %v940_v2 = vld [vmem:[%s1043_s4 + $0x18] sm:$0xff]  ;;  %863 = vmatpush.bf16.msra.mxu1 %v827_v1  ;;  %v956_v5 = vld [vmem:[%s1043_s4 + $0x10] sm:$0xff]  ;;  %s715_s14 = sshll.u32 %s266_s13, 2  ;;  %s717_s20 = sshll.u32 %s1047_s30, 2  ;;  %v974_v8 = vld [vmem:[%s1043_s4 + $0x8] sm:$0xff] }
   0xe   : > { %867 = vmatpush.bf16.msra.mxu2 %v940_v2  ;;  %s965_s19 = scalar_lea.vmem %s1039_s0, %s715_s14  ;;  %s979_s28 = scalar_lea.vmem %s1040_s1, %s717_s20  ;;  %v828_v15 = vld [vmem:[%s1042_s3] sm:$0xff] }
   0xf   : > { %v287_v9 = vld [vmem:[%s965_s19 + $0x8] sm:$0xff]   ;;  %v824_v16 = vld [vmem:[%s1041_s2] sm:$0xff]  ;;  %v289_v28 = vld [vmem:[%s965_s19 + $0x10] sm:$0xff]   ;;  %s719_s14 = sshll.u32 %s1049_s29, 2 }
  0x10   : > { %415 = vmatpush.bf16.msra.mxu0 %v830_v3  ;;  %860 = vmatpush.bf16.msra.mxu3 %v830_v3  ;;  %v295_v10 = vld [vmem:[%s979_s28 + $0x8] sm:$0xff]   ;;  %v303_v11 = vunpack.c.l.bf16 %v287_v9  ;;  %v304_v12 = vunpack.c.h.bf16 %v287_v9  ;;  %v832_v17 = vld [vmem:[%s1043_s4] sm:$0xff]  ;;  %v297_v29 = vld [vmem:[%s979_s28 + $0x10] sm:$0xff]   ;;  %v305_v34 = vunpack.c.l.bf16 %v289_v28  ;;  %v306_v35 = vunpack.c.h.bf16 %v289_v28  ;;  %s1030_s17 = scalar_lea.vmem %s1045_s6, %s719_s14 }
  0x11   : > { %864 = vmatpush.bf16.msra.mxu1 %v826_v4  ;;  %v311_v13 = vunpack.c.l.bf16 %v295_v10  ;;  %v312_v14 = vunpack.c.h.bf16 %v295_v10  ;;  %v816_v20 = vld [vmem:[%s965_s19] sm:$0xff]  ;;  %v817_v21 = vld [vmem:[%s965_s19 + $0x8] sm:$0xff]  ;;  %v313_v36 = vunpack.c.l.bf16 %v297_v29  ;;  %v314_v37 = vunpack.c.h.bf16 %v297_v29  ;;  %v818_v46 = vld [vmem:[%s965_s19 + $0x10] sm:$0xff] }
  0x12   : > { %868 = vmatpush.bf16.msra.mxu2 %v956_v5  ;;  %v821_v24 = vld [vmem:[%s979_s28 + $0x8] sm:$0xff]  ;;  %v285_v25 = vld [vmem:[%s965_s19] sm:$0xff]   ;;  %v822_v49 = vld [vmem:[%s979_s28 + $0x10] sm:$0xff] }
  0x13   : > { %v319_v18 = vsub.f32 %v303_v11, %v311_v13  ;;  %v320_v19 = vsub.f32 %v304_v12, %v312_v14  ;;  %v293_v26 = vld [vmem:[%s979_s28] sm:$0xff]   ;;  %v301_v30 = vunpack.c.l.bf16 %v285_v25  ;;  %v302_v31 = vunpack.c.h.bf16 %v285_v25  ;;  %v291_v50 = vld [vmem:[%s965_s19 + $0x18] sm:$0xff]  }
  0x14   : > { %416 = vmatpush.bf16.msra.mxu0 %v829_v6  ;;  %861 = vmatpush.bf16.msra.mxu3 %v829_v6  ;;  %v309_v32 = vunpack.c.l.bf16 %v293_v26  ;;  %v310_v33 = vunpack.c.h.bf16 %v293_v26  ;;  %v321_v40 = vsub.f32 %v305_v34, %v313_v36  ;;  %v322_v41 = vsub.f32 %v306_v35, %v314_v37  ;;  %v299_v51 = vld [vmem:[%s979_s28 + $0x18] sm:$0xff]   ;;  %v820_v61 = vld [vmem:[%s979_s28] sm:$0xff] }
  0x15   : > { %865 = vmatpush.bf16.msra.mxu1 %v825_v7  ;;  %v327_v22 = vand.u32 2147483647, %v319_v18  ;;  %v328_v23 = vand.u32 2147483647, %v320_v19  ;;  %v307_v52 = vunpack.c.l.bf16 %v291_v50  ;;  %v308_v53 = vunpack.c.h.bf16 %v291_v50  ;;  %v819_v60 = vld [vmem:[%s965_s19 + $0x18] sm:$0xff] }
  0x16   : > { %869 = vmatpush.bf16.msra.mxu2 %v974_v8  ;;  %v317_v38 = vsub.f32 %v301_v30, %v309_v32  ;;  %v318_v39 = vsub.f32 %v302_v31, %v310_v33  ;;  %v329_v44 = vand.u32 2147483647, %v321_v40  ;;  %v330_v45 = vand.u32 2147483647, %v322_v41  ;;  %v823_v63 = vld [vmem:[%s979_s28 + $0x18] sm:$0xff] }
  0x17   : > { %v334_v27 = vpack.c.bf16 %v328_v23, %v327_v22  ;;  %v315_v54 = vunpack.c.l.bf16 %v299_v51  ;;  %v316_v55 = vunpack.c.h.bf16 %v299_v51 }
  0x18   : > { %417 = vmatpush.bf16.msra.mxu0 %v828_v15  ;;  %862 = vmatpush.bf16.msra.mxu3 %v828_v15  ;;  %v325_v42 = vand.u32 2147483647, %v317_v38  ;;  %v326_v43 = vand.u32 2147483647, %v318_v39  ;;  %v335_v48 = vpack.c.bf16 %v330_v45, %v329_v44 }
  0x19   : > { %866 = vmatpush.bf16.msra.mxu1 %v824_v16  ;;  %v323_v56 = vsub.f32 %v307_v52, %v315_v54  ;;  %v324_v57 = vsub.f32 %v308_v53, %v316_v55 }
  0x1a   : > { %870 = vmatpush.bf16.msra.mxu2 %v832_v17  ;;  %v333_v47 = vpack.c.bf16 %v326_v43, %v325_v42 }
  0x1b   : > { %752 = vmatmul.msk.bf16.vlgmr.msra.gmra.mxu0 %vm397_vm0, %v816_v20  ;;  %753 = vmatmul.msk.bf16.vlgmr.msra.gmra.mxu3 %vm397_vm0, %v817_v21  ;;  %v331_v58 = vand.u32 2147483647, %v323_v56  ;;  %v332_v59 = vand.u32 2147483647, %v324_v57 }
  0x1c   : > { %479 = vmatpush.bf16.msrb.mxu0 %v827_v1  ;;  %773 = vmatmul.msk.bf16.vlgmr.msra.gmra.mxu1 %vm397_vm0, %v334_v27 }
  0x1d   : > { %809 = vmatmul.msk.bf16.vlgmr.msra.gmra.mxu2 %vm397_vm0, %v821_v24  ;;  %v336_v62 = vpack.c.bf16 %v332_v59, %v331_v58 }
  0x20   : > { %480 = vmatpush.bf16.msrb.mxu0 %v826_v4 }
  0x24   : > { %481 = vmatpush.bf16.msrb.mxu0 %v825_v7 }
  0x28   : > { %482 = vmatpush.bf16.msrb.mxu0 %v824_v16 }
  0x2b   : > { %754 = vmatmul.msk.bf16.gmra.mxu3 %vm397_vm0, %v818_v46  ;;  %772 = vmatmul.msk.bf16.vlgmr.msrb.gmra.mxu0 %vm397_vm0, %v333_v47 }
  0x2c   : > { %572 = vmatpush.bf16.msra.mxu0 %v940_v2  ;;  %774 = vmatmul.msk.bf16.gmra.mxu1 %vm397_vm0, %v335_v48 }
  0x2d   : > { %810 = vmatmul.msk.bf16.gmra.mxu2 %vm397_vm0, %v822_v49 }
  0x30   : > { %573 = vmatpush.bf16.msra.mxu0 %v956_v5 }
  0x34   : > { %574 = vmatpush.bf16.msra.mxu0 %v974_v8  ;;  %v879_v8 = vld [vmem:[%s1044_s5] ss:$0 sm:$0xff] }
  0x38   : > { %575 = vmatpush.bf16.msra.mxu0 %v832_v17 }
  0x3b   : > { %755 = vmatmul.msk.bf16.gmra.mxu3 %vm397_vm0, %v819_v60  ;;  %808 = vmatmul.msk.bf16.vlgmr.msra.gmra.mxu0 %vm397_vm0, %v820_v61 }
  0x3c   : > { %775 = vmatmul.msk.bf16.gmra.mxu1 %vm397_vm0, %v336_v62 }
  0x3d   : > { %811 = vmatmul.msk.bf16.gmra.mxu2 %vm397_vm0, %v823_v63 }
  0x98   : > { %v419_v0 = vpop.f32.mrf.mxu0 }
  0x99   : > { %v489_v1 = vpop.f32.mrf.mxu1 }
  0x9e   : > { %v424_v2 = vpop.f32.mrf.mxu3 }
  0x9f   : > { %v490_v5 = vadd.f32 %v489_v1, %v424_v2 }
  0xa0   : > { %v582_v3 = vpop.f32.mrf.mxu2  ;;  %v421_v4 = vpop.f32.mrf.mxu0 }
  0xa1   : > { %v491_v6 = vpop.f32.mrf.mxu1  ;;  %v599_v7 = vadd.f32 %v582_v3, %v490_v5 }
  0xa3   : > { %v611_v13 = vadd.f32 %v879_v8, %v599_v7 }
  0xa5   : > { %v619_v17 = vmax.f32 %v611_v13, 0.0 }
  0xa6   : > { %v426_v9 = vpop.f32.mrf.mxu3 }
  0xa7   : > { %v492_v10 = vadd.f32 %v491_v6, %v426_v9 }
  0xa8   : > { %v584_v11 = vpop.f32.mrf.mxu2  ;;  %v484_v12 = vpop.f32.mrf.mxu0 }
  0xa9   : > { %v600_v14 = vadd.f32 %v584_v11, %v492_v10  ;;  %v494_v15 = vpop.f32.mrf.mxu1  ;;  %v485_v32 = vadd.f32 %v484_v12, %v419_v0 }
  0xab   : > { %v612_v16 = vadd.f32 %v879_v8, %v600_v14 }
  0xad   : > { %v620_v18 = vmax.f32 %v612_v16, 0.0 }
  0xae   : > { %v429_v19 = vpop.f32.mrf.mxu3 }
  0xaf   : > { %v844_v20 = vpack.c.bf16 %v620_v18, %v619_v17  ;;  %v495_v23 = vadd.f32 %v494_v15, %v429_v19 }
  0xb0   : > { %v587_v21 = vpop.f32.mrf.mxu2  ;;  %v486_v22 = vpop.f32.mrf.mxu0 }
  0xb1   : > { %856 = vst [vmem:[%s1030_s17 + $0x8] sm:$0xff] %v844_v20   ;;  %v496_v24 = vpop.f32.mrf.mxu1  ;;  %v601_v25 = vadd.f32 %v587_v21, %v495_v23  ;;  %v487_v39 = vadd.f32 %v486_v22, %v421_v4 }
  0xb3   : > { %v613_v30 = vadd.f32 %v879_v8, %v601_v25 }
  0xb5   : > { %v621_v35 = vmax.f32 %v613_v30, 0.0 }
  0xb6   : > { %v431_v26 = vpop.f32.mrf.mxu3 }
  0xb7   : > { %v497_v27 = vadd.f32 %v496_v24, %v431_v26 }
  0xb8   : > { %v589_v28 = vpop.f32.mrf.mxu2  ;;  %v577_v29 = vpop.f32.mrf.mxu0 }
  0xb9   : > { %v602_v31 = vadd.f32 %v589_v28, %v497_v27  ;;  %v499_v34 = vpop.f32.mrf.mxu1  ;;  %v597_v37 = vadd.f32 %v577_v29, %v485_v32 }
  0xbb   : > { %v614_v33 = vadd.f32 %v879_v8, %v602_v31  ;;  %v609_v43 = vadd.f32 %v879_v8, %v597_v37 }
  0xbd   : > { %v622_v36 = vmax.f32 %v614_v33, 0.0  ;;  %v617_v47 = vmax.f32 %v609_v43, 0.0 }
  0xbe   : > { %v434_v38 = vpop.f32.mrf.mxu3 }
  0xbf   : > { %v849_v40 = vpack.c.bf16 %v622_v36, %v621_v35  ;;  %v500_v44 = vadd.f32 %v499_v34, %v434_v38 }
  0xc0   : > { %v592_v41 = vpop.f32.mrf.mxu2  ;;  %v579_v42 = vpop.f32.mrf.mxu0 }
  0xc1   : > { %857 = vst [vmem:[%s1030_s17 + $0x10] sm:$0xff] %v849_v40   ;;  %v598_v45 = vadd.f32 %v579_v42, %v487_v39  ;;  %v603_v48 = vadd.f32 %v592_v41, %v500_v44  ;;  %v501_v50 = vpop.f32.mrf.mxu1 }
  0xc3   : > { %v610_v46 = vadd.f32 %v879_v8, %v598_v45  ;;  %v615_v55 = vadd.f32 %v879_v8, %v603_v48 }
  0xc5   : > { %v618_v49 = vmax.f32 %v610_v46, 0.0  ;;  %v623_v58 = vmax.f32 %v615_v55, 0.0 }
  0xc6   : > { %v436_v51 = vpop.f32.mrf.mxu3 }
  0xc7   : > { %v839_v52 = vpack.c.bf16 %v618_v49, %v617_v47  ;;  %v502_v53 = vadd.f32 %v501_v50, %v436_v51 }
  0xc8   : > { %v594_v54 = vpop.f32.mrf.mxu2 }
  0xc9   : > { %840 = vst [vmem:[%s1030_s17] sm:$0xff] %v839_v52   ;;  %v604_v56 = vadd.f32 %v594_v54, %v502_v53 }
  0xcb   : > { %v616_v57 = vadd.f32 %v879_v8, %v604_v56 }
  0xcd   : > { %v624_v59 = vmax.f32 %v616_v57, 0.0 }
  0xcf   : > { %v854_v60 = vpack.c.bf16 %v624_v59, %v623_v58 }
  0xd1   : > { %858 = vst [vmem:[%s1030_s17 + $0x18] sm:$0xff] %v854_v60  }
  0xd2 PF: > { %s16_s21 = sadd.s32 1, %s886_s21  }
  0xd3   : > { %p13_p6 = scmp.ge.s32.totalorder %s16_s21, 4  }
  0xd5   :  { %15 = sbr.rel (!%p13_p6) target bundleno = 1 (0x1), region = 77 }

// kernel: change_detection_forward.24
= control target key start
LH: loop header
LB: loop body
LE: loop exit
PB: predicated region body
PF: predicated region fallthrough
CT: control target
= control target key end

     0   :  { %s827_s21 = smov 0   ;;  %s937_s0 = inlined_call_operand.vmem [shape: bf16[64,128], index: 0, kind: input, shape index: {}, may-alias: {0,1}]   ;;  %s938_s1 = inlined_call_operand.vmem [shape: bf16[64,128], index: 1, kind: input, shape index: {}, may-alias: {0,1}]   ;;  %s939_s2 = inlined_call_operand.vmem [shape: bf16[128,128], index: 2, kind: input, shape index: {}]   ;;  %s940_s3 = inlined_call_operand.vmem [shape: bf16[128,128], index: 3, kind: input, shape index: {}]   ;;  %s941_s4 = inlined_call_operand.vmem [shape: bf16[128,128], index: 4, kind: input, shape index: {}]   ;;  %s942_s5 = inlined_call_operand.vmem [shape: f32[1,128], index: 5, kind: input, shape index: {}]   ;;  %s943_s6 = inlined_call_operand.vmem [shape: bf16[32,128], index: 6, kind: output, shape index: {}]  }
   0x1 LB: > { %s625_s22 = sadd.s32 4294967295, %s790_s21   ;;  %p629_p0 = scmp.ge.s32.totalorder %s790_s21, 1  ;;  %s790_s21 = sphi %s827_s21, %s16_s21  }
   0x2   : > { %p228_p1 = scmp.lt.s32.totalorder %s790_s21, 3 }
   0x4   : > { %p229_p2 = pnand %p629_p0, %p228_p1 }
   0x5   : > { %s844_s29 = sshll.u32 (!%p229_p2), %s625_s22, 1 }
   0x6   : > { %232 = sbr.rel (%p229_p2) target bundleno = 194 (0xc2), region = 44  ;;  %p265_p3 = scmp.lt.s32.totalorder (!%p229_p2), %s844_s29, 7 }
   0x7   : > { %s743_s30 = sadd.s32 (!%p229_p2), 4, %s844_s29  ;;  %p279_p5 = scmp.lt.s32.totalorder (!%p229_p2), %s844_s29, 3 }
   0x8   : > { %p272_p4 = scmp.lt.s32.totalorder (!%p229_p2), %s743_s30, 7 }
   0xb   : > { %v761_v0 = vld [vmem:[%s940_s3 + $0x38] sm:$0xff]  ;;  %v760_v3 = vld [vmem:[%s940_s3 + $0x30] sm:$0xff]  ;;  %s266_s13 = scalar_select %p265_p3, %s844_s29, 7  ;;  %v759_v6 = vld [vmem:[%s940_s3 + $0x28] sm:$0xff] }
   0xc   : > { %v753_v1 = vld [vmem:[%s939_s2 + $0x38] sm:$0xff]  ;;  %383 = vmatpush.bf16.msra.mxu0 %v761_v0  ;;  %v752_v4 = vld [vmem:[%s939_s2 + $0x30] sm:$0xff]  ;;  %s945_s30 = smov (!%p272_p4, %s743_s30), 7  ;;  %v751_v7 = vld [vmem:[%s939_s2 + $0x28] sm:$0xff]  ;;  %s947_s29 = smov (!%p279_p5, %s844_s29), 3 }
   0xd   : > { %v769_v2 = vld [vmem:[%s941_s4 + $0x38] sm:$0xff]  ;;  %445 = vmatpush.bf16.msra.mxu1 %v753_v1  ;;  %v768_v5 = vld [vmem:[%s941_s4 + $0x30] sm:$0xff]  ;;  %v767_v8 = vld [vmem:[%s941_s4 + $0x28] sm:$0xff]  ;;  %s631_s20 = sshll.u32 %s266_s13, 2  ;;  %s633_s22 = sshll.u32 %s945_s30, 2 }
   0xe   : > { %529 = vmatpush.bf16.msra.mxu2 %v769_v2  ;;  %v758_v9 = vld [vmem:[%s940_s3 + $0x20] sm:$0xff]  ;;  %s879_s9 = scalar_lea.vmem %s937_s0, %s631_s20  ;;  %s884_s11 = scalar_lea.vmem %s938_s1, %s633_s22  ;;  %v757_v12 = vld [vmem:[%s940_s3 + $0x18] sm:$0xff]  ;;  %v756_v21 = vld [vmem:[%s940_s3 + $0x10] sm:$0xff] }
   0xf   : > { %v750_v10 = vld [vmem:[%s939_s2 + $0x20] sm:$0xff]  ;;  %v749_v13 = vld [vmem:[%s939_s2 + $0x18] sm:$0xff]  ;;  %v748_v22 = vld [vmem:[%s939_s2 + $0x10] sm:$0xff] }
  0x10   : > { %384 = vmatpush.bf16.msra.mxu0 %v760_v3  ;;  %v766_v11 = vld [vmem:[%s941_s4 + $0x20] sm:$0xff]  ;;  %v765_v16 = vld [vmem:[%s941_s4 + $0x18] sm:$0xff]  ;;  %v764_v23 = vld [vmem:[%s941_s4 + $0x10] sm:$0xff] }
  0x11   : > { %446 = vmatpush.bf16.msra.mxu1 %v752_v4  ;;  %v284_v14 = vld [vmem:[%s879_s9] sm:$0xff]   ;;  %v755_v26 = vld [vmem:[%s940_s3 + $0x8] sm:$0xff] }
  0x12   : > { %530 = vmatpush.bf16.msra.mxu2 %v768_v5  ;;  %v286_v15 = vld [vmem:[%s884_s11] sm:$0xff]   ;;  %v288_v17 = vunpack.c.l.bf16 %v284_v14  ;;  %v289_v18 = vunpack.c.h.bf16 %v284_v14  ;;  %v747_v27 = vld [vmem:[%s939_s2 + $0x8] sm:$0xff] }
  0x13   : > { %v290_v19 = vunpack.c.l.bf16 %v286_v15  ;;  %v291_v20 = vunpack.c.h.bf16 %v286_v15  ;;  %v763_v28 = vld [vmem:[%s941_s4 + $0x8] sm:$0xff]  ;;  %v754_v31 = vld [vmem:[%s940_s3] sm:$0xff] }
  0x14   : > { %385 = vmatpush.bf16.msra.mxu0 %v759_v6  ;;  %v746_v32 = vld [vmem:[%s939_s2] sm:$0xff] }
  0x15   : > { %447 = vmatpush.bf16.msra.mxu1 %v751_v7  ;;  %v292_v24 = vsub.f32 %v288_v17, %v290_v19  ;;  %v293_v25 = vsub.f32 %v289_v18, %v291_v20  ;;  %v762_v33 = vld [vmem:[%s941_s4] sm:$0xff] }
  0x16   : > { %531 = vmatpush.bf16.msra.mxu2 %v767_v8  ;;  %v744_v34 = vld [vmem:[%s879_s9] sm:$0xff]  ;;  %s635_s9 = sshll.u32 %s947_s29, 2 }
  0x17   : > { %v294_v29 = vand.u32 2147483647, %v292_v24  ;;  %v295_v30 = vand.u32 2147483647, %v293_v25  ;;  %v745_v36 = vld [vmem:[%s884_s11] sm:$0xff]  ;;  %s282_s19 = scalar_lea.vmem %s943_s6, %s635_s9 }
  0x18   : > { %386 = vmatpush.bf16.msra.mxu0 %v758_v9  ;;  %v783_v44 = vld [vmem:[%s942_s5] ss:$0 sm:$0xff] }
  0x19   : > { %448 = vmatpush.bf16.msra.mxu1 %v750_v10  ;;  %v296_v35 = vpack.c.bf16 %v295_v30, %v294_v29 }
  0x1a   : > { %532 = vmatpush.bf16.msra.mxu2 %v766_v11 }
  0x1c   : > { %387 = vmatpush.bf16.msra.mxu0 %v757_v12 }
  0x1d   : > { %449 = vmatpush.bf16.msra.mxu1 %v749_v13 }
  0x1e   : > { %533 = vmatpush.bf16.msra.mxu2 %v765_v16 }
  0x20   : > { %388 = vmatpush.bf16.msra.mxu0 %v756_v21 }
  0x21   : > { %450 = vmatpush.bf16.msra.mxu1 %v748_v22 }
  0x22   : > { %534 = vmatpush.bf16.msra.mxu2 %v764_v23 }
  0x24   : > { %389 = vmatpush.bf16.msra.mxu0 %v755_v26 }
  0x25   : > { %451 = vmatpush.bf16.msra.mxu1 %v747_v27 }
  0x26   : > { %535 = vmatpush.bf16.msra.mxu2 %v763_v28 }
  0x28   : > { %390 = vmatpush.bf16.msra.mxu0 %v754_v31 }
  0x29   : > { %452 = vmatpush.bf16.msra.mxu1 %v746_v32 }
  0x2a   : > { %536 = vmatpush.bf16.msra.mxu2 %v762_v33 }
  0x2b   : > { %391 = vmatmul.bf16.vlgmr.msra.gmra.mxu0 %v744_v34 }
  0x2c   : > { %453 = vmatmul.bf16.vlgmr.msra.gmra.mxu1 %v296_v35 }
  0x2d   : > { %537 = vmatmul.bf16.vlgmr.msra.gmra.mxu2 %v745_v36 }
  0xa8   : > { %v392_v37 = vpop.f32.mrf.mxu0 }
  0xa9   : > { %v454_v38 = vpop.f32.mrf.mxu1 }
  0xaa   : > { %v455_v40 = vadd.f32 %v454_v38, %v392_v37 }
  0xb0   : > { %v538_v39 = vpop.f32.mrf.mxu2  ;;  %v394_v41 = vpop.f32.mrf.mxu0 }
  0xb1   : > { %v456_v42 = vpop.f32.mrf.mxu1  ;;  %v543_v43 = vadd.f32 %v538_v39, %v455_v40 }
  0xb2   : > { %v457_v45 = vadd.f32 %v456_v42, %v394_v41 }
  0xb3   : > { %v549_v47 = vadd.f32 %v783_v44, %v543_v43 }
  0xb5   : > { %v551_v50 = vmax.f32 %v549_v47, 0.0 }
  0xb8   : > { %v540_v46 = vpop.f32.mrf.mxu2 }
  0xb9   : > { %v544_v48 = vadd.f32 %v540_v46, %v457_v45 }
  0xbb   : > { %v550_v49 = vadd.f32 %v783_v44, %v544_v48 }
  0xbd   : > { %v552_v51 = vmax.f32 %v550_v49, 0.0 }
  0xbf   : > { %v773_v52 = vpack.c.bf16 %v552_v51, %v551_v50 }
  0xc1   : > { %774 = vst [vmem:[%s282_s19] sm:$0xff] %v773_v52  }
  0xc2 PF: > { %s16_s21 = sadd.s32 1, %s790_s21  }
  0xc3   : > { %p13_p6 = scmp.ge.s32.totalorder %s16_s21, 4  }
  0xc5   :  { %15 = sbr.rel (!%p13_p6) target bundleno = 1 (0x1), region = 77 }

// kernel: change_detection_forward.27
= control target key start
LH: loop header
LB: loop body
LE: loop exit
PB: predicated region body
PF: predicated region fallthrough
CT: control target
= control target key end

     0   :  { %s2104_s24 = smov 0   ;;  %s3259_s0 = inlined_call_operand.vmem [shape: f32[512,32], index: 0, kind: input, shape index: {}]   ;;  %s3260_s1 = inlined_call_operand.vmem [shape: bf16[32,32], index: 1, kind: input, shape index: {}]   ;;  %s3261_s2 = inlined_call_operand.vmem [shape: f32[1,32], index: 2, kind: input, shape index: {}, may-alias: {2,4}]   ;;  %s3262_s3 = inlined_call_operand.vmem [shape: bf16[32,32], index: 3, kind: input, shape index: {}]   ;;  %s3263_s4 = inlined_call_operand.vmem [shape: f32[1,32], index: 4, kind: input, shape index: {}, may-alias: {2,4}]   ;;  %s3264_s5 = inlined_call_operand.vmem [shape: bf16[32,128], index: 5, kind: input, shape index: {}]   ;;  %s3265_s6 = inlined_call_operand.vmem [shape: f32[1,128], index: 6, kind: input, shape index: {}]   ;;  %s3266_s7 = inlined_call_operand.vmem [shape: bf16[512,128], index: 7, kind: output, shape index: {}]  }
   0x1 LB: > { %s1694_s25 = sadd.s32 4294967295, %s2062_s24   ;;  %p1698_p0 = scmp.ge.s32.totalorder %s2062_s24, 1  ;;  %s2062_s24 = sphi %s2104_s24, %s17_s24  }
   0x2   : > { %p238_p1 = scmp.lt.s32.totalorder %s2062_s24, 3 }
   0x4   : > { %p239_p2 = pnand %p1698_p0, %p238_p1 }
   0x5   : > { %s1699_s28 = sshll.u32 (!%p239_p2), %s1694_s25, 5 }
   0x6   : > { %242 = sbr.rel (%p239_p2) target bundleno = 672 (0x2a0), region = 48  ;;  %p271_p3 = scmp.lt.s32.totalorder (!%p239_p2), %s1699_s28, 63 }
   0xb   : > { %v1810_v0 = vld [vmem:[%s3260_s1 + $0x8] sm:$0xff]  ;;  %v1809_v1 = vld [vmem:[%s3260_s1] sm:$0xff]  ;;  %s3376_s28 = smov (!%p271_p3, %s1699_s28), 63  ;;  %vm351_vm0 = vcmask 261120  }
   0xc   : > { %406 = vmatpush.bf16.msra.mxu0 %v1810_v0  ;;  %1910 = vmatpush.bf16.msra.mxu3 %v1810_v0  ;;  %s1700_s8 = sshll.u32 %s3376_s28, 3  ;;  %v1812_v35 = vld [vmem:[%s3262_s3 + $0x8] sm:$0xff]  ;;  %v1811_v36 = vld [vmem:[%s3262_s3] sm:$0xff]  ;;  %s1702_s30 = sshll.u32 %s3376_s28, 2 }
   0xd   : > { %s2124_s11 = scalar_lea.vmem %s3259_s0, %s1700_s8  ;;  %611 = vmatpush.bf16.msra.mxu1 %v1812_v35  ;;  %v2173_v44 = vld [vmem:[%s3261_s2] ss:$0 sm:$0xff]  ;;  %s3149_s9 = scalar_lea.vmem %s3266_s7, %s1702_s30 }
   0xe   : > { %v283_v2 = vld [vmem:[%s2124_s11] sm:$0xff]  ;;  %v284_v3 = vld [vmem:[%s2124_s11 + $0x8] sm:$0xff]  ;;  %v285_v8 = vld [vmem:[%s2124_s11 + $0x10] sm:$0xff] }
   0xf   : > { %v307_v4 = vld [vmem:[%s2124_s11 + $0xc0] sm:$0xff]  ;;  %v315_v5 = vpack.c.bf16 %v284_v3, %v283_v2  ;;  %v308_v6 = vld [vmem:[%s2124_s11 + $0xc8] sm:$0xff]  ;;  %v286_v9 = vld [vmem:[%s2124_s11 + $0x18] sm:$0xff] }
  0x10   : > { %407 = vmatpush.bf16.msra.mxu0 %v1809_v1  ;;  %1911 = vmatpush.bf16.msra.mxu3 %v1809_v1  ;;  %v327_v7 = vpack.c.bf16 %v308_v6, %v307_v4  ;;  %v309_v10 = vld [vmem:[%s2124_s11 + $0xd0] sm:$0xff]  ;;  %v310_v11 = vld [vmem:[%s2124_s11 + $0xd8] sm:$0xff]  ;;  %v316_v12 = vpack.c.bf16 %v286_v9, %v285_v8  ;;  %v287_v14 = vld [vmem:[%s2124_s11 + $0x20] sm:$0xff] }
  0x11   : > { %v328_v13 = vpack.c.bf16 %v310_v11, %v309_v10  ;;  %v288_v15 = vld [vmem:[%s2124_s11 + $0x28] sm:$0xff]  ;;  %v311_v16 = vld [vmem:[%s2124_s11 + $0xe0] sm:$0xff]  ;;  %v289_v20 = vld [vmem:[%s2124_s11 + $0x30] sm:$0xff]  ;;  %612 = vmatpush.bf16.msra.mxu1 %v1811_v36 }
  0x12   : > { %v312_v17 = vld [vmem:[%s2124_s11 + $0xe8] sm:$0xff]  ;;  %v317_v18 = vpack.c.bf16 %v288_v15, %v287_v14  ;;  %v290_v21 = vld [vmem:[%s2124_s11 + $0x38] sm:$0xff]  ;;  %v313_v22 = vld [vmem:[%s2124_s11 + $0xf0] sm:$0xff] }
  0x13   : > { %1711 = vmatmul.msk.bf16.vlgmr.msra.gmra.mxu0 %vm351_vm0, %v315_v5  ;;  %1723 = vmatmul.msk.bf16.vlgmr.msra.gmra.mxu3 %vm351_vm0, %v327_v7  ;;  %v329_v19 = vpack.c.bf16 %v312_v17, %v311_v16  ;;  %v314_v23 = vld [vmem:[%s2124_s11 + $0xf8] sm:$0xff]  ;;  %v318_v24 = vpack.c.bf16 %v290_v21, %v289_v20  ;;  %v291_v26 = vld [vmem:[%s2124_s11 + $0x40] sm:$0xff]  ;;  %v292_v27 = vld [vmem:[%s2124_s11 + $0x48] sm:$0xff] }
  0x14   : > { %v330_v25 = vpack.c.bf16 %v314_v23, %v313_v22  ;;  %v319_v28 = vpack.c.bf16 %v292_v27, %v291_v26  ;;  %v293_v29 = vld [vmem:[%s2124_s11 + $0x50] sm:$0xff]  ;;  %v294_v30 = vld [vmem:[%s2124_s11 + $0x58] sm:$0xff]  ;;  %v295_v32 = vld [vmem:[%s2124_s11 + $0x60] sm:$0xff]  ;;  %1912 = vmatpush.bf16.msrb.mxu3 %v1812_v35 }
  0x15   : > { %v320_v31 = vpack.c.bf16 %v294_v30, %v293_v29  ;;  %v296_v33 = vld [vmem:[%s2124_s11 + $0x68] sm:$0xff]  ;;  %v297_v37 = vld [vmem:[%s2124_s11 + $0x70] sm:$0xff]  ;;  %v298_v38 = vld [vmem:[%s2124_s11 + $0x78] sm:$0xff] }
  0x16   : > { %v321_v34 = vpack.c.bf16 %v296_v33, %v295_v32  ;;  %v322_v39 = vpack.c.bf16 %v298_v38, %v297_v37  ;;  %v299_v40 = vld [vmem:[%s2124_s11 + $0x80] sm:$0xff]  ;;  %v300_v41 = vld [vmem:[%s2124_s11 + $0x88] sm:$0xff]  ;;  %v301_v52 = vld [vmem:[%s2124_s11 + $0x90] sm:$0xff] }
  0x17   : > { %v323_v42 = vpack.c.bf16 %v300_v41, %v299_v40  ;;  %v302_v53 = vld [vmem:[%s2124_s11 + $0x98] sm:$0xff]  ;;  %v303_v5 = vld [vmem:[%s2124_s11 + $0xa0] sm:$0xff]  ;;  %v304_v6 = vld [vmem:[%s2124_s11 + $0xa8] sm:$0xff] }
  0x18   : > { %1913 = vmatpush.bf16.msrb.mxu3 %v1811_v36  ;;  %v324_v56 = vpack.c.bf16 %v302_v53, %v301_v52  ;;  %v325_v9 = vpack.c.bf16 %v304_v6, %v303_v5  ;;  %v305_v22 = vld [vmem:[%s2124_s11 + $0xb0] sm:$0xff]  ;;  %v306_v23 = vld [vmem:[%s2124_s11 + $0xb8] sm:$0xff] }
  0x19   : > { %v326_v26 = vpack.c.bf16 %v306_v23, %v305_v22 }
  0x23   : > { %1712 = vmatmul.msk.bf16.gmra.mxu0 %vm351_vm0, %v316_v12  ;;  %1724 = vmatmul.msk.bf16.gmra.mxu3 %vm351_vm0, %v328_v13 }
  0x33   : > { %1713 = vmatmul.msk.bf16.gmra.mxu0 %vm351_vm0, %v317_v18  ;;  %1725 = vmatmul.msk.bf16.gmra.mxu3 %vm351_vm0, %v329_v19 }
  0x43   : > { %1714 = vmatmul.msk.bf16.gmra.mxu0 %vm351_vm0, %v318_v24  ;;  %1726 = vmatmul.msk.bf16.gmra.mxu3 %vm351_vm0, %v330_v25 }
  0x53   : > { %1715 = vmatmul.msk.bf16.gmra.mxu0 %vm351_vm0, %v319_v28 }
  0x63   : > { %1716 = vmatmul.msk.bf16.gmra.mxu0 %vm351_vm0, %v320_v31 }
  0x73   : > { %1717 = vmatmul.msk.bf16.gmra.mxu0 %vm351_vm0, %v321_v34 }
  0x83   : > { %1718 = vmatmul.msk.bf16.gmra.mxu0 %vm351_vm0, %v322_v39 }
  0x90   : > { %v409_v43 = vpop.f32.mrf.mxu0 }
  0x91   : > { %v2177_v45 = vadd.f32 %v2173_v44, %v409_v43 }
  0x93   : > { %1719 = vmatmul.msk.bf16.gmra.mxu0 %vm351_vm0, %v323_v42  ;;  %v489_v49 = vmax.f32 %v2177_v45, 0.0 }
  0x96   : > { %v469_v46 = vpop.f32.mrf.mxu3 }
  0x97   : > { %v2185_v51 = vadd.f32 %v2173_v44, %v469_v46 }
  0x98   : > { %v411_v47 = vpop.f32.mrf.mxu0 }
  0x99   : > { %v2180_v48 = vadd.f32 %v2173_v44, %v411_v47  ;;  %v513_v57 = vmax.f32 %v2185_v51, 0.0 }
  0x9b   : > { %v490_v50 = vmax.f32 %v2180_v48, 0.0 }
  0x9d   : > { %v521_v54 = vpack.c.bf16 %v490_v50, %v489_v49 }
  0x9e   : > { %v471_v55 = vpop.f32.mrf.mxu3 }
  0x9f   : > { %1735 = vmatmul.msk.bf16.vlgmr.msra.gmra.mxu1 %vm351_vm0, %v521_v54  ;;  %v2196_v58 = vadd.f32 %v2173_v44, %v471_v55 }
  0xa0   : > { %v414_v59 = vpop.f32.mrf.mxu0 }
  0xa1   : > { %v3293_v60 = vmax.f32 %v2196_v58, 0.0  ;;  %v2206_v62 = vadd.f32 %v2173_v44, %v414_v59 }
  0xa3   : > { %1720 = vmatmul.msk.bf16.gmra.mxu0 %vm351_vm0, %v324_v56  ;;  %v533_v61 = vpack.c.bf16 %v3293_v60, %v513_v57  ;;  %v3292_v2 = vmax.f32 %v2206_v62, 0.0 }
  0xa5   : > { %1747 = vmatmul.msk.bf16.vlgmr.msrb.gmra.mxu3 %vm351_vm0, %v533_v61 }
  0xa6   : > { %v474_v63 = vpop.f32.mrf.mxu3 }
  0xa7   : > { %v2214_v4 = vadd.f32 %v2173_v44, %v474_v63 }
  0xa8   : > { %v416_v0 = vpop.f32.mrf.mxu0 }
  0xa9   : > { %v2209_v1 = vadd.f32 %v2173_v44, %v416_v0  ;;  %v3288_v10 = vmax.f32 %v2214_v4, 0.0 }
  0xab   : > { %v3289_v3 = vmax.f32 %v2209_v1, 0.0 }
  0xad   : > { %v522_v7 = vpack.c.bf16 %v3289_v3, %v3292_v2 }
  0xae   : > { %v476_v8 = vpop.f32.mrf.mxu3 }
  0xaf   : > { %1736 = vmatmul.msk.bf16.gmra.mxu1 %vm351_vm0, %v522_v7  ;;  %v2225_v11 = vadd.f32 %v2173_v44, %v476_v8 }
  0xb0   : > { %v419_v12 = vpop.f32.mrf.mxu0 }
  0xb1   : > { %v3287_v13 = vmax.f32 %v2225_v11, 0.0  ;;  %v2235_v15 = vadd.f32 %v2173_v44, %v419_v12 }
  0xb3   : > { %1721 = vmatmul.msk.bf16.gmra.mxu0 %vm351_vm0, %v325_v9  ;;  %v534_v14 = vpack.c.bf16 %v3287_v13, %v3288_v10  ;;  %v3286_v19 = vmax.f32 %v2235_v15, 0.0 }
  0xb5   : > { %1748 = vmatmul.msk.bf16.gmra.mxu3 %vm351_vm0, %v534_v14 }
  0xb6   : > { %v479_v16 = vpop.f32.mrf.mxu3 }
  0xb7   : > { %v2243_v21 = vadd.f32 %v2173_v44, %v479_v16 }
  0xb8   : > { %v421_v17 = vpop.f32.mrf.mxu0 }
  0xb9   : > { %v2238_v18 = vadd.f32 %v2173_v44, %v421_v17  ;;  %v3284_v27 = vmax.f32 %v2243_v21, 0.0 }
  0xbb   : > { %v3285_v20 = vmax.f32 %v2238_v18, 0.0 }
  0xbd   : > { %v523_v24 = vpack.c.bf16 %v3285_v20, %v3286_v19 }
  0xbe   : > { %v481_v25 = vpop.f32.mrf.mxu3 }
  0xbf   : > { %1737 = vmatmul.msk.bf16.gmra.mxu1 %vm351_vm0, %v523_v24  ;;  %v2254_v28 = vadd.f32 %v2173_v44, %v481_v25 }
  0xc0   : > { %v424_v29 = vpop.f32.mrf.mxu0 }
  0xc1   : > { %v3283_v30 = vmax.f32 %v2254_v28, 0.0  ;;  %v2264_v32 = vadd.f32 %v2173_v44, %v424_v29 }
  0xc3   : > { %1722 = vmatmul.msk.bf16.gmra.mxu0 %vm351_vm0, %v326_v26  ;;  %v535_v31 = vpack.c.bf16 %v3283_v30, %v3284_v27  ;;  %v3282_v36 = vmax.f32 %v2264_v32, 0.0 }
  0xc5   : > { %1749 = vmatmul.msk.bf16.gmra.mxu3 %vm351_vm0, %v535_v31 }
  0xc6   : > { %v484_v33 = vpop.f32.mrf.mxu3 }
  0xc7   : > { %v2272_v38 = vadd.f32 %v2173_v44, %v484_v33 }
  0xc8   : > { %v426_v34 = vpop.f32.mrf.mxu0 }
  0xc9   : > { %v2267_v35 = vadd.f32 %v2173_v44, %v426_v34  ;;  %v3280_v41 = vmax.f32 %v2272_v38, 0.0 }
  0xcb   : > { %v3281_v37 = vmax.f32 %v2267_v35, 0.0 }
  0xcd   : > { %v524_v39 = vpack.c.bf16 %v3281_v37, %v3282_v36 }
  0xce   : > { %v486_v40 = vpop.f32.mrf.mxu3 }
  0xcf   : > { %1738 = vmatmul.msk.bf16.gmra.mxu1 %vm351_vm0, %v524_v39  ;;  %v2281_v42 = vadd.f32 %v2173_v44, %v486_v40 }
  0xd0   : > { %v429_v43 = vpop.f32.mrf.mxu0 }
  0xd1   : > { %v3279_v46 = vmax.f32 %v2281_v42, 0.0  ;;  %v2290_v52 = vadd.f32 %v2173_v44, %v429_v43 }
  0xd3   : > { %v536_v47 = vpack.c.bf16 %v3279_v46, %v3280_v41  ;;  %v3278_v55 = vmax.f32 %v2290_v52, 0.0 }
  0xd5   : > { %1750 = vmatmul.msk.bf16.gmra.mxu3 %vm351_vm0, %v536_v47 }
  0xd8   : > { %v431_v53 = vpop.f32.mrf.mxu0 }
  0xd9   : > { %v2293_v54 = vadd.f32 %v2173_v44, %v431_v53  ;;  %v2350_v53 = vld [vmem:[%s3263_s4] ss:$0 sm:$0xff] }
  0xdb   : > { %v3277_v56 = vmax.f32 %v2293_v54, 0.0 }
  0xdd   : > { %v525_v59 = vpack.c.bf16 %v3277_v56, %v3278_v55 }
  0xdf   : > { %1739 = vmatmul.msk.bf16.gmra.mxu1 %vm351_vm0, %v525_v59 }
  0xe0   : > { %v434_v61 = vpop.f32.mrf.mxu0 }
  0xe1   : > { %v2303_v63 = vadd.f32 %v2173_v44, %v434_v61 }
  0xe3   : > { %v3273_v6 = vmax.f32 %v2303_v63, 0.0 }
  0xe8   : > { %v436_v0 = vpop.f32.mrf.mxu0 }
  0xe9   : > { %v2306_v5 = vadd.f32 %v2173_v44, %v436_v0 }
  0xeb   : > { %v3274_v7 = vmax.f32 %v2306_v5, 0.0 }
  0xed   : > { %v526_v8 = vpack.c.bf16 %v3274_v7, %v3273_v6 }
  0xef   : > { %1740 = vmatmul.msk.bf16.gmra.mxu1 %vm351_vm0, %v526_v8 }
  0xf0   : > { %v439_v9 = vpop.f32.mrf.mxu0 }
  0xf1   : > { %v2316_v12 = vadd.f32 %v2173_v44, %v439_v9 }
  0xf3   : > { %v3271_v17 = vmax.f32 %v2316_v12, 0.0 }
  0xf8   : > { %v441_v14 = vpop.f32.mrf.mxu0 }
  0xf9   : > { %v2319_v16 = vadd.f32 %v2173_v44, %v441_v14 }
  0xfb   : > { %v3272_v22 = vmax.f32 %v2319_v16, 0.0 }
  0xfd   : > { %v527_v23 = vpack.c.bf16 %v3272_v22, %v3271_v17 }
  0xff   : > { %1741 = vmatmul.msk.bf16.gmra.mxu1 %vm351_vm0, %v527_v23 }
 0x100   : > { %v444_v24 = vpop.f32.mrf.mxu0 }
 0x101   : > { %v2329_v25 = vadd.f32 %v2173_v44, %v444_v24  ;;  %v1814_v24 = vld [vmem:[%s3264_s5 + $0x8] sm:$0xff] }
 0x102   : > { %1491 = vmatpush.bf16.msra.mxu2 %v1814_v24  ;;  %1914 = vmatpush.bf16.msra.mxu3 %v1814_v24 }
 0x103   : > { %v3269_v31 = vmax.f32 %v2329_v25, 0.0 }
 0x108   : > { %v446_v26 = vpop.f32.mrf.mxu0 }
 0x109   : > { %v2332_v29 = vadd.f32 %v2173_v44, %v446_v26 }
 0x10b   : > { %v3270_v33 = vmax.f32 %v2332_v29, 0.0 }
 0x10d   : > { %v528_v34 = vpack.c.bf16 %v3270_v33, %v3269_v31  ;;  %v1302_v33 = vlaneseq }
 0x10f   : > { %1742 = vmatmul.msk.bf16.gmra.mxu1 %vm351_vm0, %v528_v34  ;;  %v2384_v6 = vand.u32 127, %v1302_v33 }
 0x110   : > { %v449_v39 = vpop.f32.mrf.mxu0 }
 0x111   : > { %v2342_v40 = vadd.f32 %v2173_v44, %v449_v39  ;;  %vm1304_vm1 = vcmp.ge.s32.totalorder %v2384_v6, 16 }
 0x113   : > { %v3267_v59 = vmax.f32 %v2342_v40, 0.0 }
 0x118   : > { %v451_v43 = vpop.f32.mrf.mxu0 }
 0x119   : > { %v2345_v47 = vadd.f32 %v2173_v44, %v451_v43 }
 0x11b   : > { %v3268_v61 = vmax.f32 %v2345_v47, 0.0 }
 0x11c   : > { %v614_v0 = vpop.f32.mrf.mxu1 }
 0x11d   : > { %v529_v8 = vpack.c.bf16 %v3268_v61, %v3267_v59  ;;  %v615_v9 = vadd.f32 %v2350_v53, %v614_v0  ;;  %v1813_v0 = vld [vmem:[%s3264_s5] sm:$0xff] }
 0x11e   : > { %1492 = vmatpush.bf16.msra.mxu2 %v1813_v0  ;;  %1915 = vmatpush.bf16.msra.mxu3 %v1813_v0 }
 0x11f   : > { %v1751_v14 = vmul.f32 -1.442695, %v615_v9  ;;  %1743 = vmatmul.msk.bf16.gmra.mxu1 %vm351_vm0, %v529_v8 }
 0x120   : > { %v454_v23 = vpop.f32.mrf.mxu0 }
 0x121   : > { %1927 = vpow2.f32 %v1751_v14  ;;  %v2365_v43 = vadd.f32 %v2173_v44, %v454_v23 }
 0x123   : > { %v3275_v23 = vmax.f32 %v2365_v43, 0.0 }
 0x124   : > { %v616_v26 = vpop.f32.mrf.mxu1 }
 0x125   : > { %v617_v34 = vadd.f32 %v2350_v53, %v616_v26 }
 0x127   : > { %v1928_v39 = vpop.eup %1927  ;;  %v1752_v59 = vmul.f32 -1.442695, %v617_v34 }
 0x128   : > { %v790_v8 = vadd.f32 1.0, %v1928_v39  ;;  %v456_v9 = vpop.f32.mrf.mxu0  ;;  %v674_v61 = vpop.f32.mrf.mxu3 }
 0x129   : > { %1929 = vpow2.f32 %v1752_v59  ;;  %v2371_v14 = vadd.f32 %v2173_v44, %v456_v9  ;;  %v675_v24 = vadd.f32 %v2350_v53, %v674_v61 }
 0x12a   : > { %1931 = vrcp.f32 %v790_v8  ;;  %vm827_vm2 = vweird.f32 %v790_v8 }
 0x12b   : > { %v3276_v26 = vmax.f32 %v2371_v14, 0.0  ;;  %v1775_v34 = vmul.f32 -1.442695, %v675_v24 }
 0x12c   : > { %v619_v31 = vpop.f32.mrf.mxu1 }
 0x12d   : > { %v530_v59 = vpack.c.bf16 %v3276_v26, %v3275_v23  ;;  %v620_v39 = vadd.f32 %v2350_v53, %v619_v31  ;;  %1933 = vpow2.f32 %v1775_v34  ;;  %v831_v26 = vand.u32 2147483647, %v790_v8 }
 0x12e   : > { %v833_v34 = vand.u32 2147483648, %v790_v8 }
 0x12f   : > { %v1930_v9 = vpop.eup %1929  ;;  %v1753_v0 = vmul.f32 -1.442695, %v620_v39  ;;  %1744 = vmatmul.msk.bf16.gmra.mxu1 %vm351_vm0, %v530_v59  ;;  %vm2396_vm4 = vcmp.eq.f32.partialorder %v831_v26, 8.507059e+37 }
 0x130   : > { %v1932_v61 = vpop.eup %1931  ;;  %v2382_v17 = vadd.f32 1.0, %v1930_v9  ;;  %v459_v22 = vpop.f32.mrf.mxu0 }
 0x131   : > { %v823_v24 = vmul.f32 %v1932_v61, %v790_v8  ;;  %1935 = vpow2.f32 %v1753_v0  ;;  %v676_v7 = vpop.f32.mrf.mxu3  ;;  %v2389_v39 = vadd.f32 %v2173_v44, %v459_v22  ;;  %vm828_vm3 = vweird.f32 %v1932_v61 }
 0x132   : > { %1937 = vrcp.f32 %v2382_v17  ;;  %v677_v23 = vadd.f32 %v2350_v53, %v676_v7  ;;  %v848_v46 = vand.u32 2147483648, %v2382_v17  ;;  %vm829_vm5 = vmor %vm827_vm2, %vm828_vm3  ;;  %vm842_vm6 = vweird.f32 %v2382_v17 }
 0x133   : > { %v824_v31 = vsub.f32 1.0, %v823_v24  ;;  %v1934_v56 = vpop.eup %1933  ;;  %v834_v24 = vor.u32 1.1754944e-38, %v833_v34  ;;  %v3290_v30 = vmax.f32 %v2389_v39, 0.0 }
 0x134   : > { %v1776_v59 = vmul.f32 -1.442695, %v677_v23  ;;  %v621_v9 = vpop.f32.mrf.mxu1  ;;  %v2392_v33 = vadd.f32 1.0, %v1934_v56  ;;  %v846_v56 = vand.u32 2147483647, %v2382_v17  ;;  %v849_v20 = vor.u32 1.1754944e-38, %v848_v46 }
 0x135   : > { %v622_v0 = vadd.f32 %v2350_v53, %v621_v9  ;;  %v825_v55 = vmul.f32 %v1932_v61, %v824_v31 }
 0x136   : > { %1939 = vpow2.f32 %v1776_v59  ;;  %v1191_v23 = vand.u32 2147483647, %v2392_v33  ;;  %v1193_v31 = vand.u32 2147483648, %v2392_v33  ;;  %vm1187_vm7 = vweird.f32 %v2392_v33 }
 0x137   : > { %v1936_v22 = vpop.eup %1935  ;;  %1941 = vrcp.f32 %v2392_v33  ;;  %v1754_v59 = vmul.f32 -1.442695, %v622_v0  ;;  %v826_v26 = vadd.f32 %v1932_v61, %v825_v55  ;;  %vm2423_vm8 = vcmp.eq.f32.partialorder %v846_v56, 8.507059e+37 }
 0x138   : > { %v2403_v41 = vpop.eup %1937  ;;  %v2406_v9 = vadd.f32 1.0, %v1936_v22  ;;  %v461_v37 = vpop.f32.mrf.mxu0  ;;  %vm2427_vm9 = vcmp.eq.f32.partialorder %v1191_v23, 8.507059e+37  ;;  %v1194_v10 = vor.u32 1.1754944e-38, %v1193_v31 }
 0x139   : > { %v838_v36 = vmul.f32 %v2403_v41, %v2382_v17  ;;  %v2412_v27 = vadd.f32 %v2173_v44, %v461_v37  ;;  %v679_v34 = vpop.f32.mrf.mxu3  ;;  %v830_v0 = vsel %vm829_vm5, %v1932_v61, %v826_v26  ;;  %vm843_vm10 = vweird.f32 %v2403_v41 }
 0x13a   : > { %1943 = vrcp.f32 %v2406_v9  ;;  %v680_v55 = vadd.f32 %v2350_v53, %v679_v34  ;;  %v835_v37 = vsel %vm2396_vm4, %v834_v24, %v830_v0  ;;  %v861_v26 = vand.u32 2147483647, %v2406_v9  ;;  %vm844_vm14 = vmor %vm842_vm6, %vm843_vm10 }
 0x13b   : > { %v839_v22 = vsub.f32 1.0, %v838_v36  ;;  %1945 = vpow2.f32 %v1754_v59  ;;  %v3291_v19 = vmax.f32 %v2412_v27, 0.0  ;;  %v1305_v36 = vsel %vm1304_vm1, %v835_v37, 0.0 }
 0x13c   : > { %v1940_v13 = vpop.eup %1939  ;;  %v1777_v3 = vmul.f32 -1.442695, %v680_v55  ;;  %v624_v34 = vpop.f32.mrf.mxu1  ;;  %v1337_v31 = vadd.f32 1.0, %v1305_v36  ;;  %vm857_vm13 = vweird.f32 %v2406_v9  ;;  %vm2503_vm5 = vcmp.eq.f32.partialorder %v861_v26, 8.507059e+37 }
 0x13d   : > { %v1942_v61 = vpop.eup %1941  ;;  %v2433_v59 = vadd.f32 1.0, %v1940_v13  ;;  %v531_v7 = vpack.c.bf16 %v3291_v19, %v3290_v30  ;;  %v625_v24 = vadd.f32 %v2350_v53, %v624_v34  ;;  %v840_v23 = vmul.f32 %v2403_v41, %v839_v22 }
 0x13e   : > { %v1183_v56 = vmul.f32 %v1942_v61, %v2392_v33  ;;  %1947 = vpow2.f32 %v1777_v3  ;;  %vm1188_vm11 = vweird.f32 %v1942_v61  ;;  %v2462_v2 = vmul.f32 %v1337_v31, %v489_v49 }
 0x13f   : > { %1949 = vrcp.f32 %v2433_v59  ;;  %v1208_v13 = vand.u32 2147483648, %v2433_v59  ;;  %1745 = vmatmul.msk.bf16.gmra.mxu1 %vm351_vm0, %v531_v7  ;;  %vm1202_vm12 = vweird.f32 %v2433_v59  ;;  %v1206_v22 = vand.u32 2147483647, %v2433_v59  ;;  %vm2474_vm15 = vmor %vm1187_vm7, %vm1188_vm11 }
 0x140   : > { %v2447_v55 = vpop.eup %1943  ;;  %v1184_v0 = vsub.f32 1.0, %v1183_v56  ;;  %v1755_v3 = vmul.f32 -1.442695, %v625_v24  ;;  %v464_v37 = vpop.f32.mrf.mxu0  ;;  %v841_v34 = vadd.f32 %v2403_v41, %v840_v23 }
 0x141   : > { %v1946_v36 = vpop.eup %1945  ;;  %v853_v30 = vmul.f32 %v2447_v55, %v2406_v9  ;;  %v2455_v7 = vor.u32 1.1754944e-38, %v1208_v13  ;;  %v2458_v19 = vadd.f32 %v2173_v44, %v464_v37  ;;  %v681_v56 = vpop.f32.mrf.mxu3  ;;  %vm858_vm2 = vweird.f32 %v2447_v55 }
 0x142   : > { %v1185_v24 = vmul.f32 %v1942_v61, %v1184_v0  ;;  %v2464_v60 = vadd.f32 1.0, %v1946_v36  ;;  %1951 = vpow2.f32 %v1755_v3  ;;  %v682_v23 = vadd.f32 %v2350_v53, %v681_v56  ;;  %vm2518_vm6 = vmor %vm857_vm13, %vm858_vm2 }
 0x143   : > { %v854_v45 = vsub.f32 1.0, %v853_v30  ;;  %v845_v31 = vsel %vm844_vm14, %v2403_v41, %v841_v34  ;;  %vm2481_vm3 = vcmp.eq.f32.partialorder %v1206_v22, 8.507059e+37 }
 0x144   : > { %v1948_v0 = vpop.eup %1947  ;;  %v1186_v3 = vadd.f32 %v1942_v61, %v1185_v24  ;;  %1953 = vrcp.f32 %v2464_v60  ;;  %v1778_v17 = vmul.f32 -1.442695, %v682_v23  ;;  %v626_v33 = vpop.f32.mrf.mxu1  ;;  %v850_v36 = vsel %vm2423_vm8, %v849_v20, %v845_v31 }
 0x145   : > { %v1950_v30 = vpop.eup %1949  ;;  %v2488_v56 = vadd.f32 1.0, %v1948_v0  ;;  %v627_v41 = vadd.f32 %v2350_v53, %v626_v33  ;;  %v1306_v34 = vsel %vm1304_vm1, %v850_v36, 0.0  ;;  %v855_v22 = vmul.f32 %v2447_v55, %v854_v45 }
 0x146   : > { %v1190_v24 = vsel %vm2474_vm15, %v1942_v61, %v1186_v3  ;;  %v1198_v49 = vmul.f32 %v1950_v30, %v2433_v59  ;;  %vm1203_vm4 = vweird.f32 %v1950_v30  ;;  %1955 = vpow2.f32 %v1778_v17 }
 0x147   : > { %1957 = vrcp.f32 %v2488_v56  ;;  %v1756_v20 = vmul.f32 -1.442695, %v627_v41  ;;  %v1338_v8 = vadd.f32 1.0, %v1306_v34  ;;  %v1195_v23 = vsel %vm2427_vm9, %v1194_v10, %v1190_v24  ;;  %vm2531_vm7 = vmor %vm1202_vm12, %vm1203_vm4 }
 0x148   : > { %v1952_v31 = vpop.eup %1951  ;;  %v1199_v0 = vsub.f32 1.0, %v1198_v49  ;;  %v466_v33 = vpop.f32.mrf.mxu0  ;;  %v1329_v45 = vsel %vm1304_vm1, %v1195_v23, 0.0  ;;  %v856_v13 = vadd.f32 %v2447_v55, %v855_v22  ;;  %vm872_vm8 = vweird.f32 %v2464_v60 }
 0x149   : > { %v2507_v3 = vadd.f32 1.0, %v1952_v31  ;;  %1959 = vpow2.f32 %v1756_v20  ;;  %v2510_v17 = vadd.f32 %v2173_v44, %v466_v33  ;;  %v684_v46 = vpop.f32.mrf.mxu3  ;;  %v1370_v10 = vmul.f32 %v1338_v8, %v490_v50 }
 0x14a   : > { %v2522_v26 = vpop.eup %1953  ;;  %v1200_v36 = vmul.f32 %v1950_v30, %v1199_v0  ;;  %v685_v41 = vadd.f32 %v2350_v53, %v684_v46  ;;  %v1361_v34 = vadd.f32 1.0, %v1329_v45  ;;  %v860_v44 = vsel %vm2518_vm6, %v2447_v55, %v856_v13 }
 0x14b   : > { %v868_v50 = vmul.f32 %v2522_v26, %v2464_v60  ;;  %1961 = vrcp.f32 %v2507_v3  ;;  %v512_v22 = vmax.f32 %v2510_v17, 0.0  ;;  %v1401_v24 = vpack.c.bf16 %v1370_v10, %v2462_v2 }
 0x14c   : > { %v1956_v20 = vpop.eup %1955  ;;  %v1201_v8 = vadd.f32 %v1950_v30, %v1200_v36  ;;  %v1779_v23 = vmul.f32 -1.442695, %v685_v41  ;;  %v629_v55 = vpop.f32.mrf.mxu1  ;;  %v1393_v59 = vmul.f32 %v1361_v34, %v513_v57  ;;  %v863_v31 = vand.u32 2147483648, %v2406_v9 }
 0x14d   : > { %v2543_v0 = vpop.eup %1957  ;;  %v869_v33 = vsub.f32 1.0, %v868_v50  ;;  %v2545_v45 = vadd.f32 1.0, %v1956_v20  ;;  %v3310_v13 = vmax.f32 %v2458_v19, 0.0  ;;  %1791 = vmatmul.msk.bf16.vlgmr.msra.gmra.mxu2 %vm351_vm0, %v1401_v24  ;;  %v630_v2 = vadd.f32 %v2350_v53, %v629_v55 }
 0x14e   : > { %v1205_v51 = vsel %vm2531_vm7, %v1950_v30, %v1201_v8  ;;  %v1213_v57 = vmul.f32 %v2543_v0, %v2488_v56  ;;  %1963 = vpow2.f32 %v1779_v23  ;;  %v864_v9 = vor.u32 1.1754944e-38, %v863_v31 }
 0x14f   : > { %v532_v46 = vpack.c.bf16 %v512_v22, %v3310_v13  ;;  %v1960_v10 = vpop.eup %1959  ;;  %1965 = vrcp.f32 %v2545_v45  ;;  %v1757_v49 = vmul.f32 -1.442695, %v630_v2  ;;  %v1210_v36 = vsel %vm2481_vm3, %v2455_v7, %v1205_v51 }
 0x150   : > { %v870_v41 = vmul.f32 %v2522_v26, %v869_v33  ;;  %v1214_v34 = vsub.f32 1.0, %v1213_v57  ;;  %v2563_v48 = vadd.f32 1.0, %v1960_v10  ;;  %v1330_v30 = vsel %vm1304_vm1, %v1210_v36, 0.0 }
 0x151   : > { %1746 = vmatmul.msk.bf16.gmra.mxu1 %vm351_vm0, %v532_v46  ;;  %v865_v50 = vsel %vm2503_vm5, %v864_v9, %v860_v44  ;;  %v2569_v24 = vpop.eup %1961  ;;  %1967 = vpow2.f32 %v1757_v49  ;;  %v686_v20 = vpop.f32.mrf.mxu3  ;;  %v1362_v8 = vadd.f32 1.0, %v1330_v30  ;;  %vm873_vm9 = vweird.f32 %v2522_v26 }
 0x152   : > { %v871_v23 = vadd.f32 %v2522_v26, %v870_v41  ;;  %v2575_v7 = vmul.f32 %v2569_v24, %v2507_v3  ;;  %1969 = vrcp.f32 %v2563_v48  ;;  %v687_v37 = vadd.f32 %v2350_v53, %v686_v20  ;;  %vm2582_vm10 = vmor %vm872_vm8, %vm873_vm9 }
 0x153   : > { %v3311_v61 = vmax.f32 %v2196_v58, 0.0  ;;  %v876_v31 = vand.u32 2147483647, %v2464_v60  ;;  %v878_v33 = vand.u32 2147483648, %v2464_v60  ;;  %v1307_v13 = vsel %vm1304_vm1, %v865_v50, 0.0 }
 0x154   : > { %v1964_v46 = vpop.eup %1963  ;;  %v884_v2 = vsub.f32 1.0, %v2575_v7  ;;  %v1780_v51 = vmul.f32 -1.442695, %v687_v37  ;;  %v631_v57 = vpop.f32.mrf.mxu1  ;;  %v875_v58 = vsel %vm2582_vm10, %v2522_v26, %v871_v23  ;;  %v1339_v60 = vadd.f32 1.0, %v1307_v13 }
 0x155   : > { %v1394_v44 = vmul.f32 %v1362_v8, %v3311_v61  ;;  %v2594_v9 = vpop.eup %1965  ;;  %v2596_v10 = vadd.f32 1.0, %v1964_v46  ;;  %v632_v49 = vadd.f32 %v2350_v53, %v631_v57  ;;  %vm877_vm11 = vcmp.eq.f32.partialorder %v876_v31, 8.507059e+37 }
 0x156   : > { %v1228_v41 = vmul.f32 %v2594_v9, %v2545_v45  ;;  %1971 = vpow2.f32 %v1780_v51  ;;  %v879_v30 = vor.u32 1.1754944e-38, %v878_v33  ;;  %v1215_v26 = vmul.f32 %v2543_v0, %v1214_v34 }
 0x157   : > { %v1413_v36 = vpack.c.bf16 %v1394_v44, %v1393_v59  ;;  %v1968_v50 = vpop.eup %1967  ;;  %1973 = vrcp.f32 %v2596_v10  ;;  %v1758_v20 = vmul.f32 -1.442695, %v632_v49  ;;  %vm1217_vm12 = vweird.f32 %v2488_v56 }
 0x158   : > { %v2605_v8 = vpop.eup %1969  ;;  %v1229_v59 = vsub.f32 1.0, %v1228_v41  ;;  %v2607_v23 = vadd.f32 1.0, %v1968_v50  ;;  %v880_v37 = vsel %vm877_vm11, %v879_v30, %v875_v58  ;;  %vm1218_vm13 = vweird.f32 %v2543_v0 }
 0x159   : > { %1803 = vmatmul.msk.bf16.vlgmr.msra.gmra.mxu3 %vm351_vm0, %v1413_v36  ;;  %1975 = vpow2.f32 %v1758_v20  ;;  %v689_v61 = vpop.f32.mrf.mxu3  ;;  %v1308_v44 = vsel %vm1304_vm1, %v880_v37, 0.0  ;;  %v3314_v55 = vmax.f32 %v2206_v62, 0.0  ;;  %v1216_v34 = vadd.f32 %v2543_v0, %v1215_v26  ;;  %vm2615_vm14 = vmor %vm1217_vm12, %vm1218_vm13 }
 0x15a   : > { %1977 = vrcp.f32 %v2607_v23  ;;  %v690_v13 = vadd.f32 %v2350_v53, %v689_v61  ;;  %v1340_v46 = vadd.f32 1.0, %v1308_v44  ;;  %v1221_v51 = vand.u32 2147483647, %v2488_v56 }
 0x15b   : > { %v1371_v31 = vmul.f32 %v1339_v60, %v3314_v55  ;;  %v2624_v57 = vmul.f32 %v2605_v8, %v2563_v48  ;;  %v1220_v62 = vsel %vm2615_vm14, %v2543_v0, %v1216_v34  ;;  %v1223_v58 = vand.u32 2147483648, %v2488_v56 }
 0x15c   : > { %v1230_v49 = vmul.f32 %v2594_v9, %v1229_v59  ;;  %v1972_v36 = vpop.eup %1971  ;;  %v1781_v60 = vmul.f32 -1.442695, %v690_v13  ;;  %v3317_v41 = vmax.f32 %v2209_v1, 0.0  ;;  %v634_v50 = vpop.f32.mrf.mxu1  ;;  %vm1222_vm15 = vcmp.eq.f32.partialorder %v1221_v51, 8.507059e+37 }
 0x15d   : > { %vm1232_vm2 = vweird.f32 %v2545_v45  ;;  %v2634_v20 = vpop.eup %1973  ;;  %v2636_v26 = vadd.f32 1.0, %v1972_v36  ;;  %v635_v37 = vadd.f32 %v2350_v53, %v634_v50  ;;  %v1224_v0 = vor.u32 1.1754944e-38, %v1223_v58 }
 0x15e   : > { %v1372_v30 = vmul.f32 %v1340_v46, %v3317_v41  ;;  %v1231_v56 = vadd.f32 %v2594_v9, %v1230_v49  ;;  %v2642_v59 = vmul.f32 %v2634_v20, %v2596_v10  ;;  %1979 = vpow2.f32 %v1781_v60 }
 0x15f   : > { %vm1233_vm3 = vweird.f32 %v2594_v9  ;;  %v1976_v61 = vpop.eup %1975  ;;  %1981 = vrcp.f32 %v2636_v26  ;;  %v1759_v44 = vmul.f32 -1.442695, %v635_v37  ;;  %v1225_v55 = vsel %vm1222_vm15, %v1224_v0, %v1220_v62 }
 0x160   : > { %v1402_v1 = vpack.c.bf16 %v1372_v30, %v1371_v31  ;;  %vm2646_vm4 = vmor %vm1232_vm2, %vm1233_vm3  ;;  %v1236_v33 = vand.u32 2147483647, %v2545_v45  ;;  %v2651_v13 = vpop.eup %1977  ;;  %v899_v46 = vsub.f32 1.0, %v2624_v57  ;;  %v2654_v51 = vadd.f32 1.0, %v1976_v61 }
 0x161   : > { %v1235_v31 = vsel %vm2646_vm4, %v2594_v9, %v1231_v56  ;;  %v1238_v62 = vand.u32 2147483648, %v2545_v45  ;;  %v2663_v58 = vmul.f32 %v2651_v13, %v2607_v23  ;;  %1983 = vpow2.f32 %v1759_v44  ;;  %v691_v49 = vpop.f32.mrf.mxu3 }
 0x162   : > { %1792 = vmatmul.msk.bf16.gmra.mxu2 %vm351_vm0, %v1402_v1  ;;  %vm1237_vm5 = vcmp.eq.f32.partialorder %v1236_v33, 8.507059e+37  ;;  %v1331_v57 = vsel %vm1304_vm1, %v1225_v55, 0.0  ;;  %1985 = vrcp.f32 %v2654_v51  ;;  %v692_v36 = vadd.f32 %v2350_v53, %v691_v49 }
 0x163   : > { %v1239_v60 = vor.u32 1.1754944e-38, %v1238_v62  ;;  %v1363_v41 = vadd.f32 1.0, %v1331_v57  ;;  %v1244_v9 = vsub.f32 1.0, %v2642_v59  ;;  %v914_v45 = vsub.f32 1.0, %v2663_v58 }
 0x164   : > { %v885_v30 = vmul.f32 %v2569_v24, %v884_v2  ;;  %vm887_vm6 = vweird.f32 %v2507_v3  ;;  %v1980_v50 = vpop.eup %1979  ;;  %v1782_v37 = vmul.f32 -1.442695, %v692_v36  ;;  %v636_v0 = vpop.f32.mrf.mxu1  ;;  %vm888_vm7 = vweird.f32 %v2569_v24 }
 0x165   : > { %v1240_v56 = vsel %vm1237_vm5, %v1239_v60, %v1235_v31  ;;  %v891_v1 = vand.u32 2147483647, %v2507_v3  ;;  %v2677_v61 = vpop.eup %1981  ;;  %v2679_v44 = vadd.f32 1.0, %v1980_v50  ;;  %v637_v59 = vadd.f32 %v2350_v53, %v636_v0  ;;  %vm2692_vm8 = vmor %vm887_vm6, %vm888_vm7 }
 0x166   : > { %v1332_v7 = vsel %vm1304_vm1, %v1240_v56, 0.0  ;;  %v886_v2 = vadd.f32 %v2569_v24, %v885_v30  ;;  %v1258_v55 = vmul.f32 %v2677_v61, %v2636_v26  ;;  %1987 = vpow2.f32 %v1782_v37 }
 0x167   : > { %v1364_v34 = vadd.f32 1.0, %v1332_v7  ;;  %v3320_v33 = vmax.f32 %v2214_v4, 0.0  ;;  %v1984_v62 = vpop.eup %1983  ;;  %1989 = vrcp.f32 %v2679_v44  ;;  %v1760_v49 = vmul.f32 -1.442695, %v637_v59 }
 0x168   : > { %vm2696_vm9 = vcmp.eq.f32.partialorder %v891_v1, 8.507059e+37  ;;  %v893_v60 = vand.u32 2147483648, %v2507_v3  ;;  %v2701_v30 = vpop.eup %1985  ;;  %v2703_v4 = vadd.f32 1.0, %v1984_v62  ;;  %v890_v37 = vsel %vm2692_vm8, %v2569_v24, %v886_v2 }
 0x169   : > { %v1395_v31 = vmul.f32 %v1363_v41, %v3320_v33  ;;  %v3325_v41 = vmax.f32 %v2225_v11, 0.0  ;;  %v900_v0 = vmul.f32 %v2605_v8, %v899_v46  ;;  %v1259_v56 = vsub.f32 1.0, %v1258_v55 }
 0x16a   : > { %1991 = vpow2.f32 %v1760_v49  ;;  %v894_v1 = vor.u32 1.1754944e-38, %v893_v60  ;;  %vm902_vm10 = vweird.f32 %v2563_v48  ;;  %vm903_vm11 = vweird.f32 %v2605_v8 }
 0x16b   : > { %v1396_v50 = vmul.f32 %v1364_v34, %v3325_v41  ;;  %1993 = vrcp.f32 %v2703_v4  ;;  %v901_v59 = vadd.f32 %v2605_v8, %v900_v0  ;;  %v2717_v11 = vmul.f32 %v2701_v30, %v2654_v51  ;;  %vm2721_vm12 = vmor %vm902_vm10, %vm903_vm11 }
 0x16c   : > { %v895_v24 = vsel %vm2696_vm9, %v894_v1, %v890_v37  ;;  %v906_v7 = vand.u32 2147483647, %v2563_v48  ;;  %v908_v2 = vand.u32 2147483648, %v2563_v48  ;;  %v1988_v55 = vpop.eup %1987  ;;  %v1245_v62 = vmul.f32 %v2634_v20, %v1244_v9 }
 0x16d   : > { %v1414_v3 = vpack.c.bf16 %v1396_v50, %v1395_v31  ;;  %v905_v34 = vsel %vm2721_vm12, %v2605_v8, %v901_v59  ;;  %v1309_v33 = vsel %vm1304_vm1, %v895_v24, 0.0  ;;  %v639_v31 = vpop.f32.mrf.mxu1  ;;  %vm1247_vm13 = vweird.f32 %v2596_v10  ;;  %v2735_v49 = vpop.eup %1989 }
 0x16e   : > { %v2737_v57 = vadd.f32 1.0, %v1988_v55  ;;  %vm907_vm14 = vcmp.eq.f32.partialorder %v906_v7, 8.507059e+37  ;;  %v909_v48 = vor.u32 1.1754944e-38, %v908_v2  ;;  %v1341_v36 = vadd.f32 1.0, %v1309_v33 }
 0x16f   : > { %1804 = vmatmul.msk.bf16.gmra.mxu3 %vm351_vm0, %v1414_v3  ;;  %v2741_v60 = vmul.f32 %v2735_v49, %v2679_v44  ;;  %v640_v8 = vadd.f32 %v2350_v53, %v639_v31  ;;  %v1246_v41 = vadd.f32 %v2634_v20, %v1245_v62  ;;  %vm1248_vm15 = vweird.f32 %v2634_v20 }
 0x170   : > { %v1992_v9 = vpop.eup %1991  ;;  %v929_v50 = vsub.f32 1.0, %v2717_v11  ;;  %1995 = vrcp.f32 %v2737_v57  ;;  %v910_v37 = vsel %vm907_vm14, %v909_v48, %v905_v34  ;;  %vm2748_vm2 = vmor %vm1247_vm13, %vm1248_vm15  ;;  %v1251_v1 = vand.u32 2147483647, %v2596_v10 }
 0x171   : > { %v2753_v3 = vpop.eup %1993  ;;  %v2755_v59 = vadd.f32 1.0, %v1992_v9  ;;  %v1310_v24 = vsel %vm1304_vm1, %v910_v37, 0.0  ;;  %v3330_v46 = vmax.f32 %v2235_v15, 0.0  ;;  %v1761_v11 = vmul.f32 -1.442695, %v640_v8 }
 0x172   : > { %v1274_v2 = vsub.f32 1.0, %v2741_v60  ;;  %v2764_v55 = vmul.f32 %v2753_v3, %v2703_v4  ;;  %v1342_v34 = vadd.f32 1.0, %v1310_v24  ;;  %v1250_v33 = vsel %vm2748_vm2, %v2634_v20, %v1246_v41 }
 0x173   : > { %v1373_v7 = vmul.f32 %v1341_v36, %v3330_v46  ;;  %1997 = vrcp.f32 %v2755_v59  ;;  %v1253_v31 = vand.u32 2147483648, %v2596_v10  ;;  %v1260_v62 = vmul.f32 %v2677_v61, %v1259_v56 }
 0x174   : > { %vm1262_vm3 = vweird.f32 %v2636_v26  ;;  %v3331_v15 = vmax.f32 %v2238_v18, 0.0  ;;  %1999 = vpow2.f32 %v1761_v11  ;;  %vm1252_vm4 = vcmp.eq.f32.partialorder %v1251_v1, 8.507059e+37 }
 0x175   : > { %vm1263_vm5 = vweird.f32 %v2677_v61  ;;  %v641_v36 = vpop.f32.mrf.mxu1  ;;  %v1254_v8 = vor.u32 1.1754944e-38, %v1253_v31  ;;  %v1261_v9 = vadd.f32 %v2677_v61, %v1260_v62  ;;  %v1266_v10 = vand.u32 2147483647, %v2636_v26 }
 0x176   : > { %v1374_v48 = vmul.f32 %v1342_v34, %v3331_v15  ;;  %vm2777_vm6 = vmor %vm1262_vm3, %vm1263_vm5  ;;  %v1268_v56 = vand.u32 2147483648, %v2636_v26  ;;  %v2783_v41 = vpop.eup %1995  ;;  %v944_v18 = vsub.f32 1.0, %v2764_v55  ;;  %v642_v0 = vadd.f32 %v2350_v53, %v641_v36 }
 0x177   : > { %v915_v1 = vmul.f32 %v2651_v13, %v914_v45  ;;  %v2792_v24 = vmul.f32 %v2783_v41, %v2737_v57  ;;  %v1255_v46 = vsel %vm1252_vm4, %v1254_v8, %v1250_v33  ;;  %v1265_v26 = vsel %vm2777_vm6, %v2677_v61, %v1261_v9 }
 0x178   : > { %v1403_v37 = vpack.c.bf16 %v1374_v48, %v1373_v7  ;;  %vm1267_vm7 = vcmp.eq.f32.partialorder %v1266_v10, 8.507059e+37  ;;  %v1762_v11 = vmul.f32 -1.442695, %v642_v0  ;;  %v1269_v7 = vor.u32 1.1754944e-38, %v1268_v56 }
 0x179   : > { %v1333_v34 = vsel %vm1304_vm1, %v1255_v46, 0.0  ;;  %v916_v58 = vadd.f32 %v2651_v13, %v915_v1  ;;  %v2801_v45 = vpop.eup %1997  ;;  %vm917_vm8 = vweird.f32 %v2607_v23  ;;  %vm918_vm9 = vweird.f32 %v2651_v13 }
 0x17a   : > { %1793 = vmatmul.msk.bf16.gmra.mxu2 %vm351_vm0, %v1403_v37  ;;  %v1365_v31 = vadd.f32 1.0, %v1333_v34  ;;  %v921_v33 = vand.u32 2147483647, %v2607_v23  ;;  %v2000_v61 = vpop.eup %1999  ;;  %v1289_v62 = vsub.f32 1.0, %v2792_v24  ;;  %2001 = vpow2.f32 %v1762_v11  ;;  %vm2807_vm10 = vmor %vm917_vm8, %vm918_vm9 }
 0x17b   : > { %v1270_v15 = vsel %vm1267_vm7, %v1269_v7, %v1265_v26  ;;  %v923_v36 = vand.u32 2147483648, %v2607_v23  ;;  %v2814_v8 = vmul.f32 %v2801_v45, %v2755_v59  ;;  %v2816_v9 = vadd.f32 1.0, %v2000_v61 }
 0x17c   : > { %v1334_v20 = vsel %vm1304_vm1, %v1270_v15, 0.0  ;;  %v920_v10 = vsel %vm2807_vm10, %v2651_v13, %v916_v58  ;;  %v3336_v37 = vmax.f32 %v2243_v21, 0.0  ;;  %vm922_vm11 = vcmp.eq.f32.partialorder %v921_v33, 8.507059e+37 }
 0x17d   : > { %v1366_v56 = vadd.f32 1.0, %v1334_v20  ;;  %v924_v1 = vor.u32 1.1754944e-38, %v923_v36  ;;  %2003 = vrcp.f32 %v2816_v9  ;;  %v930_v23 = vmul.f32 %v2701_v30, %v929_v50  ;;  %v644_v24 = vpop.f32.mrf.mxu1 }
 0x17e   : > { %v1397_v0 = vmul.f32 %v1365_v31, %v3336_v37  ;;  %vm932_vm12 = vweird.f32 %v2654_v51  ;;  %vm933_vm13 = vweird.f32 %v2701_v30  ;;  %v3337_v46 = vmax.f32 %v2254_v28, 0.0 }
 0x17f   : > { %v925_v11 = vsel %vm922_vm11, %v924_v1, %v920_v10  ;;  %v936_v13 = vand.u32 2147483647, %v2654_v51  ;;  %v938_v21 = vand.u32 2147483648, %v2654_v51  ;;  %v931_v7 = vadd.f32 %v2701_v30, %v930_v23  ;;  %vm934_vm14 = vmor %vm932_vm12, %vm933_vm13 }
 0x180   : > { %v1398_v26 = vmul.f32 %v1366_v56, %v3337_v46  ;;  %v1311_v34 = vsel %vm1304_vm1, %v925_v11, 0.0  ;;  %v645_v50 = vadd.f32 %v2350_v53, %v644_v24  ;;  %v1275_v58 = vmul.f32 %v2735_v49, %v1274_v2  ;;  %v2002_v31 = vpop.eup %2001 }
 0x181   : > { %vm937_vm15 = vcmp.eq.f32.partialorder %v936_v13, 8.507059e+37  ;;  %v939_v28 = vor.u32 1.1754944e-38, %v938_v21  ;;  %v1343_v61 = vadd.f32 1.0, %v1311_v34  ;;  %v2840_v15 = vadd.f32 1.0, %v2002_v31 }
 0x182   : > { %v1415_v33 = vpack.c.bf16 %v1398_v26, %v1397_v0  ;;  %v935_v51 = vsel %vm934_vm14, %v2701_v30, %v931_v7  ;;  %v1763_v48 = vmul.f32 -1.442695, %v645_v50  ;;  %v1276_v36 = vadd.f32 %v2735_v49, %v1275_v58 }
 0x183   : > { %v959_v20 = vsub.f32 1.0, %v2814_v8  ;;  %v940_v60 = vsel %vm937_vm15, %v939_v28, %v935_v51  ;;  %vm1277_vm2 = vweird.f32 %v2679_v44  ;;  %vm1278_vm3 = vweird.f32 %v2735_v49  ;;  %v2848_v2 = vpop.eup %2003 }
 0x184   : > { %1805 = vmatmul.msk.bf16.gmra.mxu3 %vm351_vm0, %v1415_v33  ;;  %2005 = vrcp.f32 %v2840_v15  ;;  %v1312_v10 = vsel %vm1304_vm1, %v940_v60, 0.0  ;;  %vm2853_vm4 = vmor %vm1277_vm2, %vm1278_vm3  ;;  %v1281_v8 = vand.u32 2147483647, %v2679_v44  ;;  %v1283_v56 = vand.u32 2147483648, %v2679_v44 }
 0x185   : > { %v1344_v37 = vadd.f32 1.0, %v1312_v10  ;;  %v3340_v0 = vmax.f32 %v2264_v32, 0.0  ;;  %2007 = vpow2.f32 %v1763_v48  ;;  %v1280_v23 = vsel %vm2853_vm4, %v2735_v49, %v1276_v36  ;;  %v646_v24 = vpop.f32.mrf.mxu1 }
 0x186   : > { %vm1282_vm5 = vcmp.eq.f32.partialorder %v1281_v8, 8.507059e+37  ;;  %v1284_v46 = vor.u32 1.1754944e-38, %v1283_v56  ;;  %v1290_v26 = vmul.f32 %v2783_v41, %v1289_v62  ;;  %vm1292_vm6 = vweird.f32 %v2737_v57 }
 0x187   : > { %v1375_v1 = vmul.f32 %v1343_v61, %v3340_v0  ;;  %v973_v11 = vmul.f32 %v2848_v2, %v2816_v9  ;;  %v3341_v44 = vmax.f32 %v2267_v35, 0.0  ;;  %v647_v32 = vadd.f32 %v2350_v53, %v646_v24 }
 0x188   : > { %vm1293_vm7 = vweird.f32 %v2783_v41  ;;  %v1285_v21 = vsel %vm1282_vm5, %v1284_v46, %v1280_v23  ;;  %v1291_v49 = vadd.f32 %v2783_v41, %v1290_v26  ;;  %v1296_v62 = vand.u32 2147483647, %v2737_v57 }
 0x189   : > { %v1376_v13 = vmul.f32 %v1344_v37, %v3341_v44  ;;  %vm2873_vm8 = vmor %vm1292_vm6, %vm1293_vm7  ;;  %v1298_v34 = vand.u32 2147483648, %v2737_v57  ;;  %v1764_v58 = vmul.f32 -1.442695, %v647_v32  ;;  %v1335_v35 = vsel %vm1304_vm1, %v1285_v21, 0.0 }
 0x18a   : > { %v945_v31 = vmul.f32 %v2753_v3, %v944_v18  ;;  %v2884_v33 = vpop.eup %2005  ;;  %v1295_v28 = vsel %vm2873_vm8, %v2783_v41, %v1291_v49  ;;  %vm1297_vm9 = vcmp.eq.f32.partialorder %v1296_v62, 8.507059e+37  ;;  %v1367_v51 = vadd.f32 1.0, %v1335_v35 }
 0x18b   : > { %v1404_v50 = vpack.c.bf16 %v1376_v13, %v1375_v1  ;;  %v1299_v61 = vor.u32 1.1754944e-38, %v1298_v34  ;;  %v2008_v48 = vpop.eup %2007  ;;  %v974_v57 = vsub.f32 1.0, %v973_v11  ;;  %v988_v36 = vmul.f32 %v2884_v33, %v2840_v15 }
 0x18c   : > { %2009 = vpow2.f32 %v1764_v58  ;;  %v946_v55 = vadd.f32 %v2753_v3, %v945_v31  ;;  %v2893_v18 = vadd.f32 1.0, %v2008_v48  ;;  %vm947_vm10 = vweird.f32 %v2703_v4 }
 0x18d   : > { %1794 = vmatmul.msk.bf16.gmra.mxu2 %vm351_vm0, %v1404_v50  ;;  %v1300_v60 = vsel %vm1297_vm9, %v1299_v61, %v1295_v28  ;;  %vm948_vm11 = vweird.f32 %v2753_v3  ;;  %v3344_v10 = vmax.f32 %v2272_v38, 0.0  ;;  %v951_v56 = vand.u32 2147483647, %v2703_v4  ;;  %v649_v24 = vpop.f32.mrf.mxu1 }
 0x18e   : > { %v1336_v41 = vsel %vm1304_vm1, %v1300_v60, 0.0  ;;  %vm2901_vm12 = vmor %vm947_vm10, %vm948_vm11  ;;  %v953_v37 = vand.u32 2147483648, %v2703_v4  ;;  %2011 = vrcp.f32 %v2893_v18  ;;  %v960_v23 = vmul.f32 %v2801_v45, %v959_v20 }
 0x18f   : > { %v1399_v30 = vmul.f32 %v1367_v51, %v3344_v10  ;;  %v1368_v0 = vadd.f32 1.0, %v1336_v41  ;;  %v950_v1 = vsel %vm2901_vm12, %v2753_v3, %v946_v55  ;;  %vm952_vm13 = vcmp.eq.f32.partialorder %v951_v56, 8.507059e+37  ;;  %v2938_v51 = vld [vmem:[%s3263_s4] ss:$0 sm:$0xff] }
 0x190   : > { %v954_v38 = vor.u32 1.1754944e-38, %v953_v37  ;;  %vm962_vm14 = vweird.f32 %v2755_v59  ;;  %vm963_vm15 = vweird.f32 %v2801_v45  ;;  %v3347_v46 = vmax.f32 %v2281_v42, 0.0 }
 0x191   : > { %v961_v4 = vadd.f32 %v2801_v45, %v960_v23  ;;  %v966_v11 = vand.u32 2147483647, %v2755_v59  ;;  %v968_v44 = vand.u32 2147483648, %v2755_v59  ;;  %vm964_vm2 = vmor %vm962_vm14, %vm963_vm15  ;;  %v650_v20 = vadd.f32 %v2350_v53, %v649_v24 }
 0x192   : > { %v1400_v26 = vmul.f32 %v1368_v0, %v3347_v46  ;;  %v2010_v13 = vpop.eup %2009  ;;  %v955_v3 = vsel %vm952_vm13, %v954_v38, %v950_v1  ;;  %v975_v7 = vmul.f32 %v2848_v2, %v974_v57  ;;  %v989_v59 = vsub.f32 1.0, %v988_v36 }
 0x193   : > { %v2920_v32 = vadd.f32 1.0, %v2010_v13  ;;  %v965_v49 = vsel %vm964_vm2, %v2801_v45, %v961_v4  ;;  %v969_v42 = vor.u32 1.1754944e-38, %v968_v44  ;;  %v1313_v62 = vsel %vm1304_vm1, %v955_v3, 0.0 }
 0x194   : > { %v1416_v21 = vpack.c.bf16 %v1400_v26, %v1399_v30  ;;  %v1765_v34 = vmul.f32 -1.442695, %v650_v20  ;;  %v2926_v50 = vpop.eup %2011  ;;  %vm967_vm3 = vcmp.eq.f32.partialorder %v966_v11, 8.507059e+37  ;;  %v1345_v58 = vadd.f32 1.0, %v1313_v62 }
 0x195   : > { %2013 = vrcp.f32 %v2920_v32  ;;  %v970_v53 = vsel %vm967_vm3, %v969_v42, %v965_v49  ;;  %v651_v35 = vpop.f32.mrf.mxu1  ;;  %v976_v31 = vadd.f32 %v2848_v2, %v975_v7  ;;  %vm978_vm4 = vweird.f32 %v2848_v2 }
 0x196   : > { %1806 = vmatmul.msk.bf16.gmra.mxu3 %vm351_vm0, %v1416_v21  ;;  %2015 = vpow2.f32 %v1765_v34  ;;  %v1314_v45 = vsel %vm1304_vm1, %v970_v53, 0.0  ;;  %v983_v28 = vand.u32 2147483648, %v2816_v9  ;;  %v652_v48 = vadd.f32 %v2938_v51, %v651_v35 }
 0x197   : > { %v1346_v61 = vadd.f32 1.0, %v1314_v45  ;;  %vm977_vm5 = vweird.f32 %v2816_v9  ;;  %v981_v57 = vand.u32 2147483647, %v2816_v9  ;;  %v1003_v36 = vmul.f32 %v2926_v50, %v2893_v18 }
 0x198   : > { %v990_v55 = vmul.f32 %v2884_v33, %v989_v59  ;;  %vm993_vm6 = vweird.f32 %v2884_v33  ;;  %v996_v60 = vand.u32 2147483647, %v2840_v15  ;;  %v3348_v41 = vmax.f32 %v2290_v52, 0.0  ;;  %vm2952_vm7 = vmor %vm977_vm5, %vm978_vm4 }
 0x199   : > { %v3349_v30 = vmax.f32 %v2293_v54, 0.0  ;;  %v1766_v56 = vmul.f32 -1.442695, %v652_v48  ;;  %v998_v9 = vand.u32 2147483648, %v2840_v15  ;;  %v980_v1 = vsel %vm2952_vm7, %v2848_v2, %v976_v31 }
 0x19a   : > { %v1377_v10 = vmul.f32 %v1345_v58, %v3348_v41  ;;  %v984_v23 = vor.u32 1.1754944e-38, %v983_v28  ;;  %v991_v52 = vadd.f32 %v2884_v33, %v990_v55  ;;  %vm992_vm8 = vweird.f32 %v2840_v15 }
 0x19b   : > { %v1378_v8 = vmul.f32 %v1346_v61, %v3349_v30  ;;  %v2957_v0 = vpop.eup %2013  ;;  %2017 = vpow2.f32 %v1766_v56  ;;  %vm994_vm9 = vmor %vm992_vm8, %vm993_vm6  ;;  %v999_v46 = vor.u32 1.1754944e-38, %v998_v9  ;;  %vm982_vm10 = vcmp.eq.f32.partialorder %v981_v57, 8.507059e+37 }
 0x19c   : > { %v2016_v54 = vpop.eup %2015  ;;  %v1018_v24 = vmul.f32 %v2957_v0, %v2920_v32  ;;  %v995_v26 = vsel %vm994_vm9, %v2884_v33, %v991_v52  ;;  %vm997_vm11 = vcmp.eq.f32.partialorder %v996_v60, 8.507059e+37  ;;  %v985_v15 = vsel %vm982_vm10, %v984_v23, %v980_v1 }
 0x19d   : > { %v1405_v38 = vpack.c.bf16 %v1378_v8, %v1377_v10  ;;  %v2970_v4 = vadd.f32 1.0, %v2016_v54  ;;  %v1000_v11 = vsel %vm997_vm11, %v999_v46, %v995_v26  ;;  %v1004_v44 = vsub.f32 1.0, %v1003_v36  ;;  %v654_v3 = vpop.f32.mrf.mxu1 }
 0x19e   : > { %v1019_v2 = vsub.f32 1.0, %v1018_v24  ;;  %v1316_v13 = vsel %vm1304_vm1, %v1000_v11, 0.0  ;;  %v655_v20 = vadd.f32 %v2938_v51, %v654_v3  ;;  %v1315_v21 = vsel %vm1304_vm1, %v985_v15, 0.0 }
 0x19f   : > { %1795 = vmatmul.msk.bf16.gmra.mxu2 %vm351_vm0, %v1405_v38  ;;  %2019 = vrcp.f32 %v2970_v4  ;;  %v1348_v7 = vadd.f32 1.0, %v1316_v13  ;;  %v1005_v34 = vmul.f32 %v2926_v50, %v1004_v44  ;;  %v1347_v59 = vadd.f32 1.0, %v1315_v21 }
 0x1a0   : > { %v1020_v33 = vmul.f32 %v2957_v0, %v1019_v2  ;;  %v1767_v42 = vmul.f32 -1.442695, %v655_v20  ;;  %vm1023_vm12 = vweird.f32 %v2957_v0  ;;  %v3352_v58 = vmax.f32 %v2306_v5, 0.0 }
 0x1a1   : > { %v2018_v49 = vpop.eup %2017  ;;  %v1028_v35 = vand.u32 2147483648, %v2920_v32  ;;  %v1006_v28 = vadd.f32 %v2926_v50, %v1005_v34  ;;  %vm1008_vm13 = vweird.f32 %v2926_v50  ;;  %vm1022_vm14 = vweird.f32 %v2920_v32 }
 0x1a2   : > { %v2979_v62 = vadd.f32 1.0, %v2018_v49  ;;  %2021 = vpow2.f32 %v1767_v42  ;;  %v1021_v53 = vadd.f32 %v2957_v0, %v1020_v33  ;;  %v1380_v45 = vmul.f32 %v1348_v7, %v3352_v58  ;;  %vm2998_vm15 = vmor %vm1022_vm14, %vm1023_vm12 }
 0x1a3   : > { %v1026_v61 = vand.u32 2147483647, %v2920_v32  ;;  %v3353_v57 = vmax.f32 %v2303_v63, 0.0  ;;  %v1013_v5 = vand.u32 2147483648, %v2893_v18  ;;  %vm1007_vm2 = vweird.f32 %v2893_v18 }
 0x1a4   : > { %2023 = vrcp.f32 %v2979_v62  ;;  %v1011_v41 = vand.u32 2147483647, %v2893_v18  ;;  %v1025_v32 = vsel %vm2998_vm15, %v2957_v0, %v1021_v53  ;;  %vm1009_vm3 = vmor %vm1007_vm2, %vm1008_vm13  ;;  %v1029_v8 = vor.u32 1.1754944e-38, %v1028_v35 }
 0x1a5   : > { %v656_v31 = vpop.f32.mrf.mxu1  ;;  %v2992_v48 = vpop.eup %2019  ;;  %v1379_v36 = vmul.f32 %v1347_v59, %v3353_v57  ;;  %v1010_v9 = vsel %vm1009_vm3, %v2926_v50, %v1006_v28  ;;  %vm1027_vm4 = vcmp.eq.f32.partialorder %v1026_v61, 8.507059e+37  ;;  %v1014_v18 = vor.u32 1.1754944e-38, %v1013_v5 }
 0x1a6   : > { %v657_v55 = vadd.f32 %v2938_v51, %v656_v31  ;;  %v1033_v37 = vmul.f32 %v2992_v48, %v2970_v4  ;;  %v1030_v23 = vsel %vm1027_vm4, %v1029_v8, %v1025_v32  ;;  %vm1012_vm5 = vcmp.eq.f32.partialorder %v1011_v41, 8.507059e+37 }
 0x1a7   : > { %v1406_v30 = vpack.c.bf16 %v1380_v45, %v1379_v36  ;;  %v1015_v54 = vsel %vm1012_vm5, %v1014_v18, %v1010_v9  ;;  %v1318_v38 = vsel %vm1304_vm1, %v1030_v23, 0.0  ;;  %v3356_v33 = vmax.f32 %v2319_v16, 0.0 }
 0x1a8   : > { %v2022_v10 = vpop.eup %2021  ;;  %v1768_v63 = vmul.f32 -1.442695, %v657_v55  ;;  %v1034_v24 = vsub.f32 1.0, %v1033_v37  ;;  %v1317_v26 = vsel %vm1304_vm1, %v1015_v54, 0.0  ;;  %v1350_v11 = vadd.f32 1.0, %v1318_v38 }
 0x1a9   : > { %v3012_v0 = vadd.f32 1.0, %v2022_v10  ;;  %v1349_v20 = vadd.f32 1.0, %v1317_v26  ;;  %v1058_v7 = vand.u32 2147483648, %v2979_v62  ;;  %vm1038_vm7 = vweird.f32 %v2992_v48 }
 0x1aa   : > { %v2024_v56 = vpop.eup %2023  ;;  %2025 = vpow2.f32 %v1768_v63  ;;  %v1035_v3 = vmul.f32 %v2992_v48, %v1034_v24  ;;  %v1382_v49 = vmul.f32 %v1350_v11, %v3356_v33  ;;  %vm1052_vm8 = vweird.f32 %v2979_v62 }
 0x1ab   : > { %v1048_v1 = vmul.f32 %v2024_v56, %v2979_v62  ;;  %2027 = vrcp.f32 %v3012_v0  ;;  %vm1053_vm6 = vweird.f32 %v2024_v56  ;;  %v1056_v59 = vand.u32 2147483647, %v2979_v62 }
 0x1ac   : > { %v1036_v34 = vadd.f32 %v2992_v48, %v1035_v3  ;;  %v3357_v58 = vmax.f32 %v2316_v12, 0.0  ;;  %v1043_v16 = vand.u32 2147483648, %v2970_v4  ;;  %vm3037_vm9 = vmor %vm1052_vm8, %vm1053_vm6  ;;  %vm1037_vm10 = vweird.f32 %v2970_v4 }
 0x1ad   : > { %v1049_v52 = vsub.f32 1.0, %v1048_v1  ;;  %v659_v46 = vpop.f32.mrf.mxu1  ;;  %v1041_v28 = vand.u32 2147483647, %v2970_v4  ;;  %vm1039_vm11 = vmor %vm1037_vm10, %vm1038_vm7  ;;  %v1059_v12 = vor.u32 1.1754944e-38, %v1058_v7  ;;  %vm1057_vm12 = vcmp.eq.f32.partialorder %v1056_v59, 8.507059e+37 }
 0x1ae   : > { %v660_v50 = vadd.f32 %v2938_v51, %v659_v46  ;;  %v1381_v45 = vmul.f32 %v1349_v20, %v3357_v58  ;;  %v1040_v60 = vsel %vm1039_vm11, %v2992_v48, %v1036_v34  ;;  %v1044_v32 = vor.u32 1.1754944e-38, %v1043_v16 }
 0x1af   : > { %1796 = vmatmul.msk.bf16.gmra.mxu2 %vm351_vm0, %v1406_v30  ;;  %v1050_v2 = vmul.f32 %v2024_v56, %v1049_v52  ;;  %vm1042_vm13 = vcmp.eq.f32.partialorder %v1041_v28, 8.507059e+37  ;;  %v3361_v20 = vmax.f32 %v2329_v25, 0.0  ;;  %vm1067_vm4 = vweird.f32 %v3012_v0 }
 0x1b0   : > { %v2026_v15 = vpop.eup %2025  ;;  %v1769_v44 = vmul.f32 -1.442695, %v660_v50  ;;  %v1407_v57 = vpack.c.bf16 %v1382_v49, %v1381_v45  ;;  %v1045_v63 = vsel %vm1042_vm13, %v1044_v32, %v1040_v60  ;;  %v3360_v50 = vmax.f32 %v2332_v29, 0.0 }
 0x1b1   : > { %v3020_v13 = vadd.f32 1.0, %v2026_v15  ;;  %v1051_v21 = vadd.f32 %v2024_v56, %v1050_v2  ;;  %v3031_v53 = vpop.eup %2027  ;;  %v1319_v9 = vsel %vm1304_vm1, %v1045_v63, 0.0  ;;  %v1073_v29 = vand.u32 2147483648, %v3012_v0 }
 0x1b2   : > { %2029 = vpow2.f32 %v1769_v44  ;;  %v1063_v5 = vmul.f32 %v3031_v53, %v3012_v0  ;;  %v1351_v38 = vadd.f32 1.0, %v1319_v9  ;;  %vm1068_vm15 = vweird.f32 %v3031_v53 }
 0x1b3   : > { %2031 = vrcp.f32 %v3020_v13  ;;  %v1055_v62 = vsel %vm3037_vm9, %v2024_v56, %v1051_v21  ;;  %v1088_v2 = vand.u32 2147483648, %v3020_v13  ;;  %vm1082_vm2 = vweird.f32 %v3020_v13  ;;  %vm1069_vm5 = vmor %vm1067_vm4, %vm1068_vm15 }
 0x1b4   : > { %v1060_v4 = vsel %vm1057_vm12, %v1059_v12, %v1055_v62  ;;  %v1064_v8 = vsub.f32 1.0, %v1063_v5  ;;  %v1086_v44 = vand.u32 2147483647, %v3020_v13  ;;  %v1383_v21 = vmul.f32 %v1351_v38, %v3361_v20 }
 0x1b5   : > { %v661_v42 = vpop.f32.mrf.mxu1  ;;  %v1320_v56 = vsel %vm1304_vm1, %v1060_v4, 0.0  ;;  %v1071_v7 = vand.u32 2147483647, %v3012_v0  ;;  %v1089_v25 = vor.u32 1.1754944e-38, %v1088_v2  ;;  %v1074_v0 = vor.u32 1.1754944e-38, %v1073_v29 }
 0x1b6   : > { %v662_v35 = vadd.f32 %v2938_v51, %v661_v42  ;;  %v1352_v23 = vadd.f32 1.0, %v1320_v56  ;;  %v1065_v24 = vmul.f32 %v3031_v53, %v1064_v8  ;;  %vm1087_vm6 = vcmp.eq.f32.partialorder %v1086_v44, 8.507059e+37 }
 0x1b7   : > { %vm1072_vm7 = vcmp.eq.f32.partialorder %v1071_v7, 8.507059e+37  ;;  %v3365_v38 = vmax.f32 %v2342_v40, 0.0 }
 0x1b8   : > { %v2030_v61 = vpop.eup %2029  ;;  %v1770_v36 = vmul.f32 -1.442695, %v662_v35  ;;  %v1384_v26 = vmul.f32 %v1352_v23, %v3360_v50  ;;  %v1066_v11 = vadd.f32 %v3031_v53, %v1065_v24 }
 0x1b9   : > { %v2032_v55 = vpop.eup %2031  ;;  %v3050_v30 = vadd.f32 1.0, %v2030_v61 }
 0x1ba   : > { %v1078_v41 = vmul.f32 %v2032_v55, %v3020_v13  ;;  %2033 = vpow2.f32 %v1770_v36  ;;  %vm1083_vm14 = vweird.f32 %v2032_v55  ;;  %v1408_v34 = vpack.c.bf16 %v1384_v26, %v1383_v21 }
 0x1bb   : > { %2035 = vrcp.f32 %v3050_v30  ;;  %vm3075_vm3 = vmor %vm1082_vm2, %vm1083_vm14  ;;  %v1070_v35 = vsel %vm1069_vm5, %v3031_v53, %v1066_v11  ;;  %v1103_v9 = vand.u32 2147483648, %v3050_v30  ;;  %vm1097_vm12 = vweird.f32 %v3050_v30 }
 0x1bc   : > { %v1079_v10 = vsub.f32 1.0, %v1078_v41  ;;  %v1075_v61 = vsel %vm1072_vm7, %v1074_v0, %v1070_v35  ;;  %v1101_v2 = vand.u32 2147483647, %v3050_v30 }
 0x1bd   : > { %v664_v37 = vpop.f32.mrf.mxu1 }
 0x1be   : > { %v665_v48 = vadd.f32 %v2938_v51, %v664_v37  ;;  %v1080_v1 = vmul.f32 %v2032_v55, %v1079_v10  ;;  %v3364_v37 = vmax.f32 %v2345_v47, 0.0  ;;  %vm1102_vm15 = vcmp.eq.f32.partialorder %v1101_v2, 8.507059e+37 }
 0x1bf   : > { %1797 = vmatmul.msk.bf16.gmra.mxu2 %vm351_vm0, %v1407_v57 }
 0x1c0   : > { %v2034_v18 = vpop.eup %2033  ;;  %v1771_v52 = vmul.f32 -1.442695, %v665_v48  ;;  %v1081_v46 = vadd.f32 %v2032_v55, %v1080_v1 }
 0x1c1   : > { %v3058_v54 = vadd.f32 1.0, %v2034_v18  ;;  %v3069_v3 = vpop.eup %2035  ;;  %v3113_v18 = vld [vmem:[%s3265_s6] ss:$0 sm:$0xff] }
 0x1c2   : > { %2037 = vpow2.f32 %v1771_v52  ;;  %v1085_v13 = vsel %vm3075_vm3, %v2032_v55, %v1081_v46  ;;  %v1093_v45 = vmul.f32 %v3069_v3, %v3050_v30  ;;  %v1321_v55 = vsel %vm1304_vm1, %v1075_v61, 0.0 }
 0x1c3   : > { %2039 = vrcp.f32 %v3058_v54  ;;  %v1090_v31 = vsel %vm1087_vm6, %v1089_v25, %v1085_v13  ;;  %v1353_v8 = vadd.f32 1.0, %v1321_v55  ;;  %v1118_v1 = vand.u32 2147483648, %v3058_v54 }
 0x1c4   : > { %v1094_v57 = vsub.f32 1.0, %v1093_v45  ;;  %v1322_v36 = vsel %vm1304_vm1, %v1090_v31, 0.0  ;;  %vm1098_vm9 = vweird.f32 %v3069_v3  ;;  %vm1112_vm10 = vweird.f32 %v3058_v54 }
 0x1c5   : > { %v666_v15 = vpop.f32.mrf.mxu1  ;;  %v1354_v41 = vadd.f32 1.0, %v1322_v36  ;;  %v1116_v47 = vand.u32 2147483647, %v3058_v54  ;;  %v1385_v46 = vmul.f32 %v1353_v8, %v3365_v38  ;;  %vm3134_vm13 = vmor %vm1097_vm12, %vm1098_vm9  ;;  %v1119_v20 = vor.u32 1.1754944e-38, %v1118_v1 }
 0x1c6   : > { %v667_v33 = vadd.f32 %v2938_v51, %v666_v15  ;;  %v1095_v63 = vmul.f32 %v3069_v3, %v1094_v57 }
 0x1c7   : > { %v1386_v48 = vmul.f32 %v1354_v41, %v3364_v37  ;;  %vm1117_vm14 = vcmp.eq.f32.partialorder %v1116_v47, 8.507059e+37  ;;  %v3371_v37 = vmax.f32 %v2365_v43, 0.0 }
 0x1c8   : > { %v2038_v42 = vpop.eup %2037  ;;  %v1772_v59 = vmul.f32 -1.442695, %v667_v33  ;;  %v1096_v52 = vadd.f32 %v3069_v3, %v1095_v63 }
 0x1c9   : > { %v3083_v58 = vpop.eup %2039  ;;  %v3091_v62 = vadd.f32 1.0, %v2038_v42  ;;  %v1409_v11 = vpack.c.bf16 %v1386_v48, %v1385_v46 }
 0x1ca   : > { %v1108_v16 = vmul.f32 %v3083_v58, %v3058_v54  ;;  %2041 = vpow2.f32 %v1772_v59  ;;  %vm1113_vm8 = vweird.f32 %v3083_v58  ;;  %v1100_v49 = vsel %vm3134_vm13, %v3069_v3, %v1096_v52 }
 0x1cb   : > { %2043 = vrcp.f32 %v3091_v62  ;;  %vm3124_vm11 = vmor %vm1112_vm10, %vm1113_vm8  ;;  %vm1127_vm6 = vweird.f32 %v3091_v62  ;;  %v1131_v1 = vand.u32 2147483647, %v3091_v62 }
 0x1cc   : > { %v1109_v28 = vsub.f32 1.0, %v1108_v16 }
 0x1cd   : > { %vm1132_vm9 = vcmp.eq.f32.partialorder %v1131_v1, 8.507059e+37 }
 0x1ce   : > { %v669_v12 = vpop.f32.mrf.mxu1  ;;  %v1110_v5 = vmul.f32 %v3083_v58, %v1109_v28 }
 0x1cf   : > { %1798 = vmatmul.msk.bf16.gmra.mxu2 %vm351_vm0, %v1408_v34  ;;  %v670_v53 = vadd.f32 %v2938_v51, %v669_v12 }
 0x1d0   : > { %v2042_v60 = vpop.eup %2041  ;;  %v1494_v10 = vpop.f32.mrf.mxu2  ;;  %v1111_v56 = vadd.f32 %v3083_v58, %v1110_v5  ;;  %v3370_v5 = vmax.f32 %v2371_v14, 0.0 }
 0x1d1   : > { %v1773_v32 = vmul.f32 -1.442695, %v670_v53  ;;  %v3100_v4 = vadd.f32 1.0, %v2042_v60  ;;  %v3119_v24 = vpop.eup %2043  ;;  %v1495_v30 = vadd.f32 %v3113_v18, %v1494_v10 }
 0x1d2   : > { %v1115_v15 = vsel %vm3124_vm11, %v3083_v58, %v1111_v56  ;;  %v1123_v33 = vmul.f32 %v3119_v24, %v3091_v62  ;;  %vm1128_vm3 = vweird.f32 %v3119_v24 }
 0x1d3   : > { %2045 = vpow2.f32 %v1773_v32  ;;  %v1120_v42 = vsel %vm1117_vm14, %v1119_v20, %v1115_v15  ;;  %v1148_v10 = vand.u32 2147483648, %v3100_v4  ;;  %vm1142_vm4 = vweird.f32 %v3100_v4  ;;  %vm1129_vm7 = vmor %vm1127_vm6, %vm1128_vm3 }
 0x1d4   : > { %2047 = vrcp.f32 %v3100_v4  ;;  %v1124_v45 = vsub.f32 1.0, %v1123_v33  ;;  %v1324_v35 = vsel %vm1304_vm1, %v1120_v42, 0.0  ;;  %v1146_v8 = vand.u32 2147483647, %v3100_v4 }
 0x1d5   : > { %v1356_v28 = vadd.f32 1.0, %v1324_v35  ;;  %v1149_v47 = vor.u32 1.1754944e-38, %v1148_v10 }
 0x1d6   : > { %v671_v23 = vpop.f32.mrf.mxu1  ;;  %v1125_v57 = vmul.f32 %v3119_v24, %v1124_v45  ;;  %vm1147_vm8 = vcmp.eq.f32.partialorder %v1146_v8, 8.507059e+37 }
 0x1d7   : > { %v672_v50 = vadd.f32 %v2938_v51, %v671_v23  ;;  %v1104_v51 = vor.u32 1.1754944e-38, %v1103_v9  ;;  %v1388_v60 = vmul.f32 %v1356_v28, %v3370_v5  ;;  %v1133_v9 = vand.u32 2147483648, %v3091_v62 }
 0x1d8   : > { %v1496_v29 = vpop.f32.mrf.mxu2  ;;  %v1126_v63 = vadd.f32 %v3119_v24, %v1125_v57 }
 0x1d9   : > { %v2046_v54 = vpop.eup %2045  ;;  %v1774_v44 = vmul.f32 -1.442695, %v672_v50  ;;  %v1497_v13 = vadd.f32 %v3113_v18, %v1496_v29  ;;  %v1105_v58 = vsel %vm1102_vm15, %v1104_v51, %v1100_v49  ;;  %v1134_v50 = vor.u32 1.1754944e-38, %v1133_v9 }
 0x1da   : > { %v2048_v21 = vpop.eup %2047  ;;  %v3152_v25 = vadd.f32 1.0, %v2046_v54  ;;  %v1323_v16 = vsel %vm1304_vm1, %v1105_v58, 0.0  ;;  %v1130_v43 = vsel %vm1129_vm7, %v3119_v24, %v1126_v63 }
 0x1db   : > { %v1138_v7 = vmul.f32 %v2048_v21, %v3100_v4  ;;  %2049 = vpow2.f32 %v1774_v44  ;;  %v1818_v3 = vpack.c.bf16 %v1497_v13, %v1495_v30  ;;  %v1355_v36 = vadd.f32 1.0, %v1323_v16 }
 0x1dc   : > { %v1554_v34 = vpop.f32.mrf.mxu3  ;;  %2051 = vrcp.f32 %v3152_v25  ;;  %vm1143_vm2 = vweird.f32 %v2048_v21  ;;  %v1135_v15 = vsel %vm1132_vm9, %v1134_v50, %v1130_v43  ;;  %v1163_v45 = vand.u32 2147483648, %v3152_v25 }
 0x1dd   : > { %v1139_v59 = vsub.f32 1.0, %v1138_v7  ;;  %1819 = vst [vmem:[%s3149_s9] sm:$0xff] %v1818_v3   ;;  %v1555_v55 = vadd.f32 %v3113_v18, %v1554_v34  ;;  %v1387_v14 = vmul.f32 %v1355_v36, %v3371_v37  ;;  %vm1144_vm5 = vmor %vm1142_vm4, %vm1143_vm2  ;;  %v1325_v51 = vsel %vm1304_vm1, %v1135_v15, 0.0 }
 0x1de   : > { %v1357_v29 = vadd.f32 1.0, %v1325_v51  ;;  %v3372_v7 = vmax.f32 %v2412_v27, 0.0  ;;  %v3373_v3 = vmax.f32 %v2389_v39, 0.0  ;;  %vm1157_vm14 = vweird.f32 %v3152_v25 }
 0x1df   : > { %1799 = vmatmul.msk.bf16.gmra.mxu2 %vm351_vm0, %v1409_v11  ;;  %v1140_v0 = vmul.f32 %v2048_v21, %v1139_v59  ;;  %v1410_v52 = vpack.c.bf16 %v1388_v60, %v1387_v14  ;;  %v1161_v27 = vand.u32 2147483647, %v3152_v25  ;;  %v1164_v57 = vor.u32 1.1754944e-38, %v1163_v45 }
 0x1e0   : > { %v1389_v58 = vmul.f32 %v1357_v29, %v3373_v3  ;;  %v3374_v14 = vmax.f32 %v2458_v19, 0.0 }
 0x1e1   : > { %v2050_v31 = vpop.eup %2049  ;;  %v1141_v53 = vadd.f32 %v2048_v21, %v1140_v0  ;;  %vm1162_vm3 = vcmp.eq.f32.partialorder %v1161_v27, 8.507059e+37 }
 0x1e2   : > { %v3160_v61 = vadd.f32 1.0, %v2050_v31  ;;  %v3173_v56 = vpop.eup %2051 }
 0x1e3   : > { %v1145_v23 = vsel %vm1144_vm5, %v2048_v21, %v1141_v53  ;;  %v1153_v4 = vmul.f32 %v3173_v56, %v3152_v25  ;;  %vm1158_vm11 = vweird.f32 %v3173_v56 }
 0x1e4   : > { %2053 = vrcp.f32 %v3160_v61  ;;  %v1556_v12 = vpop.f32.mrf.mxu3  ;;  %v1150_v26 = vsel %vm1147_vm8, %v1149_v47, %v1145_v23  ;;  %v1178_v42 = vand.u32 2147483648, %v3160_v61  ;;  %vm1172_vm12 = vweird.f32 %v3160_v61  ;;  %vm1159_vm15 = vmor %vm1157_vm14, %vm1158_vm11 }
 0x1e5   : > { %v1499_v41 = vpop.f32.mrf.mxu2  ;;  %v1557_v32 = vadd.f32 %v3113_v18, %v1556_v12  ;;  %v1154_v54 = vsub.f32 1.0, %v1153_v4  ;;  %v1326_v24 = vsel %vm1304_vm1, %v1150_v26, 0.0  ;;  %v1176_v59 = vand.u32 2147483647, %v3160_v61 }
 0x1e6   : > { %v1500_v11 = vadd.f32 %v3113_v18, %v1499_v41  ;;  %v1358_v33 = vadd.f32 1.0, %v1326_v24  ;;  %v1179_v31 = vor.u32 1.1754944e-38, %v1178_v42 }
 0x1e7   : > { %v1878_v48 = vpack.c.bf16 %v1557_v32, %v1555_v55  ;;  %v1155_v30 = vmul.f32 %v3173_v56, %v1154_v54  ;;  %vm1177_vm2 = vcmp.eq.f32.partialorder %v1176_v59, 8.507059e+37 }
 0x1e8   : > { %v1390_v13 = vmul.f32 %v1358_v33, %v3372_v7 }
 0x1e9   : > { %1906 = vst [vmem:[%s3149_s9 + $0x60] sm:$0xff] %v1878_v48   ;;  %v1156_v34 = vadd.f32 %v3173_v56, %v1155_v30 }
 0x1ea   : > { %v2054_v38 = vpop.eup %2053  ;;  %v1411_v16 = vpack.c.bf16 %v1390_v13, %v1389_v58 }
 0x1eb   : > { %v1168_v46 = vmul.f32 %v2054_v38, %v3160_v61  ;;  %vm1173_vm10 = vweird.f32 %v2054_v38  ;;  %v1160_v39 = vsel %vm1159_vm15, %v3173_v56, %v1156_v34 }
 0x1ec   : > { %vm1174_vm13 = vmor %vm1172_vm12, %vm1173_vm10  ;;  %v1165_v25 = vsel %vm1162_vm3, %v1164_v57, %v1160_v39 }
 0x1ed   : > { %v1169_v2 = vsub.f32 1.0, %v1168_v46  ;;  %v1501_v62 = vpop.f32.mrf.mxu2  ;;  %v1327_v5 = vsel %vm1304_vm1, %v1165_v25, 0.0 }
 0x1ee   : > { %v1502_v44 = vadd.f32 %v3113_v18, %v1501_v62  ;;  %v1359_v41 = vadd.f32 1.0, %v1327_v5 }
 0x1ef   : > { %1800 = vmatmul.msk.bf16.gmra.mxu2 %vm351_vm0, %v1410_v52  ;;  %v1170_v20 = vmul.f32 %v2054_v38, %v1169_v2 }
 0x1f0   : > { %v1823_v40 = vpack.c.bf16 %v1502_v44, %v1500_v11  ;;  %v1391_v48 = vmul.f32 %v1359_v41, %v3374_v14 }
 0x1f1   : > { %v1171_v49 = vadd.f32 %v2054_v38, %v1170_v20 }
 0x1f2   : > { %v1559_v21 = vpop.f32.mrf.mxu3  ;;  %1895 = vst [vmem:[%s3149_s9 + $0x8] sm:$0xff] %v1823_v40  }
 0x1f3   : > { %v1175_v35 = vsel %vm1174_vm13, %v2054_v38, %v1171_v49  ;;  %v1560_v28 = vadd.f32 %v3113_v18, %v1559_v21 }
 0x1f4   : > { %v1180_v36 = vsel %vm1177_vm2, %v1179_v31, %v1175_v35 }
 0x1f5   : > { %v1328_v55 = vsel %vm1304_vm1, %v1180_v36, 0.0 }
 0x1f6   : > { %v1360_v60 = vadd.f32 1.0, %v1328_v55 }
 0x1f8   : > { %v1392_v8 = vmul.f32 %v1360_v60, %v512_v22 }
 0x1fa   : > { %v1561_v0 = vpop.f32.mrf.mxu3  ;;  %v1412_v6 = vpack.c.bf16 %v1392_v8, %v1391_v48 }
 0x1fb   : > { %v1562_v61 = vadd.f32 %v3113_v18, %v1561_v0 }
 0x1fd   : > { %v1504_v12 = vpop.f32.mrf.mxu2  ;;  %v1883_v53 = vpack.c.bf16 %v1562_v61, %v1560_v28 }
 0x1fe   : > { %v1505_v10 = vadd.f32 %v3113_v18, %v1504_v12 }
 0x1ff   : > { %1801 = vmatmul.msk.bf16.gmra.mxu2 %vm351_vm0, %v1411_v16  ;;  %1907 = vst [vmem:[%s3149_s9 + $0x68] sm:$0xff] %v1883_v53  }
 0x205   : > { %v1506_v32 = vpop.f32.mrf.mxu2 }
 0x206   : > { %v1507_v63 = vadd.f32 %v3113_v18, %v1506_v32 }
 0x207   : > { %v1564_v56 = vpop.f32.mrf.mxu3 }
 0x208   : > { %v1828_v37 = vpack.c.bf16 %v1507_v63, %v1505_v10  ;;  %v1565_v23 = vadd.f32 %v3113_v18, %v1564_v56 }
 0x20a   : > { %1896 = vst [vmem:[%s3149_s9 + $0x10] sm:$0xff] %v1828_v37  }
 0x20f   : > { %1802 = vmatmul.msk.bf16.gmra.mxu2 %vm351_vm0, %v1412_v6  ;;  %v1566_v1 = vpop.f32.mrf.mxu3 }
 0x210   : > { %v1509_v9 = vpop.f32.mrf.mxu2  ;;  %v1567_v52 = vadd.f32 %v3113_v18, %v1566_v1 }
 0x211   : > { %v1510_v22 = vadd.f32 %v3113_v18, %v1509_v9 }
 0x212   : > { %v1888_v47 = vpack.c.bf16 %v1567_v52, %v1565_v23 }
 0x214   : > { %1908 = vst [vmem:[%s3149_s9 + $0x70] sm:$0xff] %v1888_v47  }
 0x218   : > { %v1511_v17 = vpop.f32.mrf.mxu2 }
 0x219   : > { %v1512_v19 = vadd.f32 %v3113_v18, %v1511_v17  ;;  %v1569_v38 = vpop.f32.mrf.mxu3 }
 0x21a   : > { %v1570_v46 = vadd.f32 %v3113_v18, %v1569_v38 }
 0x21b   : > { %v1833_v4 = vpack.c.bf16 %v1512_v19, %v1510_v22 }
 0x21d   : > { %1897 = vst [vmem:[%s3149_s9 + $0x18] sm:$0xff] %v1833_v4  }
 0x221   : > { %v1571_v43 = vpop.f32.mrf.mxu3 }
 0x222   : > { %v1514_v50 = vpop.f32.mrf.mxu2  ;;  %v1572_v26 = vadd.f32 %v3113_v18, %v1571_v43 }
 0x223   : > { %v1515_v15 = vadd.f32 %v3113_v18, %v1514_v50 }
 0x224   : > { %v1893_v2 = vpack.c.bf16 %v1572_v26, %v1570_v46 }
 0x226   : > { %1909 = vst [vmem:[%s3149_s9 + $0x78] sm:$0xff] %v1893_v2  }
 0x22a   : > { %v1516_v62 = vpop.f32.mrf.mxu2 }
 0x22b   : > { %v1517_v54 = vadd.f32 %v3113_v18, %v1516_v62 }
 0x22d   : > { %v1838_v11 = vpack.c.bf16 %v1517_v54, %v1515_v15 }
 0x22f   : > { %1898 = vst [vmem:[%s3149_s9 + $0x20] sm:$0xff] %v1838_v11  }
 0x232   : > { %v1519_v44 = vpop.f32.mrf.mxu2 }
 0x233   : > { %v1520_v40 = vadd.f32 %v3113_v18, %v1519_v44 }
 0x23a   : > { %v1521_v24 = vpop.f32.mrf.mxu2 }
 0x23b   : > { %v1522_v51 = vadd.f32 %v3113_v18, %v1521_v24 }
 0x23d   : > { %v1843_v20 = vpack.c.bf16 %v1522_v51, %v1520_v40 }
 0x23f   : > { %1899 = vst [vmem:[%s3149_s9 + $0x28] sm:$0xff] %v1843_v20  }
 0x242   : > { %v1524_v21 = vpop.f32.mrf.mxu2 }
 0x243   : > { %v1525_v30 = vadd.f32 %v3113_v18, %v1524_v21 }
 0x24a   : > { %v1526_v33 = vpop.f32.mrf.mxu2 }
 0x24b   : > { %v1527_v29 = vadd.f32 %v3113_v18, %v1526_v33 }
 0x24d   : > { %v1848_v49 = vpack.c.bf16 %v1527_v29, %v1525_v30 }
 0x24f   : > { %1900 = vst [vmem:[%s3149_s9 + $0x30] sm:$0xff] %v1848_v49  }
 0x252   : > { %v1529_v7 = vpop.f32.mrf.mxu2 }
 0x253   : > { %v1530_v42 = vadd.f32 %v3113_v18, %v1529_v7 }
 0x25a   : > { %v1531_v13 = vpop.f32.mrf.mxu2 }
 0x25b   : > { %v1532_v34 = vadd.f32 %v3113_v18, %v1531_v13 }
 0x25d   : > { %v1853_v59 = vpack.c.bf16 %v1532_v34, %v1530_v42 }
 0x25f   : > { %1901 = vst [vmem:[%s3149_s9 + $0x38] sm:$0xff] %v1853_v59  }
 0x262   : > { %v1534_v3 = vpop.f32.mrf.mxu2 }
 0x263   : > { %v1535_v45 = vadd.f32 %v3113_v18, %v1534_v3 }
 0x26a   : > { %v1536_v58 = vpop.f32.mrf.mxu2 }
 0x26b   : > { %v1537_v27 = vadd.f32 %v3113_v18, %v1536_v58 }
 0x26d   : > { %v1858_v35 = vpack.c.bf16 %v1537_v27, %v1535_v45 }
 0x26f   : > { %1902 = vst [vmem:[%s3149_s9 + $0x40] sm:$0xff] %v1858_v35  }
 0x272   : > { %v1539_v16 = vpop.f32.mrf.mxu2 }
 0x273   : > { %v1540_v31 = vadd.f32 %v3113_v18, %v1539_v16 }
 0x27a   : > { %v1541_v0 = vpop.f32.mrf.mxu2 }
 0x27b   : > { %v1542_v28 = vadd.f32 %v3113_v18, %v1541_v0 }
 0x27d   : > { %v1863_v61 = vpack.c.bf16 %v1542_v28, %v1540_v31 }
 0x27f   : > { %1903 = vst [vmem:[%s3149_s9 + $0x48] sm:$0xff] %v1863_v61  }
 0x282   : > { %v1544_v39 = vpop.f32.mrf.mxu2 }
 0x283   : > { %v1545_v36 = vadd.f32 %v3113_v18, %v1544_v39 }
 0x28a   : > { %v1546_v57 = vpop.f32.mrf.mxu2 }
 0x28b   : > { %v1547_v12 = vadd.f32 %v3113_v18, %v1546_v57 }
 0x28d   : > { %v1868_v53 = vpack.c.bf16 %v1547_v12, %v1545_v36 }
 0x28f   : > { %1904 = vst [vmem:[%s3149_s9 + $0x50] sm:$0xff] %v1868_v53  }
 0x292   : > { %v1549_v25 = vpop.f32.mrf.mxu2 }
 0x293   : > { %v1550_v5 = vadd.f32 %v3113_v18, %v1549_v25 }
 0x29a   : > { %v1551_v55 = vpop.f32.mrf.mxu2 }
 0x29b   : > { %v1552_v60 = vadd.f32 %v3113_v18, %v1551_v55 }
 0x29d   : > { %v1873_v41 = vpack.c.bf16 %v1552_v60, %v1550_v5 }
 0x29f   : > { %1905 = vst [vmem:[%s3149_s9 + $0x58] sm:$0xff] %v1873_v41  }
 0x2a0 PF: > { %s17_s24 = sadd.s32 1, %s2062_s24  }
 0x2a1   : > { %p14_p4 = scmp.ge.s32.totalorder %s17_s24, 4  }
 0x2a3   :  { %16 = sbr.rel (!%p14_p4) target bundleno = 1 (0x1), region = 78 }

</bundles_post_ra>
